<compile_context>
chip_gen: v7x
topology: tpu7x:2x2x1
jax: 0.10.0
libtpu: 0.0.40
codegen_flags: <defaults>
</compile_context>

<pallas_src>
import numpy as np

import jax
import jax.numpy as jnp
from jax.experimental import pallas as pl
from jax.experimental.pallas import tpu as pltpu

NUM_CLASSES = 10   # stand-in for len(CLASSES_LIST)
LANE = 128         # TPU lane width; all kernel outputs padded to this


# ------------------------------ helpers -------------------------------------

def _round_up(x, m):
    return (x + m - 1) // m * m


def _pick_tile(m, cap):
    """Largest row tile <= cap that is a multiple of 8 (covers m if small)."""
    return min(cap, _round_up(m, 8))


def _pad_rows(a, rows):
    return a if a.shape[0] == rows else jnp.pad(a, ((0, rows - a.shape[0]), (0, 0)))


# ---------------------------- Pallas kernels --------------------------------

def _conv_relu_pool_kernel(p00_ref, p01_ref, p10_ref, p11_ref, w_ref, b_ref, o_ref):
    """Fused conv-as-matmul over the 4 pool-window parities + bias + ReLU + 2x2 max.

    relu(max_i(s_i) + b) == max_i(relu(s_i + b)) (monotone epilogue), so this
    reproduces conv -> ReLU -> MaxPool2d(2, 2) exactly.
    """
    w = w_ref[...]
    s = jnp.dot(p00_ref[...], w, preferred_element_type=jnp.float32)
    s = jnp.maximum(s, jnp.dot(p01_ref[...], w, preferred_element_type=jnp.float32))
    s = jnp.maximum(s, jnp.dot(p10_ref[...], w, preferred_element_type=jnp.float32))
    s = jnp.maximum(s, jnp.dot(p11_ref[...], w, preferred_element_type=jnp.float32))
    o_ref[...] = jnp.maximum(s + b_ref[...], 0.0).astype(o_ref.dtype)


def _fc_stack_kernel(x_ref, w1_ref, b1_ref, w2_ref, b2_ref, w3_ref, b3_ref, o_ref):
    """Fused (avgpool-folded) fc1 + ReLU + fc2 + ReLU + fc3 for one batch tile."""
    h = jnp.dot(x_ref[...], w1_ref[...], preferred_element_type=jnp.float32)
    h = jnp.maximum(h + b1_ref[...], 0.0)
    h = jnp.dot(h, w2_ref[...], preferred_element_type=jnp.float32)
    h = jnp.maximum(h + b2_ref[...], 0.0)
    h = jnp.dot(h, w3_ref[...], preferred_element_type=jnp.float32)
    o_ref[...] = (h + b3_ref[...]).astype(o_ref.dtype)


def conv_relu_pool(parts, wmat, bias, tile_cap=512):
    """parts: 4 parity patch matrices (M, K); wmat: (K, LANE); bias: (1, LANE)."""
    M, K = parts[0].shape
    tile_m = _pick_tile(M, tile_cap)
    m_pad = _round_up(M, tile_m)
    parts = [_pad_rows(p, m_pad) for p in parts]
    out = pl.pallas_call(
        _conv_relu_pool_kernel,
        out_shape=jax.ShapeDtypeStruct((m_pad, LANE), jnp.float32),
        grid=(m_pad // tile_m,),
        in_specs=[pl.BlockSpec((tile_m, K), lambda i: (i, 0)) for _ in range(4)]
        + [pl.BlockSpec((K, LANE), lambda i: (0, 0)),      # weight: VMEM-resident
           pl.BlockSpec((1, LANE), lambda i: (0, 0))],     # bias:   VMEM-resident
        out_specs=pl.BlockSpec((tile_m, LANE), lambda i: (i, 0)),
        compiler_params=pltpu.CompilerParams(dimension_semantics=("parallel",)),
    )(*parts, wmat, bias)
    return out[:M]


def fc_stack(x, w1, b1, w2, b2, w3, b3, tile_cap=256):
    """x: (B, 3200). All three (padded) FC weights stay resident in VMEM."""
    B, K = x.shape
    tile_b = _pick_tile(B, tile_cap)
    b_pad = _round_up(B, tile_b)
    xp = _pad_rows(x, b_pad)

    def full(shape):
        return pl.BlockSpec(shape, lambda i: (0, 0))

    out = pl.pallas_call(
        _fc_stack_kernel,
        out_shape=jax.ShapeDtypeStruct((b_pad, LANE), jnp.float32),
        grid=(b_pad // tile_b,),
        in_specs=[pl.BlockSpec((tile_b, K), lambda i: (i, 0)),
                  full((K, LANE)), full((1, LANE)),
                  full((LANE, LANE)), full((1, LANE)),
                  full((LANE, LANE)), full((1, LANE))],
        out_specs=pl.BlockSpec((tile_b, LANE), lambda i: (i, 0)),
        compiler_params=pltpu.CompilerParams(dimension_semantics=("parallel",)),
    )(xp, w1, b1, w2, b2, w3, b3)
    return out[:B]


# ------------------------------ plain-JAX glue -------------------------------

def pool_parity_patches(x, k, pool):
    """NHWC x -> 4 pool-parity im2col matrices for a valid k x k conv + pool."""
    N, H, W, C = x.shape
    Ho, Wo = H - k + 1, W - k + 1
    Hp, Wp = Ho // pool, Wo // pool
    taps = [x[:, di:di + Ho, dj:dj + Wo, :] for di in range(k) for dj in range(k)]
    cols = jnp.concatenate(taps, axis=-1)                  # (N, Ho, Wo, k*k*C)
    cols = cols[:, :pool * Hp, :pool * Wp, :]
    parts = [cols[:, p::pool, q::pool, :].reshape(N * Hp * Wp, k * k * C)
             for p in range(pool) for q in range(pool)]
    return parts, (N, Hp, Wp)


# ------------------------------ parameters -----------------------------------

def init_params(key):
    """PyTorch-style uniform(-1/sqrt(fan_in), 1/sqrt(fan_in)) init."""
    ks = jax.random.split(key, 10)

    def u(k, shape, fan_in):
        bound = 1.0 / (fan_in ** 0.5)
        return jax.random.uniform(k, shape, jnp.float32, -bound, bound)

    return {
        "conv1_w": u(ks[0], (6, 3, 5, 5), 3 * 25),
        "conv1_b": u(ks[1], (6,), 3 * 25),
        "conv2_w": u(ks[2], (16, 6, 5, 5), 6 * 25),
        "conv2_b": u(ks[3], (16,), 6 * 25),
        "fc1_w": u(ks[4], (120, 16 * 4 * 4), 16 * 4 * 4),
        "fc1_b": u(ks[5], (120,), 16 * 4 * 4),
        "fc2_w": u(ks[6], (84, 120), 120),
        "fc2_b": u(ks[7], (84,), 120),
        "fc3_w": u(ks[8], (NUM_CLASSES, 84), 84),
        "fc3_b": u(ks[9], (NUM_CLASSES,), 84),
    }


def prepare_params(params):
    """One-time prep: matmul layout, zero-pad to 128 lanes, fold avgpool into fc1."""
    def pad_cols(a):
        return jnp.pad(a, ((0, 0), (0, LANE - a.shape[1])))

    def conv_w(w):                        # (Cout, Cin, k, k) -> (k*k*Cin, LANE)
        cout, cin, k, _ = w.shape
        m = jnp.transpose(w, (2, 3, 1, 0)).reshape(k * k * cin, cout)
        return pad_cols(m)

    def pad_bias(b):
        return jnp.pad(b, (0, LANE - b.shape[0])).reshape(1, LANE)

    def fc_w(wt):                         # torch (out, in) -> (LANE, LANE)
        w = wt.T
        return jnp.pad(w, ((0, LANE - w.shape[0]), (0, LANE - w.shape[1])))

    # Conv2 stage emits (N, 5, 5, 128) flattened to (N, 3200) with feature
    # index f = h*640 + w*128 + c (c < 16 valid, rest zero).  AdaptiveAvgPool2d
    # ((4,4)) on the 5x5 map averages the 2x2 window starting at (ho, wo), and
    # torch.flatten orders features as c*16 + ho*4 + wo.  Both pooling and the
    # re-indexing are linear, so fold them into fc1's weight.
    fold = np.zeros((5 * 5 * LANE, 16 * 4 * 4), np.float32)
    for c in range(16):
        for ho in range(4):
            for wo in range(4):
                col = c * 16 + ho * 4 + wo
                for dh in range(2):
                    for dw in range(2):
                        f = (ho + dh) * (5 * LANE) + (wo + dw) * LANE + c
                        fold[f, col] += 0.25
    w1_eff = jnp.asarray(fold) @ params["fc1_w"].T            # (3200, 120)

    return {
        "c1_w": conv_w(params["conv1_w"]), "c1_b": pad_bias(params["conv1_b"]),
        "c2_w": conv_w(params["conv2_w"]), "c2_b": pad_bias(params["conv2_b"]),
        "fc1_w": pad_cols(w1_eff),         "fc1_b": pad_bias(params["fc1_b"]),
        "fc2_w": fc_w(params["fc2_w"]),    "fc2_b": pad_bias(params["fc2_b"]),
        "fc3_w": fc_w(params["fc3_w"]),    "fc3_b": pad_bias(params["fc3_b"]),
    }


# -------------------------------- forward ------------------------------------

@jax.jit
def net_forward(prep, x):
    """x: (N, 3, 32, 32) NCHW float32 -> (N, NUM_CLASSES) logits."""
    n = x.shape[0]
    xh = jnp.transpose(x, (0, 2, 3, 1))                        # NCHW -> NHWC
    parts1, (_, hp1, wp1) = pool_parity_patches(xh, k=5, pool=2)     # K = 75
    y1 = conv_relu_pool(parts1, prep["c1_w"], prep["c1_b"])    # (N*14*14, 128)
    y1 = y1.reshape(n, hp1, wp1, LANE)[..., :6]                # (N, 14, 14, 6)
    parts2, (_, hp2, wp2) = pool_parity_patches(y1, k=5, pool=2)     # K = 150
    y2 = conv_relu_pool(parts2, prep["c2_w"], prep["c2_b"])    # (N*5*5, 128)
    feats = y2.reshape(n, hp2 * wp2 * LANE)                    # (N, 3200)
    logits = fc_stack(feats,
                      prep["fc1_w"], prep["fc1_b"],
                      prep["fc2_w"], prep["fc2_b"],
                      prep["fc3_w"], prep["fc3_b"])            # (N, 128)
    return logits[:, :NUM_CLASSES]


# ---------------------------- pure-JAX reference ------------------------------

def reference_forward(params, x):
    """Faithful mirror of the PyTorch module, for a numerical cross-check."""
    def conv_relu(x, w, b):
        y = jax.lax.conv_general_dilated(
            x, w, window_strides=(1, 1), padding="VALID",
            dimension_numbers=("NCHW", "OIHW", "NCHW"))
        return jax.nn.relu(y + b[None, :, None, None])

    def maxpool(x):
        return jax.lax.reduce_window(x, -jnp.inf, jax.lax.max,
                                     (1, 1, 2, 2), (1, 1, 2, 2), "VALID")

    y = maxpool(conv_relu(x, params["conv1_w"], params["conv1_b"]))
    y = maxpool(conv_relu(y, params["conv2_w"], params["conv2_b"]))
    y = 0.25 * (y[:, :, 0:4, 0:4] + y[:, :, 0:4, 1:5]          # AdaptiveAvgPool2d((4,4))
                + y[:, :, 1:5, 0:4] + y[:, :, 1:5, 1:5])
    v = y.reshape(y.shape[0], -1)
    v = jax.nn.relu(v @ params["fc1_w"].T + params["fc1_b"])
    v = jax.nn.relu(v @ params["fc2_w"].T + params["fc2_b"])
    return v @ params["fc3_w"].T + params["fc3_b"]


if __name__ == "__main__":
    key = jax.random.PRNGKey(0)
    pkey, xkey = jax.random.split(key)
    params = init_params(pkey)
    prep = prepare_params(params)

    x = jax.random.normal(xkey, (2, 3, 32, 32), dtype=jnp.float32)

    out = jax.block_until_ready(net_forward(prep, x))
    assert out.shape == (2, NUM_CLASSES)

    ref = jax.block_until_ready(reference_forward(params, x))
    err = float(jnp.max(jnp.abs(out - ref)))
    assert err < 2e-2, f"mismatch vs reference: max |diff| = {err}"

    print("KERNEL_OK")
</pallas_src>

<mosaic_0001>
module attributes {stable_mosaic.version = 11 : i64} {
  func.func @_conv_relu_pool_kernel(%arg0: i32, %arg1: memref<392x75xf32, #tpu.memory_space<vmem>>, %arg2: memref<392x75xf32, #tpu.memory_space<vmem>>, %arg3: memref<392x75xf32, #tpu.memory_space<vmem>>, %arg4: memref<392x75xf32, #tpu.memory_space<vmem>>, %arg5: memref<75x128xf32, #tpu.memory_space<vmem>>, %arg6: memref<1x128xf32, #tpu.memory_space<vmem>>, %arg7: memref<392x128xf32, #tpu.memory_space<vmem>>) attributes {dimension_semantics = [#tpu.dimension_semantics<parallel>], iteration_bounds = array<i64: 1>, scalar_prefetch = 0 : i64, scratch_operands = 0 : i64, tpu.core_type = #tpu.core_type<tc>, window_params = [{transform_indices = @transform_0, window_bounds = array<i64: 392, 75>}, {transform_indices = @transform_1, window_bounds = array<i64: 392, 75>}, {transform_indices = @transform_2, window_bounds = array<i64: 392, 75>}, {transform_indices = @transform_3, window_bounds = array<i64: 392, 75>}, {pipeline_mode = #tpu.pipeline_mode<synchronous>, transform_indices = @transform_4, window_bounds = array<i64: 75, 128>}, {pipeline_mode = #tpu.pipeline_mode<synchronous>, transform_indices = @transform_5, window_bounds = array<i64: 1, 128>}, {transform_indices = @transform_6, window_bounds = array<i64: 392, 128>}]} {
    %c0 = arith.constant 0 : index
    %c0_0 = arith.constant 0 : index
    %0 = vector.load %arg5[%c0, %c0_0] : memref<75x128xf32, #tpu.memory_space<vmem>>, vector<75x128xf32>
    %c0_1 = arith.constant 0 : index
    %c0_2 = arith.constant 0 : index
    %1 = vector.load %arg1[%c0_1, %c0_2] : memref<392x75xf32, #tpu.memory_space<vmem>>, vector<392x75xf32>
    %cst = arith.constant dense<0.000000e+00> : vector<392x128xf32>
    %2 = tpu.matmul %1, %0, %cst {dimension_numbers = #tpu.dot_dimension_numbers<[1], [0], [0], [1], [0, 0, 1, 1], [], []>} : vector<392x75xf32>, vector<75x128xf32>, vector<392x128xf32> -> vector<392x128xf32>
    %c0_3 = arith.constant 0 : index
    %c0_4 = arith.constant 0 : index
    %3 = vector.load %arg2[%c0_3, %c0_4] : memref<392x75xf32, #tpu.memory_space<vmem>>, vector<392x75xf32>
    %cst_5 = arith.constant dense<0.000000e+00> : vector<392x128xf32>
    %4 = tpu.matmul %3, %0, %cst_5 {dimension_numbers = #tpu.dot_dimension_numbers<[1], [0], [0], [1], [0, 0, 1, 1], [], []>} : vector<392x75xf32>, vector<75x128xf32>, vector<392x128xf32> -> vector<392x128xf32>
    %5 = arith.maximumf %2, %4 : vector<392x128xf32>
    %c0_6 = arith.constant 0 : index
    %c0_7 = arith.constant 0 : index
    %6 = vector.load %arg3[%c0_6, %c0_7] : memref<392x75xf32, #tpu.memory_space<vmem>>, vector<392x75xf32>
    %cst_8 = arith.constant dense<0.000000e+00> : vector<392x128xf32>
    %7 = tpu.matmul %6, %0, %cst_8 {dimension_numbers = #tpu.dot_dimension_numbers<[1], [0], [0], [1], [0, 0, 1, 1], [], []>} : vector<392x75xf32>, vector<75x128xf32>, vector<392x128xf32> -> vector<392x128xf32>
    %8 = arith.maximumf %5, %7 : vector<392x128xf32>
    %c0_9 = arith.constant 0 : index
    %c0_10 = arith.constant 0 : index
    %9 = vector.load %arg4[%c0_9, %c0_10] : memref<392x75xf32, #tpu.memory_space<vmem>>, vector<392x75xf32>
    %cst_11 = arith.constant dense<0.000000e+00> : vector<392x128xf32>
    %10 = tpu.matmul %9, %0, %cst_11 {dimension_numbers = #tpu.dot_dimension_numbers<[1], [0], [0], [1], [0, 0, 1, 1], [], []>} : vector<392x75xf32>, vector<75x128xf32>, vector<392x128xf32> -> vector<392x128xf32>
    %11 = arith.maximumf %8, %10 : vector<392x128xf32>
    %c0_12 = arith.constant 0 : index
    %c0_13 = arith.constant 0 : index
    %12 = vector.load %arg6[%c0_12, %c0_13] : memref<1x128xf32, #tpu.memory_space<vmem>>, vector<1x128xf32>
    %13 = vector.broadcast %12 : vector<1x128xf32> to vector<392x128xf32>
    %14 = arith.addf %11, %13 : vector<392x128xf32>
    %cst_14 = arith.constant 0.000000e+00 : f32
    %15 = vector.broadcast %cst_14 : f32 to vector<392x128xf32>
    %16 = arith.maximumf %14, %15 : vector<392x128xf32>
    %c0_15 = arith.constant 0 : index
    %c0_16 = arith.constant 0 : index
    %17 = vector.load %arg7[%c0_15, %c0_16] : memref<392x128xf32, #tpu.memory_space<vmem>>, vector<392x128xf32>
    tpu.vector_store %arg7[%c0_15, %c0_16], %16 {strides = array<i32>} : memref<392x128xf32, #tpu.memory_space<vmem>>, vector<392x128xf32>,
    return
  }
  func.func @transform_0(%arg0: i32) -> (i32, i32) {
    %c0_i32 = arith.constant 0 : i32
    %c0_i32_0 = arith.constant 0 : i32
    return %arg0, %c0_i32 : i32, i32
  }
  func.func @transform_1(%arg0: i32) -> (i32, i32) {
    %c0_i32 = arith.constant 0 : i32
    %c0_i32_0 = arith.constant 0 : i32
    return %arg0, %c0_i32 : i32, i32
  }
  func.func @transform_2(%arg0: i32) -> (i32, i32) {
    %c0_i32 = arith.constant 0 : i32
    %c0_i32_0 = arith.constant 0 : i32
    return %arg0, %c0_i32 : i32, i32
  }
  func.func @transform_3(%arg0: i32) -> (i32, i32) {
    %c0_i32 = arith.constant 0 : i32
    %c0_i32_0 = arith.constant 0 : i32
    return %arg0, %c0_i32 : i32, i32
  }
  func.func @transform_4(%arg0: i32) -> (i32, i32) {
    %c0_i32 = arith.constant 0 : i32
    %c0_i32_0 = arith.constant 0 : i32
    %c0_i32_1 = arith.constant 0 : i32
    return %c0_i32, %c0_i32_0 : i32, i32
  }
  func.func @transform_5(%arg0: i32) -> (i32, i32) {
    %c0_i32 = arith.constant 0 : i32
    %c0_i32_0 = arith.constant 0 : i32
    %c0_i32_1 = arith.constant 0 : i32
    return %c0_i32, %c0_i32_0 : i32, i32
  }
  func.func @transform_6(%arg0: i32) -> (i32, i32) {
    %c0_i32 = arith.constant 0 : i32
    %c0_i32_0 = arith.constant 0 : i32
    return %arg0, %c0_i32 : i32, i32
  }
}

module attributes {stable_mosaic.version = 11 : i64} {
  func.func @_conv_relu_pool_kernel(%arg0: i32, %arg1: memref<56x150xf32, #tpu.memory_space<vmem>>, %arg2: memref<56x150xf32, #tpu.memory_space<vmem>>, %arg3: memref<56x150xf32, #tpu.memory_space<vmem>>, %arg4: memref<56x150xf32, #tpu.memory_space<vmem>>, %arg5: memref<150x128xf32, #tpu.memory_space<vmem>>, %arg6: memref<1x128xf32, #tpu.memory_space<vmem>>, %arg7: memref<56x128xf32, #tpu.memory_space<vmem>>) attributes {dimension_semantics = [#tpu.dimension_semantics<parallel>], iteration_bounds = array<i64: 1>, scalar_prefetch = 0 : i64, scratch_operands = 0 : i64, tpu.core_type = #tpu.core_type<tc>, window_params = [{transform_indices = @transform_0, window_bounds = array<i64: 56, 150>}, {transform_indices = @transform_1, window_bounds = array<i64: 56, 150>}, {transform_indices = @transform_2, window_bounds = array<i64: 56, 150>}, {transform_indices = @transform_3, window_bounds = array<i64: 56, 150>}, {pipeline_mode = #tpu.pipeline_mode<synchronous>, transform_indices = @transform_4, window_bounds = array<i64: 150, 128>}, {pipeline_mode = #tpu.pipeline_mode<synchronous>, transform_indices = @transform_5, window_bounds = array<i64: 1, 128>}, {transform_indices = @transform_6, window_bounds = array<i64: 56, 128>}]} {
    %c0 = arith.constant 0 : index
    %c0_0 = arith.constant 0 : index
    %0 = vector.load %arg5[%c0, %c0_0] : memref<150x128xf32, #tpu.memory_space<vmem>>, vector<150x128xf32>
    %c0_1 = arith.constant 0 : index
    %c0_2 = arith.constant 0 : index
    %1 = vector.load %arg1[%c0_1, %c0_2] : memref<56x150xf32, #tpu.memory_space<vmem>>, vector<56x150xf32>
    %cst = arith.constant dense<0.000000e+00> : vector<56x128xf32>
    %2 = tpu.matmul %1, %0, %cst {dimension_numbers = #tpu.dot_dimension_numbers<[1], [0], [0], [1], [0, 0, 1, 1], [], []>} : vector<56x150xf32>, vector<150x128xf32>, vector<56x128xf32> -> vector<56x128xf32>
    %c0_3 = arith.constant 0 : index
    %c0_4 = arith.constant 0 : index
    %3 = vector.load %arg2[%c0_3, %c0_4] : memref<56x150xf32, #tpu.memory_space<vmem>>, vector<56x150xf32>
    %cst_5 = arith.constant dense<0.000000e+00> : vector<56x128xf32>
    %4 = tpu.matmul %3, %0, %cst_5 {dimension_numbers = #tpu.dot_dimension_numbers<[1], [0], [0], [1], [0, 0, 1, 1], [], []>} : vector<56x150xf32>, vector<150x128xf32>, vector<56x128xf32> -> vector<56x128xf32>
    %5 = arith.maximumf %2, %4 : vector<56x128xf32>
    %c0_6 = arith.constant 0 : index
    %c0_7 = arith.constant 0 : index
    %6 = vector.load %arg3[%c0_6, %c0_7] : memref<56x150xf32, #tpu.memory_space<vmem>>, vector<56x150xf32>
    %cst_8 = arith.constant dense<0.000000e+00> : vector<56x128xf32>
    %7 = tpu.matmul %6, %0, %cst_8 {dimension_numbers = #tpu.dot_dimension_numbers<[1], [0], [0], [1], [0, 0, 1, 1], [], []>} : vector<56x150xf32>, vector<150x128xf32>, vector<56x128xf32> -> vector<56x128xf32>
    %8 = arith.maximumf %5, %7 : vector<56x128xf32>
    %c0_9 = arith.constant 0 : index
    %c0_10 = arith.constant 0 : index
    %9 = vector.load %arg4[%c0_9, %c0_10] : memref<56x150xf32, #tpu.memory_space<vmem>>, vector<56x150xf32>
    %cst_11 = arith.constant dense<0.000000e+00> : vector<56x128xf32>
    %10 = tpu.matmul %9, %0, %cst_11 {dimension_numbers = #tpu.dot_dimension_numbers<[1], [0], [0], [1], [0, 0, 1, 1], [], []>} : vector<56x150xf32>, vector<150x128xf32>, vector<56x128xf32> -> vector<56x128xf32>
    %11 = arith.maximumf %8, %10 : vector<56x128xf32>
    %c0_12 = arith.constant 0 : index
    %c0_13 = arith.constant 0 : index
    %12 = vector.load %arg6[%c0_12, %c0_13] : memref<1x128xf32, #tpu.memory_space<vmem>>, vector<1x128xf32>
    %13 = vector.broadcast %12 : vector<1x128xf32> to vector<56x128xf32>
    %14 = arith.addf %11, %13 : vector<56x128xf32>
    %cst_14 = arith.constant 0.000000e+00 : f32
    %15 = vector.broadcast %cst_14 : f32 to vector<56x128xf32>
    %16 = arith.maximumf %14, %15 : vector<56x128xf32>
    %c0_15 = arith.constant 0 : index
    %c0_16 = arith.constant 0 : index
    %17 = vector.load %arg7[%c0_15, %c0_16] : memref<56x128xf32, #tpu.memory_space<vmem>>, vector<56x128xf32>
    tpu.vector_store %arg7[%c0_15, %c0_16], %16 {strides = array<i32>} : memref<56x128xf32, #tpu.memory_space<vmem>>, vector<56x128xf32>,
    return
  }
  func.func @transform_0(%arg0: i32) -> (i32, i32) {
    %c0_i32 = arith.constant 0 : i32
    %c0_i32_0 = arith.constant 0 : i32
    return %arg0, %c0_i32 : i32, i32
  }
  func.func @transform_1(%arg0: i32) -> (i32, i32) {
    %c0_i32 = arith.constant 0 : i32
    %c0_i32_0 = arith.constant 0 : i32
    return %arg0, %c0_i32 : i32, i32
  }
  func.func @transform_2(%arg0: i32) -> (i32, i32) {
    %c0_i32 = arith.constant 0 : i32
    %c0_i32_0 = arith.constant 0 : i32
    return %arg0, %c0_i32 : i32, i32
  }
  func.func @transform_3(%arg0: i32) -> (i32, i32) {
    %c0_i32 = arith.constant 0 : i32
    %c0_i32_0 = arith.constant 0 : i32
    return %arg0, %c0_i32 : i32, i32
  }
  func.func @transform_4(%arg0: i32) -> (i32, i32) {
    %c0_i32 = arith.constant 0 : i32
    %c0_i32_0 = arith.constant 0 : i32
    %c0_i32_1 = arith.constant 0 : i32
    return %c0_i32, %c0_i32_0 : i32, i32
  }
  func.func @transform_5(%arg0: i32) -> (i32, i32) {
    %c0_i32 = arith.constant 0 : i32
    %c0_i32_0 = arith.constant 0 : i32
    %c0_i32_1 = arith.constant 0 : i32
    return %c0_i32, %c0_i32_0 : i32, i32
  }
  func.func @transform_6(%arg0: i32) -> (i32, i32) {
    %c0_i32 = arith.constant 0 : i32
    %c0_i32_0 = arith.constant 0 : i32
    return %arg0, %c0_i32 : i32, i32
  }
}

module attributes {stable_mosaic.version = 11 : i64} {
  func.func @_fc_stack_kernel(%arg0: i32, %arg1: memref<8x3200xf32, #tpu.memory_space<vmem>>, %arg2: memref<3200x128xf32, #tpu.memory_space<vmem>>, %arg3: memref<1x128xf32, #tpu.memory_space<vmem>>, %arg4: memref<128x128xf32, #tpu.memory_space<vmem>>, %arg5: memref<1x128xf32, #tpu.memory_space<vmem>>, %arg6: memref<128x128xf32, #tpu.memory_space<vmem>>, %arg7: memref<1x128xf32, #tpu.memory_space<vmem>>, %arg8: memref<8x128xf32, #tpu.memory_space<vmem>>) attributes {dimension_semantics = [#tpu.dimension_semantics<parallel>], iteration_bounds = array<i64: 1>, scalar_prefetch = 0 : i64, scratch_operands = 0 : i64, tpu.core_type = #tpu.core_type<tc>, window_params = [{transform_indices = @transform_0, window_bounds = array<i64: 8, 3200>}, {pipeline_mode = #tpu.pipeline_mode<synchronous>, transform_indices = @transform_1, window_bounds = array<i64: 3200, 128>}, {pipeline_mode = #tpu.pipeline_mode<synchronous>, transform_indices = @transform_2, window_bounds = array<i64: 1, 128>}, {pipeline_mode = #tpu.pipeline_mode<synchronous>, transform_indices = @transform_3, window_bounds = array<i64: 128, 128>}, {pipeline_mode = #tpu.pipeline_mode<synchronous>, transform_indices = @transform_4, window_bounds = array<i64: 1, 128>}, {pipeline_mode = #tpu.pipeline_mode<synchronous>, transform_indices = @transform_5, window_bounds = array<i64: 128, 128>}, {pipeline_mode = #tpu.pipeline_mode<synchronous>, transform_indices = @transform_6, window_bounds = array<i64: 1, 128>}, {transform_indices = @transform_7, window_bounds = array<i64: 8, 128>}]} {
    %c0 = arith.constant 0 : index
    %c0_0 = arith.constant 0 : index
    %0 = vector.load %arg1[%c0, %c0_0] : memref<8x3200xf32, #tpu.memory_space<vmem>>, vector<8x3200xf32>
    %c0_1 = arith.constant 0 : index
    %c0_2 = arith.constant 0 : index
    %1 = vector.load %arg2[%c0_1, %c0_2] : memref<3200x128xf32, #tpu.memory_space<vmem>>, vector<3200x128xf32>
    %cst = arith.constant dense<0.000000e+00> : vector<8x128xf32>
    %2 = tpu.matmul %0, %1, %cst {dimension_numbers = #tpu.dot_dimension_numbers<[1], [0], [0], [1], [0, 0, 1, 1], [], []>} : vector<8x3200xf32>, vector<3200x128xf32>, vector<8x128xf32> -> vector<8x128xf32>
    %c0_3 = arith.constant 0 : index
    %c0_4 = arith.constant 0 : index
    %3 = vector.load %arg3[%c0_3, %c0_4] : memref<1x128xf32, #tpu.memory_space<vmem>>, vector<1x128xf32>
    %4 = vector.broadcast %3 : vector<1x128xf32> to vector<8x128xf32>
    %5 = arith.addf %2, %4 : vector<8x128xf32>
    %cst_5 = arith.constant 0.000000e+00 : f32
    %6 = vector.broadcast %cst_5 : f32 to vector<8x128xf32>
    %7 = arith.maximumf %5, %6 : vector<8x128xf32>
    %c0_6 = arith.constant 0 : index
    %c0_7 = arith.constant 0 : index
    %8 = vector.load %arg4[%c0_6, %c0_7] : memref<128x128xf32, #tpu.memory_space<vmem>>, vector<128x128xf32>
    %cst_8 = arith.constant dense<0.000000e+00> : vector<8x128xf32>
    %9 = tpu.matmul %7, %8, %cst_8 {dimension_numbers = #tpu.dot_dimension_numbers<[1], [0], [0], [1], [0, 0, 1, 1], [], []>} : vector<8x128xf32>, vector<128x128xf32>, vector<8x128xf32> -> vector<8x128xf32>
    %c0_9 = arith.constant 0 : index
    %c0_10 = arith.constant 0 : index
    %10 = vector.load %arg5[%c0_9, %c0_10] : memref<1x128xf32, #tpu.memory_space<vmem>>, vector<1x128xf32>
    %11 = vector.broadcast %10 : vector<1x128xf32> to vector<8x128xf32>
    %12 = arith.addf %9, %11 : vector<8x128xf32>
    %cst_11 = arith.constant 0.000000e+00 : f32
    %13 = vector.broadcast %cst_11 : f32 to vector<8x128xf32>
    %14 = arith.maximumf %12, %13 : vector<8x128xf32>
    %c0_12 = arith.constant 0 : index
    %c0_13 = arith.constant 0 : index
    %15 = vector.load %arg6[%c0_12, %c0_13] : memref<128x128xf32, #tpu.memory_space<vmem>>, vector<128x128xf32>
    %cst_14 = arith.constant dense<0.000000e+00> : vector<8x128xf32>
    %16 = tpu.matmul %14, %15, %cst_14 {dimension_numbers = #tpu.dot_dimension_numbers<[1], [0], [0], [1], [0, 0, 1, 1], [], []>} : vector<8x128xf32>, vector<128x128xf32>, vector<8x128xf32> -> vector<8x128xf32>
    %c0_15 = arith.constant 0 : index
    %c0_16 = arith.constant 0 : index
    %17 = vector.load %arg7[%c0_15, %c0_16] : memref<1x128xf32, #tpu.memory_space<vmem>>, vector<1x128xf32>
    %18 = vector.broadcast %17 : vector<1x128xf32> to vector<8x128xf32>
    %19 = arith.addf %16, %18 : vector<8x128xf32>
    %c0_17 = arith.constant 0 : index
    %c0_18 = arith.constant 0 : index
    %20 = vector.load %arg8[%c0_17, %c0_18] : memref<8x128xf32, #tpu.memory_space<vmem>>, vector<8x128xf32>
    tpu.vector_store %arg8[%c0_17, %c0_18], %19 {strides = array<i32>} : memref<8x128xf32, #tpu.memory_space<vmem>>, vector<8x128xf32>,
    return
  }
  func.func @transform_0(%arg0: i32) -> (i32, i32) {
    %c0_i32 = arith.constant 0 : i32
    %c0_i32_0 = arith.constant 0 : i32
    return %arg0, %c0_i32 : i32, i32
  }
  func.func @transform_1(%arg0: i32) -> (i32, i32) {
    %c0_i32 = arith.constant 0 : i32
    %c0_i32_0 = arith.constant 0 : i32
    %c0_i32_1 = arith.constant 0 : i32
    return %c0_i32, %c0_i32_0 : i32, i32
  }
  func.func @transform_2(%arg0: i32) -> (i32, i32) {
    %c0_i32 = arith.constant 0 : i32
    %c0_i32_0 = arith.constant 0 : i32
    %c0_i32_1 = arith.constant 0 : i32
    return %c0_i32, %c0_i32_0 : i32, i32
  }
  func.func @transform_3(%arg0: i32) -> (i32, i32) {
    %c0_i32 = arith.constant 0 : i32
    %c0_i32_0 = arith.constant 0 : i32
    %c0_i32_1 = arith.constant 0 : i32
    return %c0_i32, %c0_i32_0 : i32, i32
  }
  func.func @transform_4(%arg0: i32) -> (i32, i32) {
    %c0_i32 = arith.constant 0 : i32
    %c0_i32_0 = arith.constant 0 : i32
    %c0_i32_1 = arith.constant 0 : i32
    return %c0_i32, %c0_i32_0 : i32, i32
  }
  func.func @transform_5(%arg0: i32) -> (i32, i32) {
    %c0_i32 = arith.constant 0 : i32
    %c0_i32_0 = arith.constant 0 : i32
    %c0_i32_1 = arith.constant 0 : i32
    return %c0_i32, %c0_i32_0 : i32, i32
  }
  func.func @transform_6(%arg0: i32) -> (i32, i32) {
    %c0_i32 = arith.constant 0 : i32
    %c0_i32_0 = arith.constant 0 : i32
    %c0_i32_1 = arith.constant 0 : i32
    return %c0_i32, %c0_i32_0 : i32, i32
  }
  func.func @transform_7(%arg0: i32) -> (i32, i32) {
    %c0_i32 = arith.constant 0 : i32
    %c0_i32_0 = arith.constant 0 : i32
    return %arg0, %c0_i32 : i32, i32
  }
}

</mosaic_0001>

<bundles_post_ra>
// kernel: net_forward.3
= control target key start
LH: loop header
LB: loop body
LE: loop exit
PB: predicated region body
PF: predicated region fallthrough
CT: control target
= control target key end

     0   :  { %v3540_v0 = vmov 0.0|0.0   ;;  %vm3541_vm0 = vmmov 0   ;;  %v3542_v6 = vmov 0.0   ;;  %vm230_vm1 = vcmask 1042432   ;;  %s5459_s4 = inlined_call_operand.vmem [shape: f32[75,128], index: 4, kind: input, shape index: {}]   ;;  %s5460_s0 = inlined_call_operand.vmem [shape: f32[392,75], index: 0, kind: input, shape index: {}]   ;;  %s5461_s1 = inlined_call_operand.vmem [shape: f32[392,75], index: 1, kind: input, shape index: {}]   ;;  %s5462_s2 = inlined_call_operand.vmem [shape: f32[392,75], index: 2, kind: input, shape index: {}]   ;;  %s5463_s3 = inlined_call_operand.vmem [shape: f32[392,75], index: 3, kind: input, shape index: {}]   ;;  %s5464_s5 = inlined_call_operand.vmem [shape: f32[1,128], index: 5, kind: input, shape index: {}]   ;;  %s5465_s6 = inlined_call_operand.vmem [shape: f32[392,128], index: 6, kind: output, shape index: {}]  }
   0x1   :  { %3472 = vmatprep.subr.bf16.mxu0 %v3540_v0  ;;  %v23_v1 = vld [vmem:[%s5459_s4] sm:$0xff]  ;;  %v24_v2 = vld [vmem:[%s5459_s4 + $0x8] sm:$0xff]  ;;  %3488 = vmatprep.subr.bf16.mxu1 %v3540_v0  ;;  %v25_v3 = vld [vmem:[%s5459_s4 + $0x10] sm:$0xff]  ;;  %vm3543_vm2 = vmmov 1   ;;  %vm82_vm4 = vcmask 613376  }
   0x2   :  { %v3473_v4 = vpack.c.bf16 %v24_v2, %v23_v1  ;;  %v26_v5 = vld [vmem:[%s5459_s4 + $0x18] sm:$0xff]  ;;  %2824 = vmatprep.mubr.msk.f32.mxu0 %vm3541_vm0, %v3542_v6  ;;  %2991 = vmatprep.mubr.msk.f32.mxu1 %vm3541_vm0, %v3542_v6  ;;  %v27_v8 = vld [vmem:[%s5459_s4 + $0x20] sm:$0xff]  ;;  %v28_v9 = vld [vmem:[%s5459_s4 + $0x28] sm:$0xff] }
   0x3   :  { %v3476_v7 = vpack.c.bf16 %v26_v5, %v25_v3  ;;  %v3479_v10 = vpack.c.bf16 %v28_v9, %v27_v8  ;;  %v29_v11 = vld [vmem:[%s5459_s4 + $0x30] sm:$0xff]  ;;  %v30_v12 = vld [vmem:[%s5459_s4 + $0x38] sm:$0xff]  ;;  %v31_v14 = vld [vmem:[%s5459_s4 + $0x40] sm:$0xff] }
   0x4   :  { %3474 = vmatpush3.bf16.msra.mxu0 %v3473_v4  ;;  %3490 = vmatpush3.bf16.msra.mxu1 %v3473_v4  ;;  %v3482_v13 = vpack.c.bf16 %v30_v12, %v29_v11  ;;  %v32_v15 = vld [vmem:[%s5459_s4 + $0x48] sm:$0x7]  ;;  %vm3622_vm3 = vmpackc.low %vm230_vm1, %vm3543_vm2  ;;  %v33_v18 = vld [vmem:[%s5460_s0] sm:$0xff] }
   0x5   :  { %3475 = vmatprep.subr.bf16.mxu0 %v3540_v0  ;;  %3491 = vmatprep.subr.bf16.mxu1 %v3540_v0  ;;  %v3485_v16 = vpack.c.bf16 %v32_v15, %v31_v14  ;;  %v544_v19 = vld [vmem:[%s5461_s1] sm:$0xff]  ;;  %v34_v20 = vld [vmem:[%s5460_s0 + $0x8] sm:$0xff]  ;;  %v35_v22 = vld [vmem:[%s5460_s0 + $0x10] sm:$0xff] }
   0x6   :  { %v545_v21 = vld [vmem:[%s5461_s1 + $0x8] sm:$0xff]  ;;  %v546_v23 = vld [vmem:[%s5461_s1 + $0x10] sm:$0xff]  ;;  %v36_v24 = vld [vmem:[%s5460_s0 + $0x18] sm:$0xff] }
   0x7   :  { %v547_v25 = vld [vmem:[%s5461_s1 + $0x18] sm:$0xff]  ;;  %v37_v26 = vld [vmem:[%s5460_s0 + $0x20] sm:$0xff]  ;;  %v38_v28 = vld [vmem:[%s5460_s0 + $0x28] sm:$0xff] }
   0x8   :  { %3477 = vmatpush3.bf16.msra.mxu0 %v3476_v7  ;;  %3493 = vmatpush3.bf16.msra.mxu1 %v3476_v7  ;;  %v548_v27 = vld [vmem:[%s5461_s1 + $0x20] sm:$0xff]  ;;  %v549_v29 = vld [vmem:[%s5461_s1 + $0x28] sm:$0xff]  ;;  %v39_v30 = vld [vmem:[%s5460_s0 + $0x30] sm:$0xff] }
   0x9   :  { %3478 = vmatprep.subr.bf16.mxu0 %v3540_v0  ;;  %3494 = vmatprep.subr.bf16.mxu1 %v3540_v0  ;;  %v550_v31 = vld [vmem:[%s5461_s1 + $0x30] sm:$0xff]  ;;  %v40_v32 = vld [vmem:[%s5460_s0 + $0x38] sm:$0xff]  ;;  %v41_v34 = vld [vmem:[%s5460_s0 + $0x40] sm:$0xff] }
   0xa   :  { %v551_v33 = vld [vmem:[%s5461_s1 + $0x38] sm:$0xff]  ;;  %v552_v35 = vld [vmem:[%s5461_s1 + $0x40] sm:$0xff]  ;;  %v42_v36 = vld [vmem:[%s5460_s0 + $0x48] sm:$0xff] }
   0xb   :  { %v553_v37 = vld [vmem:[%s5461_s1 + $0x48] sm:$0xff]  ;;  %v43_v38 = vld [vmem:[%s5460_s0 + $0x50] sm:$0xff]  ;;  %v44_v40 = vld [vmem:[%s5460_s0 + $0x58] sm:$0xff] }
   0xc   :  { %3480 = vmatpush3.bf16.msra.mxu0 %v3479_v10  ;;  %3496 = vmatpush3.bf16.msra.mxu1 %v3479_v10  ;;  %v554_v39 = vld [vmem:[%s5461_s1 + $0x50] sm:$0xff]  ;;  %v555_v41 = vld [vmem:[%s5461_s1 + $0x58] sm:$0xff]  ;;  %v45_v42 = vld [vmem:[%s5460_s0 + $0x60] sm:$0xff] }
   0xd   :  { %3481 = vmatprep.subr.bf16.mxu0 %v3540_v0  ;;  %3497 = vmatprep.subr.bf16.mxu1 %v3540_v0  ;;  %v556_v43 = vld [vmem:[%s5461_s1 + $0x60] sm:$0xff]  ;;  %v46_v44 = vld [vmem:[%s5460_s0 + $0x68] sm:$0xff]  ;;  %v47_v46 = vld [vmem:[%s5460_s0 + $0x70] sm:$0xff] }
   0xe   :  { %v557_v45 = vld [vmem:[%s5461_s1 + $0x68] sm:$0xff]  ;;  %v558_v47 = vld [vmem:[%s5461_s1 + $0x70] sm:$0xff]  ;;  %v48_v48 = vld [vmem:[%s5460_s0 + $0x78] sm:$0xff] }
   0xf   :  { %v559_v49 = vld [vmem:[%s5461_s1 + $0x78] sm:$0xff]  ;;  %v49_v50 = vld [vmem:[%s5460_s0 + $0x80] sm:$0xff]  ;;  %v50_v52 = vld [vmem:[%s5460_s0 + $0x88] sm:$0xff] }
  0x10   :  { %3483 = vmatpush3.bf16.msra.mxu0 %v3482_v13  ;;  %3499 = vmatpush3.bf16.msra.mxu1 %v3482_v13  ;;  %v560_v51 = vld [vmem:[%s5461_s1 + $0x80] sm:$0xff]  ;;  %v561_v53 = vld [vmem:[%s5461_s1 + $0x88] sm:$0xff]  ;;  %v51_v54 = vld [vmem:[%s5460_s0 + $0x90] sm:$0xff] }
  0x11   :  { %3484 = vmatprep.subr.bf16.mxu0 %v3540_v0  ;;  %3500 = vmatprep.subr.bf16.mxu1 %v3540_v0  ;;  %v562_v55 = vld [vmem:[%s5461_s1 + $0x90] sm:$0xff]  ;;  %v52_v56 = vld [vmem:[%s5460_s0 + $0x98] sm:$0xff]  ;;  %v53_v58 = vld [vmem:[%s5460_s0 + $0xa0] sm:$0xff] }
  0x12   :  { %v563_v57 = vld [vmem:[%s5461_s1 + $0x98] sm:$0xff]  ;;  %v564_v59 = vld [vmem:[%s5461_s1 + $0xa0] sm:$0xff]  ;;  %v54_v60 = vld [vmem:[%s5460_s0 + $0xa8] sm:$0xff] }
  0x13   :  { %v565_v61 = vld [vmem:[%s5461_s1 + $0xa8] sm:$0xff]  ;;  %v55_v62 = vld [vmem:[%s5460_s0 + $0xb0] sm:$0xff]  ;;  %v567_v1 = vld [vmem:[%s5461_s1 + $0xb8] sm:$0xff] }
  0x14   :  { %3487 = vmatpush3.bf16.msk.msra.mxu0 %vm3622_vm3, %v3485_v16  ;;  %3503 = vmatpush3.bf16.msk.msra.mxu1 %vm3622_vm3, %v3485_v16  ;;  %v566_v63 = vld [vmem:[%s5461_s1 + $0xb0] sm:$0xff]  ;;  %v57_v2 = vld [vmem:[%s5460_s0 + $0xc0] sm:$0xff]  ;;  %v569_v5 = vld [vmem:[%s5461_s1 + $0xc8] sm:$0xff] }
  0x15   :  { %3504 = vmatprep.subr.bf16.mxu0 %v3540_v0  ;;  %3520 = vmatprep.subr.bf16.mxu1 %v3540_v0  ;;  %v568_v3 = vld [vmem:[%s5461_s1 + $0xc0] sm:$0xff]  ;;  %v570_v8 = vld [vmem:[%s5461_s1 + $0xd0] sm:$0xff]  ;;  %v60_v9 = vld [vmem:[%s5460_s0 + $0xd8] sm:$0xff] }
  0x16   :  { %v61_v11 = vld [vmem:[%s5460_s0 + $0xe0] sm:$0xff]  ;;  %v573_v14 = vld [vmem:[%s5461_s1 + $0xe8] sm:$0xff]  ;;  %v63_v15 = vld [vmem:[%s5460_s0 + $0xf0] sm:$0xff] }
  0x17   :  { %2825 = vmatmul.mubr.msk.f32.vlgmr.msra.gmra.mrb[0].mxu0 %vm82_vm4, %v33_v18  ;;  %2992 = vmatmul.mubr.msk.f32.vlgmr.msra.gmra.mrb[0].mxu1 %vm82_vm4, %v544_v19  ;;  %v572_v12 = vld [vmem:[%s5461_s1 + $0xe0] sm:$0xff]  ;;  %v64_v17 = vld [vmem:[%s5460_s0 + $0xf8] sm:$0xff] }
  0x18   :  { %3506 = vmatpush3.bf16.msra.mxu0 %v3473_v4  ;;  %2827 = vmatprep.mubr.msk.f32.mxu0 %vm3541_vm0, %v3542_v6  ;;  %v575_v18 = vld [vmem:[%s5461_s1 + $0xf8] sm:$0xff]  ;;  %v65_v19 = vld [vmem:[%s5460_s0 + $0x100] sm:$0xff] }
  0x19   :  { %3522 = vmatpush3.bf16.msra.mxu1 %v3473_v4  ;;  %2994 = vmatprep.mubr.msk.f32.mxu1 %vm3541_vm0, %v3542_v6  ;;  %v58_v4 = vld [vmem:[%s5460_s0 + $0xc8] sm:$0xff] }
  0x1a   :  { %3507 = vmatprep.subr.bf16.mxu0 %v3540_v0  ;;  %3523 = vmatprep.subr.bf16.mxu1 %v3540_v0 }
  0x1b   :  { %2828 = vmatmul.mubr.msk.f32.gmra.mrb[2].mxu0 %vm82_vm4, %v34_v20  ;;  %2995 = vmatmul.mubr.msk.f32.gmra.mrb[2].mxu1 %vm82_vm4, %v545_v21  ;;  %v576_v20 = vld [vmem:[%s5461_s1 + $0x100] sm:$0xff]  ;;  %v66_v21 = vld [vmem:[%s5460_s0 + $0x108] sm:$0xff] }
  0x1c   :  { %2830 = vmatprep.mubr.msk.f32.mxu0 %vm3541_vm0, %v3542_v6  ;;  %2997 = vmatprep.mubr.msk.f32.mxu1 %vm3541_vm0, %v3542_v6 }
  0x1d   :  { %3509 = vmatpush3.bf16.msra.mxu0 %v3476_v7  ;;  %3525 = vmatpush3.bf16.msra.mxu1 %v3476_v7  ;;  %v59_v7 = vld [vmem:[%s5460_s0 + $0xd0] sm:$0xff] }
  0x1e   :  { %3510 = vmatprep.subr.bf16.mxu0 %v3540_v0  ;;  %3526 = vmatprep.subr.bf16.mxu1 %v3540_v0 }
  0x1f   :  { %2831 = vmatmul.mubr.msk.f32.gmra.mrb[4].mxu0 %vm82_vm4, %v35_v22  ;;  %2998 = vmatmul.mubr.msk.f32.gmra.mrb[4].mxu1 %vm82_vm4, %v546_v23  ;;  %v577_v22 = vld [vmem:[%s5461_s1 + $0x108] sm:$0xff]  ;;  %v67_v23 = vld [vmem:[%s5460_s0 + $0x110] sm:$0xff] }
  0x20   :  { %2833 = vmatprep.mubr.msk.f32.mxu0 %vm3541_vm0, %v3542_v6  ;;  %3000 = vmatprep.mubr.msk.f32.mxu1 %vm3541_vm0, %v3542_v6 }
  0x21   :  { %3512 = vmatpush3.bf16.msra.mxu0 %v3479_v10  ;;  %3528 = vmatpush3.bf16.msra.mxu1 %v3479_v10  ;;  %v571_v10 = vld [vmem:[%s5461_s1 + $0xd8] sm:$0xff] }
  0x22   :  { %3513 = vmatprep.subr.bf16.mxu0 %v3540_v0  ;;  %3529 = vmatprep.subr.bf16.mxu1 %v3540_v0 }
  0x23   :  { %2834 = vmatmul.mubr.msk.f32.gmra.mrb[6].mxu0 %vm82_vm4, %v36_v24  ;;  %3001 = vmatmul.mubr.msk.f32.gmra.mrb[6].mxu1 %vm82_vm4, %v547_v25  ;;  %v578_v24 = vld [vmem:[%s5461_s1 + $0x110] sm:$0xff]  ;;  %v68_v25 = vld [vmem:[%s5460_s0 + $0x118] sm:$0xff] }
  0x24   :  { %2836 = vmatprep.mubr.msk.f32.mxu0 %vm3541_vm0, %v3542_v6  ;;  %3003 = vmatprep.mubr.msk.f32.mxu1 %vm3541_vm0, %v3542_v6 }
  0x25   :  { %3515 = vmatpush3.bf16.msra.mxu0 %v3482_v13  ;;  %3531 = vmatpush3.bf16.msra.mxu1 %v3482_v13  ;;  %v62_v13 = vld [vmem:[%s5460_s0 + $0xe8] sm:$0xff] }
  0x26   :  { %3516 = vmatprep.subr.bf16.mxu0 %v3540_v0  ;;  %3532 = vmatprep.subr.bf16.mxu1 %v3540_v0  ;;  %v56_v0 = vld [vmem:[%s5460_s0 + $0xb8] sm:$0xff] }
  0x27   :  { %2837 = vmatmul.mubr.msk.f32.gmra.mrb[8].mxu0 %vm82_vm4, %v37_v26  ;;  %3004 = vmatmul.mubr.msk.f32.gmra.mrb[8].mxu1 %vm82_vm4, %v548_v27  ;;  %v579_v26 = vld [vmem:[%s5461_s1 + $0x118] sm:$0xff]  ;;  %v69_v27 = vld [vmem:[%s5460_s0 + $0x120] sm:$0xff] }
  0x28   :  { %2839 = vmatprep.mubr.msk.f32.mxu0 %vm3541_vm0, %v3542_v6  ;;  %3006 = vmatprep.mubr.msk.f32.mxu1 %vm3541_vm0, %v3542_v6 }
  0x29   :  { %3519 = vmatpush3.bf16.msk.msra.mxu0 %vm3622_vm3, %v3485_v16  ;;  %3535 = vmatpush3.bf16.msk.msra.mxu1 %vm3622_vm3, %v3485_v16  ;;  %v574_v16 = vld [vmem:[%s5461_s1 + $0xf0] sm:$0xff] }
  0x2b   :  { %2840 = vmatmul.mubr.msk.f32.gmra.mrb[10].mxu0 %vm82_vm4, %v38_v28  ;;  %3007 = vmatmul.mubr.msk.f32.gmra.mrb[10].mxu1 %vm82_vm4, %v549_v29  ;;  %v580_v28 = vld [vmem:[%s5461_s1 + $0x120] sm:$0xff]  ;;  %v70_v29 = vld [vmem:[%s5460_s0 + $0x128] sm:$0xff] }
  0x2c   :  { %2842 = vmatprep.mubr.msk.f32.mxu0 %vm3541_vm0, %v3542_v6  ;;  %3009 = vmatprep.mubr.msk.f32.mxu1 %vm3541_vm0, %v3542_v6 }
  0x2f   :  { %2843 = vmatmul.mubr.msk.f32.gmra.mrb[12].mxu0 %vm82_vm4, %v39_v30  ;;  %3010 = vmatmul.mubr.msk.f32.gmra.mrb[12].mxu1 %vm82_vm4, %v550_v31  ;;  %v581_v30 = vld [vmem:[%s5461_s1 + $0x128] sm:$0xff]  ;;  %v71_v31 = vld [vmem:[%s5460_s0 + $0x130] sm:$0xff] }
  0x30   :  { %2845 = vmatprep.mubr.msk.f32.mxu0 %vm3541_vm0, %v3542_v6  ;;  %3012 = vmatprep.mubr.msk.f32.mxu1 %vm3541_vm0, %v3542_v6 }
  0x33   :  { %2846 = vmatmul.mubr.msk.f32.gmra.mrb[14].mxu0 %vm82_vm4, %v40_v32  ;;  %3013 = vmatmul.mubr.msk.f32.gmra.mrb[14].mxu1 %vm82_vm4, %v551_v33  ;;  %v582_v32 = vld [vmem:[%s5461_s1 + $0x130] sm:$0xff]  ;;  %v72_v33 = vld [vmem:[%s5460_s0 + $0x138] sm:$0xff] }
  0x34   :  { %2848 = vmatprep.mubr.msk.f32.mxu0 %vm3541_vm0, %v3542_v6  ;;  %3015 = vmatprep.mubr.msk.f32.mxu1 %vm3541_vm0, %v3542_v6 }
  0x37   :  { %2849 = vmatmul.mubr.msk.f32.gmra.mrb[16].mxu0 %vm82_vm4, %v41_v34  ;;  %3016 = vmatmul.mubr.msk.f32.gmra.mrb[16].mxu1 %vm82_vm4, %v552_v35  ;;  %v583_v34 = vld [vmem:[%s5461_s1 + $0x138] sm:$0xff]  ;;  %v73_v35 = vld [vmem:[%s5460_s0 + $0x140] sm:$0xff] }
  0x38   :  { %2851 = vmatprep.mubr.msk.f32.mxu0 %vm3541_vm0, %v3542_v6  ;;  %3018 = vmatprep.mubr.msk.f32.mxu1 %vm3541_vm0, %v3542_v6 }
  0x3b   :  { %2852 = vmatmul.mubr.msk.f32.gmra.mrb[18].mxu0 %vm82_vm4, %v42_v36  ;;  %3019 = vmatmul.mubr.msk.f32.gmra.mrb[18].mxu1 %vm82_vm4, %v553_v37  ;;  %v584_v36 = vld [vmem:[%s5461_s1 + $0x140] sm:$0xff]  ;;  %v74_v37 = vld [vmem:[%s5460_s0 + $0x148] sm:$0xff] }
  0x3c   :  { %2854 = vmatprep.mubr.msk.f32.mxu0 %vm3541_vm0, %v3542_v6  ;;  %3021 = vmatprep.mubr.msk.f32.mxu1 %vm3541_vm0, %v3542_v6 }
  0x3f   :  { %2855 = vmatmul.mubr.msk.f32.gmra.mrb[20].mxu0 %vm82_vm4, %v43_v38  ;;  %3022 = vmatmul.mubr.msk.f32.gmra.mrb[20].mxu1 %vm82_vm4, %v554_v39  ;;  %v585_v38 = vld [vmem:[%s5461_s1 + $0x148] sm:$0xff]  ;;  %v75_v39 = vld [vmem:[%s5460_s0 + $0x150] sm:$0xff] }
  0x40   :  { %2857 = vmatprep.mubr.msk.f32.mxu0 %vm3541_vm0, %v3542_v6  ;;  %3024 = vmatprep.mubr.msk.f32.mxu1 %vm3541_vm0, %v3542_v6 }
  0x43   :  { %2858 = vmatmul.mubr.msk.f32.gmra.mrb[22].mxu0 %vm82_vm4, %v44_v40  ;;  %3025 = vmatmul.mubr.msk.f32.gmra.mrb[22].mxu1 %vm82_vm4, %v555_v41  ;;  %v586_v40 = vld [vmem:[%s5461_s1 + $0x150] sm:$0xff]  ;;  %v76_v41 = vld [vmem:[%s5460_s0 + $0x158] sm:$0xff] }
  0x44   :  { %2860 = vmatprep.mubr.msk.f32.mxu0 %vm3541_vm0, %v3542_v6  ;;  %3027 = vmatprep.mubr.msk.f32.mxu1 %vm3541_vm0, %v3542_v6 }
  0x47   :  { %2861 = vmatmul.mubr.msk.f32.gmra.mrb[24].mxu0 %vm82_vm4, %v45_v42  ;;  %3028 = vmatmul.mubr.msk.f32.gmra.mrb[24].mxu1 %vm82_vm4, %v556_v43  ;;  %v587_v42 = vld [vmem:[%s5461_s1 + $0x158] sm:$0xff]  ;;  %v77_v43 = vld [vmem:[%s5460_s0 + $0x160] sm:$0xff] }
  0x48   :  { %2863 = vmatprep.mubr.msk.f32.mxu0 %vm3541_vm0, %v3542_v6  ;;  %3030 = vmatprep.mubr.msk.f32.mxu1 %vm3541_vm0, %v3542_v6 }
  0x4b   :  { %2864 = vmatmul.mubr.msk.f32.gmra.mrb[26].mxu0 %vm82_vm4, %v46_v44  ;;  %3031 = vmatmul.mubr.msk.f32.gmra.mrb[26].mxu1 %vm82_vm4, %v557_v45  ;;  %v588_v44 = vld [vmem:[%s5461_s1 + $0x160] sm:$0xff]  ;;  %v78_v45 = vld [vmem:[%s5460_s0 + $0x168] sm:$0xff] }
  0x4c   :  { %2866 = vmatprep.mubr.msk.f32.mxu0 %vm3541_vm0, %v3542_v6  ;;  %3033 = vmatprep.mubr.msk.f32.mxu1 %vm3541_vm0, %v3542_v6 }
  0x4f   :  { %2867 = vmatmul.mubr.msk.f32.gmra.mrb[28].mxu0 %vm82_vm4, %v47_v46  ;;  %3034 = vmatmul.mubr.msk.f32.gmra.mrb[28].mxu1 %vm82_vm4, %v558_v47  ;;  %v589_v46 = vld [vmem:[%s5461_s1 + $0x168] sm:$0xff]  ;;  %v79_v47 = vld [vmem:[%s5460_s0 + $0x170] sm:$0xff] }
  0x50   :  { %2869 = vmatprep.mubr.msk.f32.mxu0 %vm3541_vm0, %v3542_v6  ;;  %3036 = vmatprep.mubr.msk.f32.mxu1 %vm3541_vm0, %v3542_v6 }
  0x53   :  { %2870 = vmatmul.mubr.msk.f32.gmra.mrb[30].mxu0 %vm82_vm4, %v48_v48  ;;  %3037 = vmatmul.mubr.msk.f32.gmra.mrb[30].mxu1 %vm82_vm4, %v559_v49  ;;  %v590_v48 = vld [vmem:[%s5461_s1 + $0x170] sm:$0xff]  ;;  %v80_v49 = vld [vmem:[%s5460_s0 + $0x178] sm:$0xff] }
  0x54   :  { %2872 = vmatprep.mubr.msk.f32.mxu0 %vm3541_vm0, %v3542_v6  ;;  %3039 = vmatprep.mubr.msk.f32.mxu1 %vm3541_vm0, %v3542_v6 }
  0x57   :  { %2873 = vmatmul.mubr.msk.f32.gmra.mrb[32].mxu0 %vm82_vm4, %v49_v50  ;;  %3040 = vmatmul.mubr.msk.f32.gmra.mrb[32].mxu1 %vm82_vm4, %v560_v51  ;;  %v591_v50 = vld [vmem:[%s5461_s1 + $0x178] sm:$0xff]  ;;  %v81_v51 = vld [vmem:[%s5460_s0 + $0x180] sm:$0xff] }
  0x58   :  { %2875 = vmatprep.mubr.msk.f32.mxu0 %vm3541_vm0, %v3542_v6  ;;  %3042 = vmatprep.mubr.msk.f32.mxu1 %vm3541_vm0, %v3542_v6 }
  0x5b   :  { %2876 = vmatmul.mubr.msk.f32.gmra.mrb[34].mxu0 %vm82_vm4, %v50_v52  ;;  %3043 = vmatmul.mubr.msk.f32.gmra.mrb[34].mxu1 %vm82_vm4, %v561_v53  ;;  %v592_v52 = vld [vmem:[%s5461_s1 + $0x180] sm:$0xff] }
  0x5c   :  { %2878 = vmatprep.mubr.msk.f32.mxu0 %vm3541_vm0, %v3542_v6  ;;  %3045 = vmatprep.mubr.msk.f32.mxu1 %vm3541_vm0, %v3542_v6  ;;  %v1099_v53 = vld [vmem:[%s5462_s2] sm:$0xff] }
  0x5f   :  { %2879 = vmatmul.mubr.msk.f32.gmra.mrb[36].mxu0 %vm82_vm4, %v51_v54  ;;  %3046 = vmatmul.mubr.msk.f32.gmra.mrb[36].mxu1 %vm82_vm4, %v562_v55  ;;  %v1654_v54 = vld [vmem:[%s5463_s3] sm:$0xff]  ;;  %v1100_v55 = vld [vmem:[%s5462_s2 + $0x8] sm:$0xff] }
  0x60   :  { %2881 = vmatprep.mubr.msk.f32.mxu0 %vm3541_vm0, %v3542_v6  ;;  %3048 = vmatprep.mubr.msk.f32.mxu1 %vm3541_vm0, %v3542_v6 }
  0x63   :  { %2882 = vmatmul.mubr.msk.f32.gmra.mrb[38].mxu0 %vm82_vm4, %v52_v56  ;;  %3049 = vmatmul.mubr.msk.f32.gmra.mrb[38].mxu1 %vm82_vm4, %v563_v57  ;;  %v1655_v56 = vld [vmem:[%s5463_s3 + $0x8] sm:$0xff]  ;;  %v1101_v57 = vld [vmem:[%s5462_s2 + $0x10] sm:$0xff] }
  0x64   :  { %2884 = vmatprep.mubr.msk.f32.mxu0 %vm3541_vm0, %v3542_v6  ;;  %3051 = vmatprep.mubr.msk.f32.mxu1 %vm3541_vm0, %v3542_v6 }
  0x67   :  { %2885 = vmatmul.mubr.msk.f32.gmra.mrb[40].mxu0 %vm82_vm4, %v53_v58  ;;  %3052 = vmatmul.mubr.msk.f32.gmra.mrb[40].mxu1 %vm82_vm4, %v564_v59  ;;  %v1656_v58 = vld [vmem:[%s5463_s3 + $0x10] sm:$0xff]  ;;  %v1102_v59 = vld [vmem:[%s5462_s2 + $0x18] sm:$0xff] }
  0x68   :  { %2887 = vmatprep.mubr.msk.f32.mxu0 %vm3541_vm0, %v3542_v6  ;;  %3054 = vmatprep.mubr.msk.f32.mxu1 %vm3541_vm0, %v3542_v6 }
  0x6b   :  { %2888 = vmatmul.mubr.msk.f32.gmra.mrb[42].mxu0 %vm82_vm4, %v54_v60  ;;  %3055 = vmatmul.mubr.msk.f32.gmra.mrb[42].mxu1 %vm82_vm4, %v565_v61  ;;  %v1657_v60 = vld [vmem:[%s5463_s3 + $0x18] sm:$0xff]  ;;  %v1103_v61 = vld [vmem:[%s5462_s2 + $0x20] sm:$0xff] }
  0x6c   :  { %2890 = vmatprep.mubr.msk.f32.mxu0 %vm3541_vm0, %v3542_v6  ;;  %3057 = vmatprep.mubr.msk.f32.mxu1 %vm3541_vm0, %v3542_v6 }
  0x6f   :  { %2891 = vmatmul.mubr.msk.f32.gmra.mrb[44].mxu0 %vm82_vm4, %v55_v62  ;;  %3058 = vmatmul.mubr.msk.f32.gmra.mrb[44].mxu1 %vm82_vm4, %v566_v63  ;;  %v1658_v62 = vld [vmem:[%s5463_s3 + $0x20] sm:$0xff] }
  0x70   :  { %2893 = vmatprep.mubr.msk.f32.mxu0 %vm3541_vm0, %v3542_v6  ;;  %3060 = vmatprep.mubr.msk.f32.mxu1 %vm3541_vm0, %v3542_v6 }
  0x73   :  { %2894 = vmatmul.mubr.msk.f32.gmra.mrb[46].mxu0 %vm82_vm4, %v56_v0  ;;  %3061 = vmatmul.mubr.msk.f32.gmra.mrb[46].mxu1 %vm82_vm4, %v567_v1 }
  0x74   :  { %2896 = vmatprep.mubr.msk.f32.mxu0 %vm3541_vm0, %v3542_v6  ;;  %3063 = vmatprep.mubr.msk.f32.mxu1 %vm3541_vm0, %v3542_v6 }
  0x77   :  { %2897 = vmatmul.mubr.msk.f32.gmra.mrb[48].mxu0 %vm82_vm4, %v57_v2  ;;  %3064 = vmatmul.mubr.msk.f32.gmra.mrb[48].mxu1 %vm82_vm4, %v568_v3 }
  0x78   :  { %2899 = vmatprep.mubr.msk.f32.mxu0 %vm3541_vm0, %v3542_v6  ;;  %3066 = vmatprep.mubr.msk.f32.mxu1 %vm3541_vm0, %v3542_v6 }
  0x7b   :  { %2900 = vmatmul.mubr.msk.f32.gmra.mrb[50].mxu0 %vm82_vm4, %v58_v4  ;;  %3067 = vmatmul.mubr.msk.f32.gmra.mrb[50].mxu1 %vm82_vm4, %v569_v5  ;;  %v1104_v4 = vld [vmem:[%s5462_s2 + $0x28] sm:$0xff] }
  0x7c   :  { %2902 = vmatprep.mubr.msk.f32.mxu0 %vm3541_vm0, %v3542_v6  ;;  %3069 = vmatprep.mubr.msk.f32.mxu1 %vm3541_vm0, %v3542_v6  ;;  %v1659_v5 = vld [vmem:[%s5463_s3 + $0x28] sm:$0xff] }
  0x7f   :  { %2903 = vmatmul.mubr.msk.f32.gmra.mrb[52].mxu0 %vm82_vm4, %v59_v7  ;;  %3070 = vmatmul.mubr.msk.f32.gmra.mrb[52].mxu1 %vm82_vm4, %v570_v8 }
  0x80   :  { %2905 = vmatprep.mubr.msk.f32.mxu0 %vm3541_vm0, %v3542_v6  ;;  %3072 = vmatprep.mubr.msk.f32.mxu1 %vm3541_vm0, %v3542_v6 }
  0x83   :  { %2906 = vmatmul.mubr.msk.f32.gmra.mrb[54].mxu0 %vm82_vm4, %v60_v9  ;;  %3073 = vmatmul.mubr.msk.f32.gmra.mrb[54].mxu1 %vm82_vm4, %v571_v10  ;;  %v1131_v10 = vld [vmem:[%s5462_s2 + $0x100] sm:$0xff] }
  0x84   :  { %2908 = vmatprep.mubr.msk.f32.mxu0 %vm3541_vm0, %v3542_v6  ;;  %3075 = vmatprep.mubr.msk.f32.mxu1 %vm3541_vm0, %v3542_v6 }
  0x87   :  { %2909 = vmatmul.mubr.msk.f32.gmra.mrb[56].mxu0 %vm82_vm4, %v61_v11  ;;  %3076 = vmatmul.mubr.msk.f32.gmra.mrb[56].mxu1 %vm82_vm4, %v572_v12  ;;  %v1105_v12 = vld [vmem:[%s5462_s2 + $0x30] sm:$0xff] }
  0x88   :  { %2911 = vmatprep.mubr.msk.f32.mxu0 %vm3541_vm0, %v3542_v6  ;;  %3078 = vmatprep.mubr.msk.f32.mxu1 %vm3541_vm0, %v3542_v6 }
  0x8b   :  { %2912 = vmatmul.mubr.msk.f32.gmra.mrb[58].mxu0 %vm82_vm4, %v62_v13  ;;  %3079 = vmatmul.mubr.msk.f32.gmra.mrb[58].mxu1 %vm82_vm4, %v573_v14  ;;  %v1660_v13 = vld [vmem:[%s5463_s3 + $0x30] sm:$0xff] }
  0x8c   :  { %2914 = vmatprep.mubr.msk.f32.mxu0 %vm3541_vm0, %v3542_v6  ;;  %3081 = vmatprep.mubr.msk.f32.mxu1 %vm3541_vm0, %v3542_v6 }
  0x8f   :  { %2915 = vmatmul.mubr.msk.f32.gmra.mrb[60].mxu0 %vm82_vm4, %v63_v15  ;;  %3082 = vmatmul.mubr.msk.f32.gmra.mrb[60].mxu1 %vm82_vm4, %v574_v16 }
  0x90   :  { %2917 = vmatprep.mubr.msk.f32.mxu0 %vm3541_vm0, %v3542_v6  ;;  %3084 = vmatprep.mubr.msk.f32.mxu1 %vm3541_vm0, %v3542_v6 }
  0x93   :  { %2918 = vmatmul.mubr.msk.f32.gmra.mrb[62].mxu0 %vm82_vm4, %v64_v17  ;;  %3085 = vmatmul.mubr.msk.f32.gmra.mrb[62].mxu1 %vm82_vm4, %v575_v18 }
  0x94   :  { %2920 = vmatprep.mubr.msk.f32.mxu0 %vm3541_vm0, %v3542_v6  ;;  %3087 = vmatprep.mubr.msk.f32.mxu1 %vm3541_vm0, %v3542_v6 }
  0x97   :  { %2921 = vmatmul.mubr.msk.f32.gmra.mrb[64].mxu0 %vm82_vm4, %v65_v19  ;;  %3088 = vmatmul.mubr.msk.f32.gmra.mrb[64].mxu1 %vm82_vm4, %v576_v20  ;;  %v1106_v19 = vld [vmem:[%s5462_s2 + $0x38] sm:$0xff] }
  0x98   :  { %2923 = vmatprep.mubr.msk.f32.mxu0 %vm3541_vm0, %v3542_v6  ;;  %3090 = vmatprep.mubr.msk.f32.mxu1 %vm3541_vm0, %v3542_v6  ;;  %v1661_v20 = vld [vmem:[%s5463_s3 + $0x38] sm:$0xff] }
  0x9b   :  { %2924 = vmatmul.mubr.msk.f32.gmra.mrb[66].mxu0 %vm82_vm4, %v66_v21  ;;  %3091 = vmatmul.mubr.msk.f32.gmra.mrb[66].mxu1 %vm82_vm4, %v577_v22 }
  0x9c   :  { %2926 = vmatprep.mubr.msk.f32.mxu0 %vm3541_vm0, %v3542_v6  ;;  %3093 = vmatprep.mubr.msk.f32.mxu1 %vm3541_vm0, %v3542_v6 }
  0x9f   :  { %2927 = vmatmul.mubr.msk.f32.gmra.mrb[68].mxu0 %vm82_vm4, %v67_v23  ;;  %3094 = vmatmul.mubr.msk.f32.gmra.mrb[68].mxu1 %vm82_vm4, %v578_v24  ;;  %v1130_v24 = vld [vmem:[%s5462_s2 + $0xf8] sm:$0xff] }
  0xa0   :  { %2929 = vmatprep.mubr.msk.f32.mxu0 %vm3541_vm0, %v3542_v6  ;;  %3096 = vmatprep.mubr.msk.f32.mxu1 %vm3541_vm0, %v3542_v6 }
  0xa3   :  { %2930 = vmatmul.mubr.msk.f32.gmra.mrb[70].mxu0 %vm82_vm4, %v68_v25  ;;  %3097 = vmatmul.mubr.msk.f32.gmra.mrb[70].mxu1 %vm82_vm4, %v579_v26  ;;  %v1107_v26 = vld [vmem:[%s5462_s2 + $0x40] sm:$0xff] }
  0xa4   :  { %2932 = vmatprep.mubr.msk.f32.mxu0 %vm3541_vm0, %v3542_v6  ;;  %3099 = vmatprep.mubr.msk.f32.mxu1 %vm3541_vm0, %v3542_v6 }
  0xa7   :  { %2933 = vmatmul.mubr.msk.f32.gmra.mrb[72].mxu0 %vm82_vm4, %v69_v27  ;;  %3100 = vmatmul.mubr.msk.f32.gmra.mrb[72].mxu1 %vm82_vm4, %v580_v28  ;;  %v1662_v27 = vld [vmem:[%s5463_s3 + $0x40] sm:$0xff] }
  0xa8   :  { %2935 = vmatprep.mubr.msk.f32.mxu0 %vm3541_vm0, %v3542_v6  ;;  %3102 = vmatprep.mubr.msk.f32.mxu1 %vm3541_vm0, %v3542_v6 }
  0xab   :  { %2936 = vmatmul.mubr.msk.f32.gmra.mrb[74].mxu0 %vm82_vm4, %v70_v29  ;;  %3103 = vmatmul.mubr.msk.f32.gmra.mrb[74].mxu1 %vm82_vm4, %v581_v30 }
  0xac   :  { %2938 = vmatprep.mubr.msk.f32.mxu0 %vm3541_vm0, %v3542_v6  ;;  %3105 = vmatprep.mubr.msk.f32.mxu1 %vm3541_vm0, %v3542_v6 }
  0xaf   :  { %2939 = vmatmul.mubr.msk.f32.gmra.mrb[76].mxu0 %vm82_vm4, %v71_v31  ;;  %3106 = vmatmul.mubr.msk.f32.gmra.mrb[76].mxu1 %vm82_vm4, %v582_v32 }
  0xb0   :  { %2941 = vmatprep.mubr.msk.f32.mxu0 %vm3541_vm0, %v3542_v6  ;;  %3108 = vmatprep.mubr.msk.f32.mxu1 %vm3541_vm0, %v3542_v6 }
  0xb3   :  { %2942 = vmatmul.mubr.msk.f32.gmra.mrb[78].mxu0 %vm82_vm4, %v72_v33  ;;  %3109 = vmatmul.mubr.msk.f32.gmra.mrb[78].mxu1 %vm82_vm4, %v583_v34  ;;  %v1108_v33 = vld [vmem:[%s5462_s2 + $0x48] sm:$0xff] }
  0xb4   :  { %2944 = vmatprep.mubr.msk.f32.mxu0 %vm3541_vm0, %v3542_v6  ;;  %3111 = vmatprep.mubr.msk.f32.mxu1 %vm3541_vm0, %v3542_v6  ;;  %v1663_v34 = vld [vmem:[%s5463_s3 + $0x48] sm:$0xff] }
  0xb7   :  { %2945 = vmatmul.mubr.msk.f32.gmra.mrb[80].mxu0 %vm82_vm4, %v73_v35  ;;  %3112 = vmatmul.mubr.msk.f32.gmra.mrb[80].mxu1 %vm82_vm4, %v584_v36 }
  0xb8   :  { %2947 = vmatprep.mubr.msk.f32.mxu0 %vm3541_vm0, %v3542_v6  ;;  %3114 = vmatprep.mubr.msk.f32.mxu1 %vm3541_vm0, %v3542_v6 }
  0xbb   :  { %2948 = vmatmul.mubr.msk.f32.gmra.mrb[82].mxu0 %vm82_vm4, %v74_v37  ;;  %3115 = vmatmul.mubr.msk.f32.gmra.mrb[82].mxu1 %vm82_vm4, %v585_v38  ;;  %v1129_v38 = vld [vmem:[%s5462_s2 + $0xf0] sm:$0xff] }
  0xbc   :  { %2950 = vmatprep.mubr.msk.f32.mxu0 %vm3541_vm0, %v3542_v6  ;;  %3117 = vmatprep.mubr.msk.f32.mxu1 %vm3541_vm0, %v3542_v6 }
  0xbf   :  { %2951 = vmatmul.mubr.msk.f32.gmra.mrb[84].mxu0 %vm82_vm4, %v75_v39  ;;  %3118 = vmatmul.mubr.msk.f32.gmra.mrb[84].mxu1 %vm82_vm4, %v586_v40  ;;  %v1109_v40 = vld [vmem:[%s5462_s2 + $0x50] sm:$0xff] }
  0xc0   :  { %2953 = vmatprep.mubr.msk.f32.mxu0 %vm3541_vm0, %v3542_v6  ;;  %3120 = vmatprep.mubr.msk.f32.mxu1 %vm3541_vm0, %v3542_v6 }
  0xc3   :  { %2954 = vmatmul.mubr.msk.f32.gmra.mrb[86].mxu0 %vm82_vm4, %v76_v41  ;;  %3121 = vmatmul.mubr.msk.f32.gmra.mrb[86].mxu1 %vm82_vm4, %v587_v42  ;;  %v1664_v41 = vld [vmem:[%s5463_s3 + $0x50] sm:$0xff] }
  0xc4   :  { %2956 = vmatprep.mubr.msk.f32.mxu0 %vm3541_vm0, %v3542_v6  ;;  %3123 = vmatprep.mubr.msk.f32.mxu1 %vm3541_vm0, %v3542_v6 }
  0xc7   :  { %2957 = vmatmul.mubr.msk.f32.gmra.mrb[88].mxu0 %vm82_vm4, %v77_v43  ;;  %3124 = vmatmul.mubr.msk.f32.gmra.mrb[88].mxu1 %vm82_vm4, %v588_v44 }
  0xc8   :  { %2959 = vmatprep.mubr.msk.f32.mxu0 %vm3541_vm0, %v3542_v6  ;;  %3126 = vmatprep.mubr.msk.f32.mxu1 %vm3541_vm0, %v3542_v6 }
  0xcb   :  { %2960 = vmatmul.mubr.msk.f32.gmra.mrb[90].mxu0 %vm82_vm4, %v78_v45  ;;  %3127 = vmatmul.mubr.msk.f32.gmra.mrb[90].mxu1 %vm82_vm4, %v589_v46 }
  0xcc   :  { %2962 = vmatprep.mubr.msk.f32.mxu0 %vm3541_vm0, %v3542_v6  ;;  %3129 = vmatprep.mubr.msk.f32.mxu1 %vm3541_vm0, %v3542_v6 }
  0xcf   :  { %2963 = vmatmul.mubr.msk.f32.gmra.mrb[92].mxu0 %vm82_vm4, %v79_v47  ;;  %3130 = vmatmul.mubr.msk.f32.gmra.mrb[92].mxu1 %vm82_vm4, %v590_v48  ;;  %v1110_v47 = vld [vmem:[%s5462_s2 + $0x58] sm:$0xff] }
  0xd0   :  { %2965 = vmatprep.mubr.msk.f32.mxu0 %vm3541_vm0, %v3542_v6  ;;  %3132 = vmatprep.mubr.msk.f32.mxu1 %vm3541_vm0, %v3542_v6  ;;  %v1665_v48 = vld [vmem:[%s5463_s3 + $0x58] sm:$0xff] }
  0xd3   :  { %2966 = vmatmul.mubr.msk.f32.gmra.mrb[94].mxu0 %vm82_vm4, %v80_v49  ;;  %3133 = vmatmul.mubr.msk.f32.gmra.mrb[94].mxu1 %vm82_vm4, %v591_v50 }
  0xd4   :  { %2968 = vmatprep.mubr.msk.f32.mxu0 %vm3541_vm0, %v3542_v6  ;;  %3135 = vmatprep.mubr.msk.f32.mxu1 %vm3541_vm0, %v3542_v6 }
  0xd7   :  { %2969 = vmatmul.mubr.msk.f32.gmra.mrb[96].mxu0 %vm82_vm4, %v81_v51  ;;  %3136 = vmatmul.mubr.msk.f32.gmra.mrb[96].mxu1 %vm82_vm4, %v592_v52  ;;  %v1128_v52 = vld [vmem:[%s5462_s2 + $0xe8] sm:$0xff] }
  0xd8   :  { %3158 = vmatprep.mubr.msk.f32.mxu0 %vm3541_vm0, %v3542_v6  ;;  %3325 = vmatprep.mubr.msk.f32.mxu1 %vm3541_vm0, %v3542_v6 }
  0xdb   :  { %3159 = vmatmul.mubr.msk.f32.vlgmr.msra.gmra.mrb[98].mxu0 %vm82_vm4, %v1099_v53  ;;  %3326 = vmatmul.mubr.msk.f32.vlgmr.msra.gmra.mrb[98].mxu1 %vm82_vm4, %v1654_v54  ;;  %v1111_v54 = vld [vmem:[%s5462_s2 + $0x60] sm:$0xff] }
  0xdc   :  { %3161 = vmatprep.mubr.msk.f32.mxu0 %vm3541_vm0, %v3542_v6  ;;  %3328 = vmatprep.mubr.msk.f32.mxu1 %vm3541_vm0, %v3542_v6 }
  0xdf   :  { %3162 = vmatmul.mubr.msk.f32.gmra.mrb[100].mxu0 %vm82_vm4, %v1100_v55  ;;  %3329 = vmatmul.mubr.msk.f32.gmra.mrb[100].mxu1 %vm82_vm4, %v1655_v56  ;;  %v1666_v55 = vld [vmem:[%s5463_s3 + $0x60] sm:$0xff] }
  0xe0   :  { %3164 = vmatprep.mubr.msk.f32.mxu0 %vm3541_vm0, %v3542_v6  ;;  %3331 = vmatprep.mubr.msk.f32.mxu1 %vm3541_vm0, %v3542_v6 }
  0xe3   :  { %3165 = vmatmul.mubr.msk.f32.gmra.mrb[102].mxu0 %vm82_vm4, %v1101_v57  ;;  %3332 = vmatmul.mubr.msk.f32.gmra.mrb[102].mxu1 %vm82_vm4, %v1656_v58 }
  0xe4   :  { %3167 = vmatprep.mubr.msk.f32.mxu0 %vm3541_vm0, %v3542_v6  ;;  %3334 = vmatprep.mubr.msk.f32.mxu1 %vm3541_vm0, %v3542_v6 }
  0xe7   :  { %3168 = vmatmul.mubr.msk.f32.gmra.mrb[104].mxu0 %vm82_vm4, %v1102_v59  ;;  %3335 = vmatmul.mubr.msk.f32.gmra.mrb[104].mxu1 %vm82_vm4, %v1657_v60 }
  0xe8   :  { %3170 = vmatprep.mubr.msk.f32.mxu0 %vm3541_vm0, %v3542_v6  ;;  %3337 = vmatprep.mubr.msk.f32.mxu1 %vm3541_vm0, %v3542_v6 }
  0xea   :  { %v4287_v63 = vpop.f32.mrb[0].mxu0  ;;  %v4289_v0 = vpop.f32.mrb[0].mxu1 }
  0xeb   :  { %v2826_v1 = vpop.f32.mrb[1].mxu0  ;;  %3171 = vmatmul.mubr.msk.f32.gmra.mrb[106].mxu0 %vm82_vm4, %v1103_v61  ;;  %v2993_v3 = vpop.f32.mrb[1].mxu1  ;;  %3338 = vmatmul.mubr.msk.f32.gmra.mrb[106].mxu1 %vm82_vm4, %v1658_v62  ;;  %v1112_v61 = vld [vmem:[%s5462_s2 + $0x68] sm:$0xff] }
  0xec   :  { %3173 = vmatprep.mubr.msk.f32.mxu0 %vm3541_vm0, %v3542_v6  ;;  %3340 = vmatprep.mubr.msk.f32.mxu1 %vm3541_vm0, %v3542_v6  ;;  %v1667_v62 = vld [vmem:[%s5463_s3 + $0x68] sm:$0xff] }
  0xee   :  { %v4305_v7 = vpop.f32.mrb[2].mxu0  ;;  %v4307_v8 = vpop.f32.mrb[2].mxu1 }
  0xef   :  { %v2829_v9 = vpop.f32.mrb[3].mxu0  ;;  %3174 = vmatmul.mubr.msk.f32.gmra.mrb[108].mxu0 %vm82_vm4, %v1104_v4  ;;  %v2996_v11 = vpop.f32.mrb[3].mxu1  ;;  %3341 = vmatmul.mubr.msk.f32.gmra.mrb[108].mxu1 %vm82_vm4, %v1659_v5  ;;  %v1127_v5 = vld [vmem:[%s5462_s2 + $0xe0] sm:$0xff] }
  0xf0   :  { %3176 = vmatprep.mubr.msk.f32.mxu0 %vm3541_vm0, %v3542_v6  ;;  %3343 = vmatprep.mubr.msk.f32.mxu1 %vm3541_vm0, %v3542_v6  ;;  %v1113_v11 = vld [vmem:[%s5462_s2 + $0x70] sm:$0xff] }
  0xf2   :  { %v4323_v14 = vpop.f32.mrb[4].mxu0  ;;  %v4325_v15 = vpop.f32.mrb[4].mxu1 }
  0xf3   :  { %v2832_v16 = vpop.f32.mrb[5].mxu0  ;;  %3177 = vmatmul.mubr.msk.f32.gmra.mrb[110].mxu0 %vm82_vm4, %v1105_v12  ;;  %v2999_v18 = vpop.f32.mrb[5].mxu1  ;;  %3344 = vmatmul.mubr.msk.f32.gmra.mrb[110].mxu1 %vm82_vm4, %v1660_v13  ;;  %v1668_v12 = vld [vmem:[%s5463_s3 + $0x70] sm:$0xff] }
  0xf4   :  { %3179 = vmatprep.mubr.msk.f32.mxu0 %vm3541_vm0, %v3542_v6  ;;  %3346 = vmatprep.mubr.msk.f32.mxu1 %vm3541_vm0, %v3542_v6 }
  0xf6   :  { %v4341_v21 = vpop.f32.mrb[6].mxu0  ;;  %v4343_v22 = vpop.f32.mrb[6].mxu1 }
  0xf7   :  { %v2835_v23 = vpop.f32.mrb[7].mxu0  ;;  %3180 = vmatmul.mubr.msk.f32.gmra.mrb[112].mxu0 %vm82_vm4, %v1106_v19  ;;  %v3002_v25 = vpop.f32.mrb[7].mxu1  ;;  %3347 = vmatmul.mubr.msk.f32.gmra.mrb[112].mxu1 %vm82_vm4, %v1661_v20 }
  0xf8   :  { %3182 = vmatprep.mubr.msk.f32.mxu0 %vm3541_vm0, %v3542_v6  ;;  %3349 = vmatprep.mubr.msk.f32.mxu1 %vm3541_vm0, %v3542_v6  ;;  %v1114_v23 = vld [vmem:[%s5462_s2 + $0x78] sm:$0xff] }
  0xf9   :  { %v1669_v25 = vld [vmem:[%s5463_s3 + $0x78] sm:$0xff] }
  0xfa   :  { %v4359_v28 = vpop.f32.mrb[8].mxu0  ;;  %v4361_v29 = vpop.f32.mrb[8].mxu1 }
  0xfb   :  { %v2838_v30 = vpop.f32.mrb[9].mxu0  ;;  %3183 = vmatmul.mubr.msk.f32.gmra.mrb[114].mxu0 %vm82_vm4, %v1107_v26  ;;  %v3005_v32 = vpop.f32.mrb[9].mxu1  ;;  %3350 = vmatmul.mubr.msk.f32.gmra.mrb[114].mxu1 %vm82_vm4, %v1662_v27 }
  0xfc   :  { %3185 = vmatprep.mubr.msk.f32.mxu0 %vm3541_vm0, %v3542_v6  ;;  %3352 = vmatprep.mubr.msk.f32.mxu1 %vm3541_vm0, %v3542_v6  ;;  %v1126_v32 = vld [vmem:[%s5462_s2 + $0xd8] sm:$0xff] }
  0xfe   :  { %v4377_v35 = vpop.f32.mrb[10].mxu0  ;;  %v4379_v36 = vpop.f32.mrb[10].mxu1 }
  0xff   :  { %v2841_v37 = vpop.f32.mrb[11].mxu0  ;;  %3186 = vmatmul.mubr.msk.f32.gmra.mrb[116].mxu0 %vm82_vm4, %v1108_v33  ;;  %v3008_v39 = vpop.f32.mrb[11].mxu1  ;;  %3353 = vmatmul.mubr.msk.f32.gmra.mrb[116].mxu1 %vm82_vm4, %v1663_v34  ;;  %v1115_v34 = vld [vmem:[%s5462_s2 + $0x80] sm:$0xff] }
 0x100   :  { %3188 = vmatprep.mubr.msk.f32.mxu0 %vm3541_vm0, %v3542_v6  ;;  %3355 = vmatprep.mubr.msk.f32.mxu1 %vm3541_vm0, %v3542_v6  ;;  %v1670_v37 = vld [vmem:[%s5463_s3 + $0x80] sm:$0xff] }
 0x102   :  { %v4395_v42 = vpop.f32.mrb[12].mxu0  ;;  %v4397_v43 = vpop.f32.mrb[12].mxu1 }
 0x103   :  { %v2844_v44 = vpop.f32.mrb[13].mxu0  ;;  %3189 = vmatmul.mubr.msk.f32.gmra.mrb[118].mxu0 %vm82_vm4, %v1109_v40  ;;  %v3011_v46 = vpop.f32.mrb[13].mxu1  ;;  %3356 = vmatmul.mubr.msk.f32.gmra.mrb[118].mxu1 %vm82_vm4, %v1664_v41 }
 0x104   :  { %3191 = vmatprep.mubr.msk.f32.mxu0 %vm3541_vm0, %v3542_v6  ;;  %3358 = vmatprep.mubr.msk.f32.mxu1 %vm3541_vm0, %v3542_v6 }
 0x106   :  { %v4413_v49 = vpop.f32.mrb[14].mxu0  ;;  %v4415_v50 = vpop.f32.mrb[14].mxu1 }
 0x107   :  { %v2847_v51 = vpop.f32.mrb[15].mxu0  ;;  %3192 = vmatmul.mubr.msk.f32.gmra.mrb[120].mxu0 %vm82_vm4, %v1110_v47  ;;  %v3014_v53 = vpop.f32.mrb[15].mxu1  ;;  %3359 = vmatmul.mubr.msk.f32.gmra.mrb[120].mxu1 %vm82_vm4, %v1665_v48  ;;  %v1116_v47 = vld [vmem:[%s5462_s2 + $0x88] sm:$0xff] }
 0x108   :  { %3194 = vmatprep.mubr.msk.f32.mxu0 %vm3541_vm0, %v3542_v6  ;;  %3361 = vmatprep.mubr.msk.f32.mxu1 %vm3541_vm0, %v3542_v6  ;;  %v1671_v48 = vld [vmem:[%s5463_s3 + $0x88] sm:$0xff] }
 0x10a   :  { %v4431_v56 = vpop.f32.mrb[16].mxu0  ;;  %v4433_v57 = vpop.f32.mrb[16].mxu1 }
 0x10b   :  { %v2850_v58 = vpop.f32.mrb[17].mxu0  ;;  %3195 = vmatmul.mubr.msk.f32.gmra.mrb[122].mxu0 %vm82_vm4, %v1111_v54  ;;  %v3017_v60 = vpop.f32.mrb[17].mxu1  ;;  %3362 = vmatmul.mubr.msk.f32.gmra.mrb[122].mxu1 %vm82_vm4, %v1666_v55  ;;  %v1125_v55 = vld [vmem:[%s5462_s2 + $0xd0] sm:$0xff] }
 0x10c   :  { %3197 = vmatprep.mubr.msk.f32.mxu0 %vm3541_vm0, %v3542_v6  ;;  %3364 = vmatprep.mubr.msk.f32.mxu1 %vm3541_vm0, %v3542_v6  ;;  %v1117_v60 = vld [vmem:[%s5462_s2 + $0x90] sm:$0xff] }
 0x10e   :  { %v4449_v1 = vpop.f32.mrb[18].mxu0  ;;  %v4451_v3 = vpop.f32.mrb[18].mxu1 }
 0x10f   :  { %v2853_v4 = vpop.f32.mrb[19].mxu0  ;;  %3198 = vmatmul.mubr.msk.f32.gmra.mrb[124].mxu0 %vm82_vm4, %v1112_v61  ;;  %v3020_v9 = vpop.f32.mrb[19].mxu1  ;;  %3365 = vmatmul.mubr.msk.f32.gmra.mrb[124].mxu1 %vm82_vm4, %v1667_v62  ;;  %v1672_v61 = vld [vmem:[%s5463_s3 + $0x90] sm:$0xff] }
 0x110   :  { %3200 = vmatprep.mubr.msk.f32.mxu0 %vm3541_vm0, %v3542_v6  ;;  %3367 = vmatprep.mubr.msk.f32.mxu1 %vm3541_vm0, %v3542_v6 }
 0x112   :  { %v4467_v13 = vpop.f32.mrb[20].mxu0  ;;  %v4469_v16 = vpop.f32.mrb[20].mxu1 }
 0x113   :  { %v2856_v18 = vpop.f32.mrb[21].mxu0  ;;  %3201 = vmatmul.mubr.msk.f32.gmra.mrb[126].mxu0 %vm82_vm4, %v1113_v11  ;;  %v3023_v20 = vpop.f32.mrb[21].mxu1  ;;  %3368 = vmatmul.mubr.msk.f32.gmra.mrb[126].mxu1 %vm82_vm4, %v1668_v12 }
 0x114   :  { %3203 = vmatprep.mubr.msk.f32.mxu0 %vm3541_vm0, %v3542_v6  ;;  %3370 = vmatprep.mubr.msk.f32.mxu1 %vm3541_vm0, %v3542_v6  ;;  %v1118_v18 = vld [vmem:[%s5462_s2 + $0x98] sm:$0xff] }
 0x115   :  { %v1673_v20 = vld [vmem:[%s5463_s3 + $0x98] sm:$0xff] }
 0x116   :  { %v4485_v26 = vpop.f32.mrb[22].mxu0  ;;  %v4487_v27 = vpop.f32.mrb[22].mxu1 }
 0x117   :  { %v2859_v30 = vpop.f32.mrb[23].mxu0  ;;  %3204 = vmatmul.mubr.msk.f32.gmra.mrb[128].mxu0 %vm82_vm4, %v1114_v23  ;;  %v3026_v33 = vpop.f32.mrb[23].mxu1  ;;  %3371 = vmatmul.mubr.msk.f32.gmra.mrb[128].mxu1 %vm82_vm4, %v1669_v25 }
 0x118   :  { %3206 = vmatprep.mubr.msk.f32.mxu0 %vm3541_vm0, %v3542_v6  ;;  %3373 = vmatprep.mubr.msk.f32.mxu1 %vm3541_vm0, %v3542_v6  ;;  %v1124_v33 = vld [vmem:[%s5462_s2 + $0xc8] sm:$0xff] }
 0x11a   :  { %v4503_v39 = vpop.f32.mrb[24].mxu0  ;;  %v4505_v40 = vpop.f32.mrb[24].mxu1 }
 0x11b   :  { %v2862_v41 = vpop.f32.mrb[25].mxu0  ;;  %3207 = vmatmul.mubr.msk.f32.gmra.mrb[130].mxu0 %vm82_vm4, %v1115_v34  ;;  %v3029_v46 = vpop.f32.mrb[25].mxu1  ;;  %3374 = vmatmul.mubr.msk.f32.gmra.mrb[130].mxu1 %vm82_vm4, %v1670_v37  ;;  %v1119_v37 = vld [vmem:[%s5462_s2 + $0xa0] sm:$0xff] }
 0x11c   :  { %3209 = vmatprep.mubr.msk.f32.mxu0 %vm3541_vm0, %v3542_v6  ;;  %3376 = vmatprep.mubr.msk.f32.mxu1 %vm3541_vm0, %v3542_v6  ;;  %v1674_v41 = vld [vmem:[%s5463_s3 + $0xa0] sm:$0xff] }
 0x11e   :  { %v4521_v51 = vpop.f32.mrb[26].mxu0  ;;  %v4523_v53 = vpop.f32.mrb[26].mxu1 }
 0x11f   :  { %v2865_v54 = vpop.f32.mrb[27].mxu0  ;;  %3210 = vmatmul.mubr.msk.f32.gmra.mrb[132].mxu0 %vm82_vm4, %v1116_v47  ;;  %v3032_v58 = vpop.f32.mrb[27].mxu1  ;;  %3377 = vmatmul.mubr.msk.f32.gmra.mrb[132].mxu1 %vm82_vm4, %v1671_v48 }
 0x120   :  { %3212 = vmatprep.mubr.msk.f32.mxu0 %vm3541_vm0, %v3542_v6  ;;  %3379 = vmatprep.mubr.msk.f32.mxu1 %vm3541_vm0, %v3542_v6 }
 0x122   :  { %v4539_v62 = vpop.f32.mrb[28].mxu0  ;;  %v4541_v4 = vpop.f32.mrb[28].mxu1 }
 0x123   :  { %v2868_v9 = vpop.f32.mrb[29].mxu0  ;;  %3213 = vmatmul.mubr.msk.f32.gmra.mrb[134].mxu0 %vm82_vm4, %v1117_v60  ;;  %v3035_v12 = vpop.f32.mrb[29].mxu1  ;;  %3380 = vmatmul.mubr.msk.f32.gmra.mrb[134].mxu1 %vm82_vm4, %v1672_v61  ;;  %v1120_v60 = vld [vmem:[%s5462_s2 + $0xa8] sm:$0xff] }
 0x124   :  { %3215 = vmatprep.mubr.msk.f32.mxu0 %vm3541_vm0, %v3542_v6  ;;  %3382 = vmatprep.mubr.msk.f32.mxu1 %vm3541_vm0, %v3542_v6  ;;  %v1675_v61 = vld [vmem:[%s5463_s3 + $0xa8] sm:$0xff] }
 0x126   :  { %v4557_v23 = vpop.f32.mrb[30].mxu0  ;;  %v4559_v25 = vpop.f32.mrb[30].mxu1 }
 0x127   :  { %v2871_v30 = vpop.f32.mrb[31].mxu0  ;;  %3216 = vmatmul.mubr.msk.f32.gmra.mrb[136].mxu0 %vm82_vm4, %v1118_v18  ;;  %v3038_v34 = vpop.f32.mrb[31].mxu1  ;;  %3383 = vmatmul.mubr.msk.f32.gmra.mrb[136].mxu1 %vm82_vm4, %v1673_v20  ;;  %v1123_v20 = vld [vmem:[%s5462_s2 + $0xc0] sm:$0xff] }
 0x128   :  { %3218 = vmatprep.mubr.msk.f32.mxu0 %vm3541_vm0, %v3542_v6  ;;  %3385 = vmatprep.mubr.msk.f32.mxu1 %vm3541_vm0, %v3542_v6  ;;  %v1121_v34 = vld [vmem:[%s5462_s2 + $0xb0] sm:$0xff] }
 0x12a   :  { %v4575_v46 = vpop.f32.mrb[32].mxu0  ;;  %v4577_v47 = vpop.f32.mrb[32].mxu1 }
 0x12b   :  { %v2874_v48 = vpop.f32.mrb[33].mxu0  ;;  %3219 = vmatmul.mubr.msk.f32.gmra.mrb[138].mxu0 %vm82_vm4, %v1119_v37  ;;  %v3041_v58 = vpop.f32.mrb[33].mxu1  ;;  %3386 = vmatmul.mubr.msk.f32.gmra.mrb[138].mxu1 %vm82_vm4, %v1674_v41  ;;  %v1676_v37 = vld [vmem:[%s5463_s3 + $0xb0] sm:$0xff] }
 0x12c   :  { %3221 = vmatprep.mubr.msk.f32.mxu0 %vm3541_vm0, %v3542_v6  ;;  %3388 = vmatprep.mubr.msk.f32.mxu1 %vm3541_vm0, %v3542_v6 }
 0x12e   :  { %v4593_v9 = vpop.f32.mrb[34].mxu0  ;;  %v4595_v12 = vpop.f32.mrb[34].mxu1 }
 0x12f   :  { %v2877_v18 = vpop.f32.mrb[35].mxu0  ;;  %3222 = vmatmul.mubr.msk.f32.gmra.mrb[140].mxu0 %vm82_vm4, %v1120_v60  ;;  %v3044_v30 = vpop.f32.mrb[35].mxu1  ;;  %3389 = vmatmul.mubr.msk.f32.gmra.mrb[140].mxu1 %vm82_vm4, %v1675_v61 }
 0x130   :  { %3224 = vmatprep.mubr.msk.f32.mxu0 %vm3541_vm0, %v3542_v6  ;;  %3391 = vmatprep.mubr.msk.f32.mxu1 %vm3541_vm0, %v3542_v6  ;;  %v1122_v18 = vld [vmem:[%s5462_s2 + $0xb8] sm:$0xff] }
 0x131   :  { %v1677_v30 = vld [vmem:[%s5463_s3 + $0xb8] sm:$0xff] }
 0x132   :  { %v4611_v41 = vpop.f32.mrb[36].mxu0  ;;  %v4613_v48 = vpop.f32.mrb[36].mxu1 }
 0x133   :  { %v2880_v58 = vpop.f32.mrb[37].mxu0  ;;  %3225 = vmatmul.mubr.msk.f32.gmra.mrb[142].mxu0 %vm82_vm4, %v1121_v34  ;;  %v3047_v61 = vpop.f32.mrb[37].mxu1  ;;  %3392 = vmatmul.mubr.msk.f32.gmra.mrb[142].mxu1 %vm82_vm4, %v1676_v37 }
 0x134   :  { %3227 = vmatprep.mubr.msk.f32.mxu0 %vm3541_vm0, %v3542_v6  ;;  %3394 = vmatprep.mubr.msk.f32.mxu1 %vm3541_vm0, %v3542_v6 }
 0x136   :  { %v4629_v58 = vpop.f32.mrb[38].mxu0  ;;  %v4631_v34 = vpop.f32.mrb[38].mxu1 }
 0x137   :  { %v2883_v61 = vpop.f32.mrb[39].mxu0  ;;  %3228 = vmatmul.mubr.msk.f32.gmra.mrb[144].mxu0 %vm82_vm4, %v1122_v18  ;;  %v3050_v60 = vpop.f32.mrb[39].mxu1  ;;  %3395 = vmatmul.mubr.msk.f32.gmra.mrb[144].mxu1 %vm82_vm4, %v1677_v30 }
 0x138   :  { %3230 = vmatprep.mubr.msk.f32.mxu0 %vm3541_vm0, %v3542_v6  ;;  %3397 = vmatprep.mubr.msk.f32.mxu1 %vm3541_vm0, %v3542_v6  ;;  %v1678_v61 = vld [vmem:[%s5463_s3 + $0xc0] sm:$0xff] }
 0x13a   :  { %v4647_v37 = vpop.f32.mrb[40].mxu0  ;;  %v4649_v18 = vpop.f32.mrb[40].mxu1 }
 0x13b   :  { %v2886_v60 = vpop.f32.mrb[41].mxu0  ;;  %3231 = vmatmul.mubr.msk.f32.gmra.mrb[146].mxu0 %vm82_vm4, %v1123_v20  ;;  %v3053_v54 = vpop.f32.mrb[41].mxu1  ;;  %3398 = vmatmul.mubr.msk.f32.gmra.mrb[146].mxu1 %vm82_vm4, %v1678_v61 }
 0x13c   :  { %3233 = vmatprep.mubr.msk.f32.mxu0 %vm3541_vm0, %v3542_v6  ;;  %3400 = vmatprep.mubr.msk.f32.mxu1 %vm3541_vm0, %v3542_v6  ;;  %v1679_v60 = vld [vmem:[%s5463_s3 + $0xc8] sm:$0xff] }
 0x13e   :  { %v4665_v30 = vpop.f32.mrb[42].mxu0  ;;  %v4667_v20 = vpop.f32.mrb[42].mxu1 }
 0x13f   :  { %v2889_v54 = vpop.f32.mrb[43].mxu0  ;;  %3234 = vmatmul.mubr.msk.f32.gmra.mrb[148].mxu0 %vm82_vm4, %v1124_v33  ;;  %v3056_v11 = vpop.f32.mrb[43].mxu1  ;;  %3401 = vmatmul.mubr.msk.f32.gmra.mrb[148].mxu1 %vm82_vm4, %v1679_v60 }
 0x140   :  { %3236 = vmatprep.mubr.msk.f32.mxu0 %vm3541_vm0, %v3542_v6  ;;  %3403 = vmatprep.mubr.msk.f32.mxu1 %vm3541_vm0, %v3542_v6  ;;  %v1680_v54 = vld [vmem:[%s5463_s3 + $0xd0] sm:$0xff] }
 0x142   :  { %v4683_v61 = vpop.f32.mrb[44].mxu0  ;;  %v4685_v33 = vpop.f32.mrb[44].mxu1 }
 0x143   :  { %v2892_v11 = vpop.f32.mrb[45].mxu0  ;;  %3237 = vmatmul.mubr.msk.f32.gmra.mrb[150].mxu0 %vm82_vm4, %v1125_v55  ;;  %v3059_v44 = vpop.f32.mrb[45].mxu1  ;;  %3404 = vmatmul.mubr.msk.f32.gmra.mrb[150].mxu1 %vm82_vm4, %v1680_v54 }
 0x144   :  { %3239 = vmatprep.mubr.msk.f32.mxu0 %vm3541_vm0, %v3542_v6  ;;  %3406 = vmatprep.mubr.msk.f32.mxu1 %vm3541_vm0, %v3542_v6  ;;  %v1681_v11 = vld [vmem:[%s5463_s3 + $0xd8] sm:$0xff] }
 0x146   :  { %v4701_v60 = vpop.f32.mrb[46].mxu0  ;;  %v4703_v55 = vpop.f32.mrb[46].mxu1 }
 0x147   :  { %v2895_v44 = vpop.f32.mrb[47].mxu0  ;;  %3240 = vmatmul.mubr.msk.f32.gmra.mrb[152].mxu0 %vm82_vm4, %v1126_v32  ;;  %v3062_v19 = vpop.f32.mrb[47].mxu1  ;;  %3407 = vmatmul.mubr.msk.f32.gmra.mrb[152].mxu1 %vm82_vm4, %v1681_v11 }
 0x148   :  { %3242 = vmatprep.mubr.msk.f32.mxu0 %vm3541_vm0, %v3542_v6  ;;  %3409 = vmatprep.mubr.msk.f32.mxu1 %vm3541_vm0, %v3542_v6  ;;  %v1682_v44 = vld [vmem:[%s5463_s3 + $0xe0] sm:$0xff] }
 0x14a   :  { %v4719_v54 = vpop.f32.mrb[48].mxu0  ;;  %v4721_v32 = vpop.f32.mrb[48].mxu1 }
 0x14b   :  { %5517 = vst [vmem:[#allocation2_spill] sm:$0xff] %v4721_v32  ;;  %v2898_v19 = vpop.f32.mrb[49].mxu0  ;;  %3243 = vmatmul.mubr.msk.f32.gmra.mrb[154].mxu0 %vm82_vm4, %v1127_v5  ;;  %v3065_v59 = vpop.f32.mrb[49].mxu1  ;;  %3410 = vmatmul.mubr.msk.f32.gmra.mrb[154].mxu1 %vm82_vm4, %v1682_v44 }
 0x14c   :  { %3245 = vmatprep.mubr.msk.f32.mxu0 %vm3541_vm0, %v3542_v6  ;;  %3412 = vmatprep.mubr.msk.f32.mxu1 %vm3541_vm0, %v3542_v6  ;;  %v1683_v19 = vld [vmem:[%s5463_s3 + $0xe8] sm:$0xff] }
 0x14e   :  { %v4737_v11 = vpop.f32.mrb[50].mxu0  ;;  %v4739_v5 = vpop.f32.mrb[50].mxu1 }
 0x14f   :  { %5518 = vst [vmem:[#allocation3_spill] sm:$0xff] %v4737_v11  ;;  %5519 = vst [vmem:[#allocation4_spill] sm:$0xff] %v4739_v5  ;;  %v2901_v59 = vpop.f32.mrb[51].mxu0  ;;  %3246 = vmatmul.mubr.msk.f32.gmra.mrb[156].mxu0 %vm82_vm4, %v1128_v52  ;;  %v3068_v45 = vpop.f32.mrb[51].mxu1  ;;  %3413 = vmatmul.mubr.msk.f32.gmra.mrb[156].mxu1 %vm82_vm4, %v1683_v19 }
 0x150   :  { %3248 = vmatprep.mubr.msk.f32.mxu0 %vm3541_vm0, %v3542_v6  ;;  %3415 = vmatprep.mubr.msk.f32.mxu1 %vm3541_vm0, %v3542_v6  ;;  %v1684_v59 = vld [vmem:[%s5463_s3 + $0xf0] sm:$0xff] }
 0x152   :  { %v4755_v44 = vpop.f32.mrb[52].mxu0  ;;  %v4757_v52 = vpop.f32.mrb[52].mxu1 }
 0x153   :  { %5520 = vst [vmem:[#allocation5_spill] sm:$0xff] %v4755_v44  ;;  %5521 = vst [vmem:[#allocation6_spill] sm:$0xff] %v4757_v52  ;;  %v2904_v45 = vpop.f32.mrb[53].mxu0  ;;  %3249 = vmatmul.mubr.msk.f32.gmra.mrb[158].mxu0 %vm82_vm4, %v1129_v38  ;;  %v3071_v31 = vpop.f32.mrb[53].mxu1  ;;  %3416 = vmatmul.mubr.msk.f32.gmra.mrb[158].mxu1 %vm82_vm4, %v1684_v59 }
 0x154   :  { %3251 = vmatprep.mubr.msk.f32.mxu0 %vm3541_vm0, %v3542_v6  ;;  %3418 = vmatprep.mubr.msk.f32.mxu1 %vm3541_vm0, %v3542_v6  ;;  %v1685_v45 = vld [vmem:[%s5463_s3 + $0xf8] sm:$0xff] }
 0x156   :  { %v4773_v19 = vpop.f32.mrb[54].mxu0  ;;  %v4775_v38 = vpop.f32.mrb[54].mxu1 }
 0x157   :  { %5522 = vst [vmem:[#allocation7_spill] sm:$0xff] %v4773_v19  ;;  %5523 = vst [vmem:[#allocation8_spill] sm:$0xff] %v4775_v38  ;;  %v2907_v31 = vpop.f32.mrb[55].mxu0  ;;  %3252 = vmatmul.mubr.msk.f32.gmra.mrb[160].mxu0 %vm82_vm4, %v1130_v24  ;;  %v3074_v17 = vpop.f32.mrb[55].mxu1  ;;  %3419 = vmatmul.mubr.msk.f32.gmra.mrb[160].mxu1 %vm82_vm4, %v1685_v45  ;;  %v1132_v38 = vld [vmem:[%s5462_s2 + $0x108] sm:$0xff] }
 0x158   :  { %3254 = vmatprep.mubr.msk.f32.mxu0 %vm3541_vm0, %v3542_v6  ;;  %3421 = vmatprep.mubr.msk.f32.mxu1 %vm3541_vm0, %v3542_v6  ;;  %v1686_v31 = vld [vmem:[%s5463_s3 + $0x100] sm:$0xff] }
 0x15a   :  { %v4791_v59 = vpop.f32.mrb[56].mxu0  ;;  %v4793_v24 = vpop.f32.mrb[56].mxu1 }
 0x15b   :  { %5524 = vst [vmem:[#allocation9_spill] sm:$0xff] %v4791_v59  ;;  %5525 = vst [vmem:[#allocation10_spill] sm:$0xff] %v4793_v24  ;;  %v2910_v17 = vpop.f32.mrb[57].mxu0  ;;  %3255 = vmatmul.mubr.msk.f32.gmra.mrb[162].mxu0 %vm82_vm4, %v1131_v10  ;;  %v3077_v2 = vpop.f32.mrb[57].mxu1  ;;  %3422 = vmatmul.mubr.msk.f32.gmra.mrb[162].mxu1 %vm82_vm4, %v1686_v31  ;;  %v1133_v59 = vld [vmem:[%s5462_s2 + $0x110] sm:$0xff] }
 0x15c   :  { %3257 = vmatprep.mubr.msk.f32.mxu0 %vm3541_vm0, %v3542_v6  ;;  %3424 = vmatprep.mubr.msk.f32.mxu1 %vm3541_vm0, %v3542_v6  ;;  %v1687_v17 = vld [vmem:[%s5463_s3 + $0x108] sm:$0xff] }
 0x15e   :  { %v4809_v45 = vpop.f32.mrb[58].mxu0  ;;  %v4811_v10 = vpop.f32.mrb[58].mxu1 }
 0x15f   :  { %5526 = vst [vmem:[#allocation11_spill] sm:$0xff] %v4809_v45  ;;  %5527 = vst [vmem:[#allocation12_spill] sm:$0xff] %v4811_v10  ;;  %v2913_v2 = vpop.f32.mrb[59].mxu0  ;;  %3258 = vmatmul.mubr.msk.f32.gmra.mrb[164].mxu0 %vm82_vm4, %v1132_v38  ;;  %v3080_v24 = vpop.f32.mrb[59].mxu1  ;;  %3425 = vmatmul.mubr.msk.f32.gmra.mrb[164].mxu1 %vm82_vm4, %v1687_v17  ;;  %v1134_v45 = vld [vmem:[%s5462_s2 + $0x118] sm:$0xff] }
 0x160   :  { %3260 = vmatprep.mubr.msk.f32.mxu0 %vm3541_vm0, %v3542_v6  ;;  %3427 = vmatprep.mubr.msk.f32.mxu1 %vm3541_vm0, %v3542_v6  ;;  %v1688_v2 = vld [vmem:[%s5463_s3 + $0x110] sm:$0xff] }
 0x162   :  { %v4827_v31 = vpop.f32.mrb[60].mxu0  ;;  %v4829_v38 = vpop.f32.mrb[60].mxu1 }
 0x163   :  { %5528 = vst [vmem:[#allocation13_spill] sm:$0xff] %v4827_v31  ;;  %5529 = vst [vmem:[#allocation14_spill] sm:$0xff] %v4829_v38  ;;  %v2916_v24 = vpop.f32.mrb[61].mxu0  ;;  %3261 = vmatmul.mubr.msk.f32.gmra.mrb[166].mxu0 %vm82_vm4, %v1133_v59  ;;  %v3083_v10 = vpop.f32.mrb[61].mxu1  ;;  %3428 = vmatmul.mubr.msk.f32.gmra.mrb[166].mxu1 %vm82_vm4, %v1688_v2  ;;  %v1135_v31 = vld [vmem:[%s5462_s2 + $0x120] sm:$0xff] }
 0x164   :  { %3263 = vmatprep.mubr.msk.f32.mxu0 %vm3541_vm0, %v3542_v6  ;;  %3430 = vmatprep.mubr.msk.f32.mxu1 %vm3541_vm0, %v3542_v6  ;;  %v1689_v24 = vld [vmem:[%s5463_s3 + $0x118] sm:$0xff] }
 0x166   :  { %v4845_v17 = vpop.f32.mrb[62].mxu0  ;;  %v4847_v59 = vpop.f32.mrb[62].mxu1 }
 0x167   :  { %5530 = vst [vmem:[#allocation15_spill] sm:$0xff] %v4845_v17  ;;  %5531 = vst [vmem:[#allocation16_spill] sm:$0xff] %v4847_v59  ;;  %v2919_v10 = vpop.f32.mrb[63].mxu0  ;;  %3264 = vmatmul.mubr.msk.f32.gmra.mrb[168].mxu0 %vm82_vm4, %v1134_v45  ;;  %v3086_v38 = vpop.f32.mrb[63].mxu1  ;;  %3431 = vmatmul.mubr.msk.f32.gmra.mrb[168].mxu1 %vm82_vm4, %v1689_v24  ;;  %v1136_v17 = vld [vmem:[%s5462_s2 + $0x128] sm:$0xff] }
 0x168   :  { %3266 = vmatprep.mubr.msk.f32.mxu0 %vm3541_vm0, %v3542_v6  ;;  %3433 = vmatprep.mubr.msk.f32.mxu1 %vm3541_vm0, %v3542_v6  ;;  %v1690_v10 = vld [vmem:[%s5463_s3 + $0x120] sm:$0xff] }
 0x16a   :  { %v4863_v2 = vpop.f32.mrb[64].mxu0  ;;  %v4865_v45 = vpop.f32.mrb[64].mxu1 }
 0x16b   :  { %5532 = vst [vmem:[#allocation17_spill] sm:$0xff] %v4863_v2  ;;  %5533 = vst [vmem:[#allocation18_spill] sm:$0xff] %v4865_v45  ;;  %v2922_v38 = vpop.f32.mrb[65].mxu0  ;;  %3267 = vmatmul.mubr.msk.f32.gmra.mrb[170].mxu0 %vm82_vm4, %v1135_v31  ;;  %v3089_v59 = vpop.f32.mrb[65].mxu1  ;;  %3434 = vmatmul.mubr.msk.f32.gmra.mrb[170].mxu1 %vm82_vm4, %v1690_v10  ;;  %v1137_v2 = vld [vmem:[%s5462_s2 + $0x130] sm:$0xff] }
 0x16c   :  { %3269 = vmatprep.mubr.msk.f32.mxu0 %vm3541_vm0, %v3542_v6  ;;  %3436 = vmatprep.mubr.msk.f32.mxu1 %vm3541_vm0, %v3542_v6  ;;  %v1691_v38 = vld [vmem:[%s5463_s3 + $0x128] sm:$0xff] }
 0x16e   :  { %v4881_v24 = vpop.f32.mrb[66].mxu0  ;;  %v4883_v31 = vpop.f32.mrb[66].mxu1 }
 0x16f   :  { %5534 = vst [vmem:[#allocation19_spill] sm:$0xff] %v4881_v24  ;;  %5535 = vst [vmem:[#allocation20_spill] sm:$0xff] %v4883_v31  ;;  %v2925_v59 = vpop.f32.mrb[67].mxu0  ;;  %3270 = vmatmul.mubr.msk.f32.gmra.mrb[172].mxu0 %vm82_vm4, %v1136_v17  ;;  %v3092_v45 = vpop.f32.mrb[67].mxu1  ;;  %3437 = vmatmul.mubr.msk.f32.gmra.mrb[172].mxu1 %vm82_vm4, %v1691_v38  ;;  %v1138_v24 = vld [vmem:[%s5462_s2 + $0x138] sm:$0xff] }
 0x170   :  { %3272 = vmatprep.mubr.msk.f32.mxu0 %vm3541_vm0, %v3542_v6  ;;  %3439 = vmatprep.mubr.msk.f32.mxu1 %vm3541_vm0, %v3542_v6  ;;  %v1692_v59 = vld [vmem:[%s5463_s3 + $0x130] sm:$0xff] }
 0x172   :  { %v4899_v10 = vpop.f32.mrb[68].mxu0  ;;  %v4901_v17 = vpop.f32.mrb[68].mxu1 }
 0x173   :  { %5536 = vst [vmem:[#allocation21_spill] sm:$0xff] %v4899_v10  ;;  %5537 = vst [vmem:[#allocation22_spill] sm:$0xff] %v4901_v17  ;;  %v2928_v45 = vpop.f32.mrb[69].mxu0  ;;  %3273 = vmatmul.mubr.msk.f32.gmra.mrb[174].mxu0 %vm82_vm4, %v1137_v2  ;;  %v3095_v31 = vpop.f32.mrb[69].mxu1  ;;  %3440 = vmatmul.mubr.msk.f32.gmra.mrb[174].mxu1 %vm82_vm4, %v1692_v59  ;;  %v1139_v10 = vld [vmem:[%s5462_s2 + $0x140] sm:$0xff] }
 0x174   :  { %3275 = vmatprep.mubr.msk.f32.mxu0 %vm3541_vm0, %v3542_v6  ;;  %3442 = vmatprep.mubr.msk.f32.mxu1 %vm3541_vm0, %v3542_v6  ;;  %v1693_v45 = vld [vmem:[%s5463_s3 + $0x138] sm:$0xff] }
 0x176   :  { %v4917_v38 = vpop.f32.mrb[70].mxu0  ;;  %v4919_v2 = vpop.f32.mrb[70].mxu1 }
 0x177   :  { %5538 = vst [vmem:[#allocation23_spill] sm:$0xff] %v4917_v38  ;;  %5539 = vst [vmem:[#allocation24_spill] sm:$0xff] %v4919_v2  ;;  %v2931_v31 = vpop.f32.mrb[71].mxu0  ;;  %3276 = vmatmul.mubr.msk.f32.gmra.mrb[176].mxu0 %vm82_vm4, %v1138_v24  ;;  %v3098_v17 = vpop.f32.mrb[71].mxu1  ;;  %3443 = vmatmul.mubr.msk.f32.gmra.mrb[176].mxu1 %vm82_vm4, %v1693_v45  ;;  %v1140_v38 = vld [vmem:[%s5462_s2 + $0x148] sm:$0xff] }
 0x178   :  { %3278 = vmatprep.mubr.msk.f32.mxu0 %vm3541_vm0, %v3542_v6  ;;  %3445 = vmatprep.mubr.msk.f32.mxu1 %vm3541_vm0, %v3542_v6  ;;  %v1694_v31 = vld [vmem:[%s5463_s3 + $0x140] sm:$0xff] }
 0x17a   :  { %v4935_v59 = vpop.f32.mrb[72].mxu0  ;;  %v4937_v24 = vpop.f32.mrb[72].mxu1 }
 0x17b   :  { %5540 = vst [vmem:[#allocation25_spill] sm:$0xff] %v4935_v59  ;;  %5541 = vst [vmem:[#allocation26_spill] sm:$0xff] %v4937_v24  ;;  %v2934_v17 = vpop.f32.mrb[73].mxu0  ;;  %3279 = vmatmul.mubr.msk.f32.gmra.mrb[178].mxu0 %vm82_vm4, %v1139_v10  ;;  %v3101_v2 = vpop.f32.mrb[73].mxu1  ;;  %3446 = vmatmul.mubr.msk.f32.gmra.mrb[178].mxu1 %vm82_vm4, %v1694_v31  ;;  %v1141_v59 = vld [vmem:[%s5462_s2 + $0x150] sm:$0xff] }
 0x17c   :  { %3281 = vmatprep.mubr.msk.f32.mxu0 %vm3541_vm0, %v3542_v6  ;;  %3448 = vmatprep.mubr.msk.f32.mxu1 %vm3541_vm0, %v3542_v6  ;;  %v1695_v17 = vld [vmem:[%s5463_s3 + $0x148] sm:$0xff] }
 0x17e   :  { %v4953_v45 = vpop.f32.mrb[74].mxu0  ;;  %v4955_v10 = vpop.f32.mrb[74].mxu1 }
 0x17f   :  { %5542 = vst [vmem:[#allocation27_spill] sm:$0xff] %v4953_v45  ;;  %5543 = vst [vmem:[#allocation28_spill] sm:$0xff] %v4955_v10  ;;  %v2937_v2 = vpop.f32.mrb[75].mxu0  ;;  %3282 = vmatmul.mubr.msk.f32.gmra.mrb[180].mxu0 %vm82_vm4, %v1140_v38  ;;  %v3104_v24 = vpop.f32.mrb[75].mxu1  ;;  %3449 = vmatmul.mubr.msk.f32.gmra.mrb[180].mxu1 %vm82_vm4, %v1695_v17  ;;  %v1142_v45 = vld [vmem:[%s5462_s2 + $0x158] sm:$0xff] }
 0x180   :  { %3284 = vmatprep.mubr.msk.f32.mxu0 %vm3541_vm0, %v3542_v6  ;;  %3451 = vmatprep.mubr.msk.f32.mxu1 %vm3541_vm0, %v3542_v6  ;;  %v1696_v2 = vld [vmem:[%s5463_s3 + $0x150] sm:$0xff] }
 0x182   :  { %v4971_v31 = vpop.f32.mrb[76].mxu0  ;;  %v4973_v38 = vpop.f32.mrb[76].mxu1 }
 0x183   :  { %5544 = vst [vmem:[#allocation29_spill] sm:$0xff] %v4971_v31  ;;  %5545 = vst [vmem:[#allocation30_spill] sm:$0xff] %v4973_v38  ;;  %v2940_v24 = vpop.f32.mrb[77].mxu0  ;;  %3285 = vmatmul.mubr.msk.f32.gmra.mrb[182].mxu0 %vm82_vm4, %v1141_v59  ;;  %v3107_v10 = vpop.f32.mrb[77].mxu1  ;;  %3452 = vmatmul.mubr.msk.f32.gmra.mrb[182].mxu1 %vm82_vm4, %v1696_v2  ;;  %v1143_v31 = vld [vmem:[%s5462_s2 + $0x160] sm:$0xff] }
 0x184   :  { %3287 = vmatprep.mubr.msk.f32.mxu0 %vm3541_vm0, %v3542_v6  ;;  %3454 = vmatprep.mubr.msk.f32.mxu1 %vm3541_vm0, %v3542_v6  ;;  %v1697_v24 = vld [vmem:[%s5463_s3 + $0x158] sm:$0xff] }
 0x186   :  { %v4989_v17 = vpop.f32.mrb[78].mxu0  ;;  %v4991_v59 = vpop.f32.mrb[78].mxu1 }
 0x187   :  { %5546 = vst [vmem:[#allocation31_spill] sm:$0xff] %v4989_v17  ;;  %5547 = vst [vmem:[#allocation32_spill] sm:$0xff] %v4991_v59  ;;  %v2943_v10 = vpop.f32.mrb[79].mxu0  ;;  %3288 = vmatmul.mubr.msk.f32.gmra.mrb[184].mxu0 %vm82_vm4, %v1142_v45  ;;  %v3110_v38 = vpop.f32.mrb[79].mxu1  ;;  %3455 = vmatmul.mubr.msk.f32.gmra.mrb[184].mxu1 %vm82_vm4, %v1697_v24  ;;  %v1144_v17 = vld [vmem:[%s5462_s2 + $0x168] sm:$0xff] }
 0x188   :  { %3290 = vmatprep.mubr.msk.f32.mxu0 %vm3541_vm0, %v3542_v6  ;;  %3457 = vmatprep.mubr.msk.f32.mxu1 %vm3541_vm0, %v3542_v6  ;;  %v1698_v10 = vld [vmem:[%s5463_s3 + $0x160] sm:$0xff] }
 0x18a   :  { %v5007_v2 = vpop.f32.mrb[80].mxu0  ;;  %v5009_v45 = vpop.f32.mrb[80].mxu1 }
 0x18b   :  { %5548 = vst [vmem:[#allocation33_spill] sm:$0xff] %v5007_v2  ;;  %5549 = vst [vmem:[#allocation34_spill] sm:$0xff] %v5009_v45  ;;  %v2946_v38 = vpop.f32.mrb[81].mxu0  ;;  %3291 = vmatmul.mubr.msk.f32.gmra.mrb[186].mxu0 %vm82_vm4, %v1143_v31  ;;  %v3113_v59 = vpop.f32.mrb[81].mxu1  ;;  %3458 = vmatmul.mubr.msk.f32.gmra.mrb[186].mxu1 %vm82_vm4, %v1698_v10  ;;  %v1145_v2 = vld [vmem:[%s5462_s2 + $0x170] sm:$0xff] }
 0x18c   :  { %3293 = vmatprep.mubr.msk.f32.mxu0 %vm3541_vm0, %v3542_v6  ;;  %3460 = vmatprep.mubr.msk.f32.mxu1 %vm3541_vm0, %v3542_v6  ;;  %v1699_v38 = vld [vmem:[%s5463_s3 + $0x168] sm:$0xff] }
 0x18e   :  { %v5025_v24 = vpop.f32.mrb[82].mxu0  ;;  %v5027_v31 = vpop.f32.mrb[82].mxu1 }
 0x18f   :  { %5550 = vst [vmem:[#allocation35_spill] sm:$0xff] %v5025_v24  ;;  %5551 = vst [vmem:[#allocation36_spill] sm:$0xff] %v5027_v31  ;;  %v2949_v59 = vpop.f32.mrb[83].mxu0  ;;  %3294 = vmatmul.mubr.msk.f32.gmra.mrb[188].mxu0 %vm82_vm4, %v1144_v17  ;;  %v3116_v45 = vpop.f32.mrb[83].mxu1  ;;  %3461 = vmatmul.mubr.msk.f32.gmra.mrb[188].mxu1 %vm82_vm4, %v1699_v38  ;;  %v1146_v24 = vld [vmem:[%s5462_s2 + $0x178] sm:$0xff] }
 0x190   :  { %3296 = vmatprep.mubr.msk.f32.mxu0 %vm3541_vm0, %v3542_v6  ;;  %3463 = vmatprep.mubr.msk.f32.mxu1 %vm3541_vm0, %v3542_v6  ;;  %v1700_v59 = vld [vmem:[%s5463_s3 + $0x170] sm:$0xff] }
 0x192   :  { %v5043_v10 = vpop.f32.mrb[84].mxu0  ;;  %v5045_v17 = vpop.f32.mrb[84].mxu1 }
 0x193   :  { %5552 = vst [vmem:[#allocation37_spill] sm:$0xff] %v5043_v10  ;;  %5553 = vst [vmem:[#allocation38_spill] sm:$0xff] %v5045_v17  ;;  %v2952_v45 = vpop.f32.mrb[85].mxu0  ;;  %3297 = vmatmul.mubr.msk.f32.gmra.mrb[190].mxu0 %vm82_vm4, %v1145_v2  ;;  %v3119_v31 = vpop.f32.mrb[85].mxu1  ;;  %3464 = vmatmul.mubr.msk.f32.gmra.mrb[190].mxu1 %vm82_vm4, %v1700_v59  ;;  %v1147_v10 = vld [vmem:[%s5462_s2 + $0x180] sm:$0xff] }
 0x194   :  { %3299 = vmatprep.mubr.msk.f32.mxu0 %vm3541_vm0, %v3542_v6  ;;  %3466 = vmatprep.mubr.msk.f32.mxu1 %vm3541_vm0, %v3542_v6  ;;  %v1701_v45 = vld [vmem:[%s5463_s3 + $0x178] sm:$0xff] }
 0x196   :  { %v5061_v38 = vpop.f32.mrb[86].mxu0  ;;  %v5063_v2 = vpop.f32.mrb[86].mxu1 }
 0x197   :  { %5554 = vst [vmem:[#allocation39_spill] sm:$0xff] %v5061_v38  ;;  %5555 = vst [vmem:[#allocation40_spill] sm:$0xff] %v5063_v2  ;;  %v2955_v31 = vpop.f32.mrb[87].mxu0  ;;  %3300 = vmatmul.mubr.msk.f32.gmra.mrb[192].mxu0 %vm82_vm4, %v1146_v24  ;;  %v3122_v17 = vpop.f32.mrb[87].mxu1  ;;  %3467 = vmatmul.mubr.msk.f32.gmra.mrb[192].mxu1 %vm82_vm4, %v1701_v45 }
 0x198   :  { %3302 = vmatprep.mubr.msk.f32.mxu0 %vm3541_vm0, %v3542_v6  ;;  %3469 = vmatprep.mubr.msk.f32.mxu1 %vm3541_vm0, %v3542_v6  ;;  %v1702_v31 = vld [vmem:[%s5463_s3 + $0x180] sm:$0xff] }
 0x19a   :  { %v5079_v59 = vpop.f32.mrb[88].mxu0  ;;  %v5081_v24 = vpop.f32.mrb[88].mxu1 }
 0x19b   :  { %5556 = vst [vmem:[#allocation41_spill] sm:$0xff] %v5079_v59  ;;  %5557 = vst [vmem:[#allocation42_spill] sm:$0xff] %v5081_v24  ;;  %v2958_v17 = vpop.f32.mrb[89].mxu0  ;;  %3303 = vmatmul.mubr.msk.f32.gmra.mrb[194].mxu0 %vm82_vm4, %v1147_v10  ;;  %v3125_v2 = vpop.f32.mrb[89].mxu1  ;;  %3470 = vmatmul.mubr.msk.f32.gmra.mrb[194].mxu1 %vm82_vm4, %v1702_v31 }
 0x19e   :  { %v5087_v38 = vpop.f32.mrb[90].mxu0  ;;  %v5089_v6 = vpop.f32.mrb[90].mxu1 }
 0x19f   :  { %5558 = vst [vmem:[#allocation43_spill] sm:$0xff] %v5087_v38  ;;  %5559 = vst [vmem:[#allocation44_spill] sm:$0xff] %v5089_v6  ;;  %v2961_v19 = vpop.f32.mrb[91].mxu0  ;;  %v3128_v44 = vpop.f32.mrb[91].mxu1 }
 0x1a2   :  { %v5093_v5 = vpop.f32.mrb[92].mxu0  ;;  %v5095_v17 = vpop.f32.mrb[92].mxu1 }
 0x1a3   :  { %5560 = vst [vmem:[#allocation45_spill] sm:$0xff] %v5093_v5  ;;  %5561 = vst [vmem:[#allocation46_spill] sm:$0xff] %v5095_v17  ;;  %v2964_v11 = vpop.f32.mrb[93].mxu0  ;;  %v3131_v2 = vpop.f32.mrb[93].mxu1  ;;  %v5566_v17 = vmax.f32 %v4287_v63, %v4289_v0 }
 0x1a6   :  { %v5099_v45 = vpop.f32.mrb[94].mxu0  ;;  %v5101_v31 = vpop.f32.mrb[94].mxu1 }
 0x1a7   :  { %5562 = vst [vmem:[#allocation47_spill] sm:$0xff] %v5099_v45  ;;  %5563 = vst [vmem:[#allocation48_spill] sm:$0xff] %v5101_v31  ;;  %v2967_v24 = vpop.f32.mrb[95].mxu0  ;;  %v3134_v59 = vpop.f32.mrb[95].mxu1 }
 0x1a8   :  { %v5117_v59 = vld [vmem:[%s5464_s5] ss:$0 sm:$0xff] }
 0x1aa   :  { %v5105_v52 = vpop.f32.mrb[96].mxu0  ;;  %v5107_v44 = vpop.f32.mrb[96].mxu1 }
 0x1ab   :  { %5564 = vst [vmem:[#allocation49_spill] sm:$0xff] %v5105_v52  ;;  %5565 = vst [vmem:[#allocation50_spill] sm:$0xff] %v5107_v44  ;;  %v2970_v6 = vpop.f32.mrb[97].mxu0  ;;  %v3137_v38 = vpop.f32.mrb[97].mxu1 }
 0x1ac   :  { %v5567_v38 = vmax.f32 %v4305_v7, %v4307_v8 }
 0x1ae   :  { %v1361_v10 = vpop.f32.mrb[98].mxu0  ;;  %v1916_v2 = vpop.f32.mrb[98].mxu1 }
 0x1af   :  { %v1605_v5 = vmax.f32 %v5566_v17, %v1361_v10  ;;  %v3160_v24 = vpop.f32.mrb[99].mxu0  ;;  %v3327_v32 = vpop.f32.mrb[99].mxu1  ;;  %v5568_v10 = vmax.f32 %v4323_v14, %v4325_v15 }
 0x1b1   :  { %v2160_v19 = vmax.f32 %v1605_v5, %v1916_v2 }
 0x1b2   :  { %v1366_v31 = vpop.f32.mrb[100].mxu0  ;;  %v1921_v6 = vpop.f32.mrb[100].mxu1 }
 0x1b3   :  { %v2216_v45 = vadd.f32 %v5117_v59, %v2160_v19  ;;  %v1606_v11 = vmax.f32 %v5567_v38, %v1366_v31  ;;  %v3163_v44 = vpop.f32.mrb[101].mxu0  ;;  %v3330_v52 = vpop.f32.mrb[101].mxu1 }
 0x1b4   :  { %v5569_v44 = vmax.f32 %v4341_v21, %v4343_v22 }
 0x1b5   :  { %v2265_v63 = vmax.f32 %v2216_v45, 0.0  ;;  %v2161_v0 = vmax.f32 %v1606_v11, %v1921_v6 }
 0x1b6   :  { %v1371_v17 = vpop.f32.mrb[102].mxu0  ;;  %v1926_v32 = vpop.f32.mrb[102].mxu1 }
 0x1b7   :  { %2314 = vst [vmem:[%s5465_s6] sm:$0xff] %v2265_v63  ;;  %v2217_v5 = vadd.f32 %v5117_v59, %v2161_v0  ;;  %v1607_v19 = vmax.f32 %v5568_v10, %v1371_v17  ;;  %v3166_v2 = vpop.f32.mrb[103].mxu0  ;;  %v3333_v24 = vpop.f32.mrb[103].mxu1 }
 0x1b9   :  { %v2266_v7 = vmax.f32 %v2217_v5, 0.0  ;;  %v2162_v8 = vmax.f32 %v1607_v19, %v1926_v32  ;;  %v5570_v32 = vmax.f32 %v4359_v28, %v4361_v29 }
 0x1ba   :  { %v1376_v31 = vpop.f32.mrb[104].mxu0  ;;  %v1931_v52 = vpop.f32.mrb[104].mxu1 }
 0x1bb   :  { %2315 = vst [vmem:[%s5465_s6 + $0x8] sm:$0xff] %v2266_v7  ;;  %v2218_v45 = vadd.f32 %v5117_v59, %v2162_v8  ;;  %v1608_v11 = vmax.f32 %v5569_v44, %v1376_v31  ;;  %v3169_v6 = vpop.f32.mrb[105].mxu0  ;;  %v3336_v38 = vpop.f32.mrb[105].mxu1  ;;  %v5571_v8 = vmax.f32 %v4377_v35, %v4379_v36 }
 0x1bc   :  { %v5572_v38 = vmax.f32 %v4395_v42, %v4397_v43 }
 0x1bd   :  { %v2267_v14 = vmax.f32 %v2218_v45, 0.0  ;;  %v2163_v15 = vmax.f32 %v1608_v11, %v1931_v52 }
 0x1be   :  { %v1381_v63 = vpop.f32.mrb[106].mxu0  ;;  %v1936_v0 = vpop.f32.mrb[106].mxu1 }
 0x1bf   :  { %2316 = vst [vmem:[%s5465_s6 + $0x10] sm:$0xff] %v2267_v14  ;;  %v2219_v17 = vadd.f32 %v5117_v59, %v2163_v15  ;;  %v1609_v5 = vmax.f32 %v5570_v32, %v1381_v63  ;;  %v3172_v10 = vpop.f32.mrb[107].mxu0  ;;  %v3339_v19 = vpop.f32.mrb[107].mxu1 }
 0x1c1   :  { %v2268_v21 = vmax.f32 %v2219_v17, 0.0  ;;  %v2164_v22 = vmax.f32 %v1609_v5, %v1936_v0  ;;  %v5573_v5 = vmax.f32 %v4413_v49, %v4415_v50 }
 0x1c2   :  { %v1386_v2 = vpop.f32.mrb[108].mxu0  ;;  %v1941_v24 = vpop.f32.mrb[108].mxu1 }
 0x1c3   :  { %2317 = vst [vmem:[%s5465_s6 + $0x18] sm:$0xff] %v2268_v21  ;;  %v2220_v7 = vadd.f32 %v5117_v59, %v2164_v22  ;;  %v1610_v31 = vmax.f32 %v5571_v8, %v1386_v2  ;;  %v3175_v52 = vpop.f32.mrb[109].mxu0  ;;  %v3342_v45 = vpop.f32.mrb[109].mxu1 }
 0x1c5   :  { %v2269_v28 = vmax.f32 %v2220_v7, 0.0  ;;  %v2165_v29 = vmax.f32 %v1610_v31, %v1941_v24  ;;  %v5574_v7 = vmax.f32 %v4431_v56, %v4433_v57 }
 0x1c6   :  { %v1391_v44 = vpop.f32.mrb[110].mxu0  ;;  %v1946_v11 = vpop.f32.mrb[110].mxu1 }
 0x1c7   :  { %2318 = vst [vmem:[%s5465_s6 + $0x20] sm:$0xff] %v2269_v28  ;;  %v2221_v6 = vadd.f32 %v5117_v59, %v2165_v29  ;;  %v1611_v14 = vmax.f32 %v5572_v38, %v1391_v44  ;;  %v3178_v15 = vpop.f32.mrb[111].mxu0  ;;  %v3345_v63 = vpop.f32.mrb[111].mxu1  ;;  %v5575_v44 = vmax.f32 %v4449_v1, %v4451_v3 }
 0x1c9   :  { %v2270_v35 = vmax.f32 %v2221_v6, 0.0  ;;  %v2166_v36 = vmax.f32 %v1611_v14, %v1946_v11 }
 0x1ca   :  { %v1396_v0 = vpop.f32.mrb[112].mxu0  ;;  %v1951_v17 = vpop.f32.mrb[112].mxu1 }
 0x1cb   :  { %2319 = vst [vmem:[%s5465_s6 + $0x28] sm:$0xff] %v2270_v35  ;;  %v2222_v32 = vadd.f32 %v5117_v59, %v2166_v36  ;;  %v1612_v10 = vmax.f32 %v5573_v5, %v1396_v0  ;;  %v3181_v19 = vpop.f32.mrb[113].mxu0  ;;  %v3348_v21 = vpop.f32.mrb[113].mxu1  ;;  %v5576_v35 = vmax.f32 %v4467_v13, %v4469_v16 }
 0x1cc   :  { %v5577_v19 = vmax.f32 %v4485_v26, %v4487_v27 }
 0x1cd   :  { %v2271_v42 = vmax.f32 %v2222_v32, 0.0  ;;  %v2167_v43 = vmax.f32 %v1612_v10, %v1951_v17 }
 0x1ce   :  { %v1401_v22 = vpop.f32.mrb[114].mxu0  ;;  %v1956_v2 = vpop.f32.mrb[114].mxu1 }
 0x1cf   :  { %2320 = vst [vmem:[%s5465_s6 + $0x30] sm:$0xff] %v2271_v42  ;;  %v2223_v24 = vadd.f32 %v5117_v59, %v2167_v43  ;;  %v1613_v8 = vmax.f32 %v5574_v7, %v1401_v22  ;;  %v3184_v31 = vpop.f32.mrb[115].mxu0  ;;  %v3351_v52 = vpop.f32.mrb[115].mxu1  ;;  %v5578_v7 = vmax.f32 %v4503_v39, %v4505_v40 }
 0x1d1   :  { %v2272_v49 = vmax.f32 %v2223_v24, 0.0  ;;  %v2168_v50 = vmax.f32 %v1613_v8, %v1956_v2 }
 0x1d2   :  { %v1406_v45 = vpop.f32.mrb[116].mxu0  ;;  %v1961_v28 = vpop.f32.mrb[116].mxu1 }
 0x1d3   :  { %2321 = vst [vmem:[%s5465_s6 + $0x38] sm:$0xff] %v2272_v49  ;;  %v2224_v29 = vadd.f32 %v5117_v59, %v2168_v50  ;;  %v1614_v11 = vmax.f32 %v5575_v44, %v1406_v45  ;;  %v3187_v6 = vpop.f32.mrb[117].mxu0  ;;  %v3354_v38 = vpop.f32.mrb[117].mxu1 }
 0x1d5   :  { %v2273_v56 = vmax.f32 %v2224_v29, 0.0  ;;  %v2169_v57 = vmax.f32 %v1614_v11, %v1961_v28  ;;  %v5579_v28 = vmax.f32 %v4521_v51, %v4523_v53 }
 0x1d6   :  { %v1411_v14 = vpop.f32.mrb[118].mxu0  ;;  %v1966_v15 = vpop.f32.mrb[118].mxu1 }
 0x1d7   :  { %2322 = vst [vmem:[%s5465_s6 + $0x40] sm:$0xff] %v2273_v56  ;;  %v2225_v63 = vadd.f32 %v5117_v59, %v2169_v57  ;;  %v1615_v36 = vmax.f32 %v5576_v35, %v1411_v14  ;;  %v3190_v0 = vpop.f32.mrb[119].mxu0  ;;  %v3357_v17 = vpop.f32.mrb[119].mxu1  ;;  %v5580_v57 = vmax.f32 %v4539_v62, %v4541_v4 }
 0x1d8   :  { %v5581_v17 = vmax.f32 %v4557_v23, %v4559_v25 }
 0x1d9   :  { %v2274_v1 = vmax.f32 %v2225_v63, 0.0  ;;  %v2170_v3 = vmax.f32 %v1615_v36, %v1966_v15 }
 0x1da   :  { %v1416_v32 = vpop.f32.mrb[120].mxu0  ;;  %v1971_v5 = vpop.f32.mrb[120].mxu1 }
 0x1db   :  { %2323 = vst [vmem:[%s5465_s6 + $0x48] sm:$0xff] %v2274_v1  ;;  %v2226_v10 = vadd.f32 %v5117_v59, %v2170_v3  ;;  %v1616_v21 = vmax.f32 %v5577_v19, %v1416_v32  ;;  %v3193_v42 = vpop.f32.mrb[121].mxu0  ;;  %v3360_v43 = vpop.f32.mrb[121].mxu1 }
 0x1dd   :  { %v2275_v13 = vmax.f32 %v2226_v10, 0.0  ;;  %v2171_v16 = vmax.f32 %v1616_v21, %v1971_v5  ;;  %v5582_v21 = vmax.f32 %v4575_v46, %v4577_v47 }
 0x1de   :  { %v1421_v22 = vpop.f32.mrb[122].mxu0  ;;  %v1976_v2 = vpop.f32.mrb[122].mxu1 }
 0x1df   :  { %2324 = vst [vmem:[%s5465_s6 + $0x50] sm:$0xff] %v2275_v13  ;;  %v2227_v24 = vadd.f32 %v5117_v59, %v2171_v16  ;;  %v1617_v8 = vmax.f32 %v5578_v7, %v1421_v22  ;;  %v3196_v31 = vpop.f32.mrb[123].mxu0  ;;  %v3363_v52 = vpop.f32.mrb[123].mxu1 }
 0x1e1   :  { %v2276_v26 = vmax.f32 %v2227_v24, 0.0  ;;  %v2172_v27 = vmax.f32 %v1617_v8, %v1976_v2  ;;  %v5583_v24 = vmax.f32 %v4593_v9, %v4595_v12 }
 0x1e2   :  { %v1426_v49 = vpop.f32.mrb[124].mxu0  ;;  %v1981_v50 = vpop.f32.mrb[124].mxu1 }
 0x1e3   :  { %2325 = vst [vmem:[%s5465_s6 + $0x58] sm:$0xff] %v2276_v26  ;;  %v2228_v45 = vadd.f32 %v5117_v59, %v2172_v27  ;;  %v1618_v29 = vmax.f32 %v5579_v28, %v1426_v49  ;;  %v3199_v44 = vpop.f32.mrb[125].mxu0  ;;  %v3366_v11 = vpop.f32.mrb[125].mxu1  ;;  %v5584_v49 = vmax.f32 %v4611_v41, %v4613_v48 }
 0x1e5   :  { %v2277_v39 = vmax.f32 %v2228_v45, 0.0  ;;  %v2173_v40 = vmax.f32 %v1618_v29, %v1981_v50 }
 0x1e6   :  { %v1431_v6 = vpop.f32.mrb[126].mxu0  ;;  %v1986_v38 = vpop.f32.mrb[126].mxu1 }
 0x1e7   :  { %2326 = vst [vmem:[%s5465_s6 + $0x60] sm:$0xff] %v2277_v39  ;;  %v2229_v56 = vadd.f32 %v5117_v59, %v2173_v40  ;;  %v1619_v14 = vmax.f32 %v5580_v57, %v1431_v6  ;;  %v3202_v15 = vpop.f32.mrb[127].mxu0  ;;  %v3369_v63 = vpop.f32.mrb[127].mxu1  ;;  %v5585_v39 = vmax.f32 %v4629_v58, %v4631_v34 }
 0x1e8   :  { %v5586_v15 = vmax.f32 %v4647_v37, %v4649_v18 }
 0x1e9   :  { %v2278_v51 = vmax.f32 %v2229_v56, 0.0  ;;  %v2174_v53 = vmax.f32 %v1619_v14, %v1986_v38 }
 0x1ea   :  { %v1436_v35 = vpop.f32.mrb[128].mxu0  ;;  %v1991_v36 = vpop.f32.mrb[128].mxu1 }
 0x1eb   :  { %2327 = vst [vmem:[%s5465_s6 + $0x68] sm:$0xff] %v2278_v51  ;;  %v2230_v0 = vadd.f32 %v5117_v59, %v2174_v53  ;;  %v1620_v1 = vmax.f32 %v5581_v17, %v1436_v35  ;;  %v3205_v3 = vpop.f32.mrb[129].mxu0  ;;  %v3372_v32 = vpop.f32.mrb[129].mxu1  ;;  %v5587_v17 = vmax.f32 %v4665_v30, %v4667_v20 }
 0x1ed   :  { %v2279_v62 = vmax.f32 %v2230_v0, 0.0  ;;  %v2175_v4 = vmax.f32 %v1620_v1, %v1991_v36 }
 0x1ee   :  { %v1441_v5 = vpop.f32.mrb[130].mxu0  ;;  %v1996_v10 = vpop.f32.mrb[130].mxu1 }
 0x1ef   :  { %2328 = vst [vmem:[%s5465_s6 + $0x70] sm:$0xff] %v2279_v62  ;;  %v2231_v19 = vadd.f32 %v5117_v59, %v2175_v4  ;;  %v1621_v42 = vmax.f32 %v5582_v21, %v1441_v5  ;;  %v3208_v43 = vpop.f32.mrb[131].mxu0  ;;  %v3375_v13 = vpop.f32.mrb[131].mxu1 }
 0x1f1   :  { %v2280_v23 = vmax.f32 %v2231_v19, 0.0  ;;  %v2176_v25 = vmax.f32 %v1621_v42, %v1996_v10  ;;  %v5588_v10 = vmax.f32 %v4683_v61, %v4685_v33 }
 0x1f2   :  { %v1446_v16 = vpop.f32.mrb[132].mxu0  ;;  %v2001_v22 = vpop.f32.mrb[132].mxu1 }
 0x1f3   :  { %2329 = vst [vmem:[%s5465_s6 + $0x78] sm:$0xff] %v2280_v23  ;;  %v2232_v2 = vadd.f32 %v5117_v59, %v2176_v25  ;;  %v1622_v7 = vmax.f32 %v5583_v24, %v1446_v16  ;;  %v3211_v8 = vpop.f32.mrb[133].mxu0  ;;  %v3378_v31 = vpop.f32.mrb[133].mxu1  ;;  %v5589_v25 = vmax.f32 %v4701_v60, %v4703_v55 }
 0x1f4   :  { %v5590_v31 = vld [vmem:[#allocation2_spill] sm:$0xff] }
 0x1f5   :  { %v2281_v46 = vmax.f32 %v2232_v2, 0.0  ;;  %v2177_v47 = vmax.f32 %v1622_v7, %v2001_v22 }
 0x1f6   :  { %v1451_v52 = vpop.f32.mrb[134].mxu0  ;;  %v2006_v26 = vpop.f32.mrb[134].mxu1 }
 0x1f7   :  { %2330 = vst [vmem:[%s5465_s6 + $0x80] sm:$0xff] %v2281_v46  ;;  %v2233_v27 = vadd.f32 %v5117_v59, %v2177_v47  ;;  %v1623_v50 = vmax.f32 %v5584_v49, %v1451_v52  ;;  %v3214_v45 = vpop.f32.mrb[135].mxu0  ;;  %v3381_v28 = vpop.f32.mrb[135].mxu1  ;;  %v5591_v46 = vmax.f32 %v4719_v54, %v5590_v31 }
 0x1f8   :  { %v5592_v45 = vld [vmem:[#allocation3_spill] sm:$0xff]  ;;  %v5593_v28 = vld [vmem:[#allocation4_spill] sm:$0xff] }
 0x1f9   :  { %v2282_v9 = vmax.f32 %v2233_v27, 0.0  ;;  %v2178_v12 = vmax.f32 %v1623_v50, %v2006_v26 }
 0x1fa   :  { %v1456_v29 = vpop.f32.mrb[136].mxu0  ;;  %v2011_v44 = vpop.f32.mrb[136].mxu1 }
 0x1fb   :  { %2331 = vst [vmem:[%s5465_s6 + $0x88] sm:$0xff] %v2282_v9  ;;  %v2234_v11 = vadd.f32 %v5117_v59, %v2178_v12  ;;  %v1624_v40 = vmax.f32 %v5585_v39, %v1456_v29  ;;  %v3217_v6 = vpop.f32.mrb[137].mxu0  ;;  %v3384_v38 = vpop.f32.mrb[137].mxu1  ;;  %v5594_v9 = vmax.f32 %v5592_v45, %v5593_v28 }
 0x1fc   :  { %v5595_v38 = vld [vmem:[#allocation5_spill] sm:$0xff] }
 0x1fd   :  { %v2283_v41 = vmax.f32 %v2234_v11, 0.0  ;;  %v2179_v48 = vmax.f32 %v1624_v40, %v2011_v44 }
 0x1fe   :  { %v1461_v56 = vpop.f32.mrb[138].mxu0  ;;  %v2016_v57 = vpop.f32.mrb[138].mxu1 }
 0x1ff   :  { %2332 = vst [vmem:[%s5465_s6 + $0x90] sm:$0xff] %v2283_v41  ;;  %v2235_v14 = vadd.f32 %v5117_v59, %v2179_v48  ;;  %v1625_v63 = vmax.f32 %v5586_v15, %v1461_v56  ;;  %v3220_v51 = vpop.f32.mrb[139].mxu0  ;;  %v3387_v53 = vpop.f32.mrb[139].mxu1  ;;  %v5596_v41 = vld [vmem:[#allocation6_spill] sm:$0xff] }
 0x200   :  { %v5597_v48 = vmax.f32 %v5595_v38, %v5596_v41 }
 0x201   :  { %v2284_v58 = vmax.f32 %v2235_v14, 0.0  ;;  %v2180_v34 = vmax.f32 %v1625_v63, %v2016_v57 }
 0x202   :  { %v1466_v35 = vpop.f32.mrb[140].mxu0  ;;  %v2021_v36 = vpop.f32.mrb[140].mxu1 }
 0x203   :  { %2333 = vst [vmem:[%s5465_s6 + $0x98] sm:$0xff] %v2284_v58  ;;  %v2236_v0 = vadd.f32 %v5117_v59, %v2180_v34  ;;  %v1626_v1 = vmax.f32 %v5587_v17, %v1466_v35  ;;  %v3223_v3 = vpop.f32.mrb[141].mxu0  ;;  %v3390_v32 = vpop.f32.mrb[141].mxu1  ;;  %v5598_v34 = vld [vmem:[#allocation7_spill] sm:$0xff]  ;;  %v5599_v35 = vld [vmem:[#allocation8_spill] sm:$0xff] }
 0x205   :  { %v2285_v37 = vmax.f32 %v2236_v0, 0.0  ;;  %v2181_v18 = vmax.f32 %v1626_v1, %v2021_v36  ;;  %v5600_v36 = vmax.f32 %v5598_v34, %v5599_v35 }
 0x206   :  { %v1471_v62 = vpop.f32.mrb[142].mxu0  ;;  %v2026_v4 = vpop.f32.mrb[142].mxu1 }
 0x207   :  { %2334 = vst [vmem:[%s5465_s6 + $0xa0] sm:$0xff] %v2285_v37  ;;  %v2237_v5 = vadd.f32 %v5117_v59, %v2181_v18  ;;  %v1627_v19 = vmax.f32 %v5588_v10, %v1471_v62  ;;  %v3226_v21 = vpop.f32.mrb[143].mxu0  ;;  %v3393_v42 = vpop.f32.mrb[143].mxu1 }
 0x209   :  { %v2286_v30 = vmax.f32 %v2237_v5, 0.0  ;;  %v2182_v20 = vmax.f32 %v1627_v19, %v2026_v4  ;;  %v5601_v4 = vld [vmem:[#allocation9_spill] sm:$0xff]  ;;  %v5602_v5 = vld [vmem:[#allocation10_spill] sm:$0xff] }
 0x20a   :  { %v1476_v43 = vpop.f32.mrb[144].mxu0  ;;  %v2031_v13 = vpop.f32.mrb[144].mxu1  ;;  %v5603_v10 = vmax.f32 %v5601_v4, %v5602_v5 }
 0x20b   :  { %2335 = vst [vmem:[%s5465_s6 + $0xa8] sm:$0xff] %v2286_v30  ;;  %v2238_v23 = vadd.f32 %v5117_v59, %v2182_v20  ;;  %v1628_v16 = vmax.f32 %v5589_v25, %v1476_v43  ;;  %v3229_v22 = vpop.f32.mrb[145].mxu0  ;;  %v3396_v2 = vpop.f32.mrb[145].mxu1  ;;  %v5604_v25 = vld [vmem:[#allocation11_spill] sm:$0xff] }
 0x20d   :  { %v2287_v61 = vmax.f32 %v2238_v23, 0.0  ;;  %v2183_v33 = vmax.f32 %v1628_v16, %v2031_v13  ;;  %v5605_v16 = vld [vmem:[#allocation12_spill] sm:$0xff] }
 0x20e   :  { %v1481_v24 = vpop.f32.mrb[146].mxu0  ;;  %v2036_v7 = vpop.f32.mrb[146].mxu1  ;;  %v5606_v22 = vmax.f32 %v5604_v25, %v5605_v16 }
 0x20f   :  { %2336 = vst [vmem:[%s5465_s6 + $0xb0] sm:$0xff] %v2287_v61  ;;  %v2239_v8 = vadd.f32 %v5117_v59, %v2183_v33  ;;  %v1629_v47 = vmax.f32 %v5591_v46, %v1481_v24  ;;  %v3232_v52 = vpop.f32.mrb[147].mxu0  ;;  %v3399_v26 = vpop.f32.mrb[147].mxu1 }
 0x210   :  { %v5608_v52 = vld [vmem:[#allocation14_spill] sm:$0xff] }
 0x211   :  { %v2288_v60 = vmax.f32 %v2239_v8, 0.0  ;;  %v2184_v55 = vmax.f32 %v1629_v47, %v2036_v7  ;;  %v5607_v47 = vld [vmem:[#allocation13_spill] sm:$0xff] }
 0x212   :  { %v1486_v27 = vpop.f32.mrb[148].mxu0  ;;  %v2041_v49 = vpop.f32.mrb[148].mxu1  ;;  %v5609_v26 = vmax.f32 %v5607_v47, %v5608_v52 }
 0x213   :  { %2337 = vst [vmem:[%s5465_s6 + $0xb8] sm:$0xff] %v2288_v60  ;;  %v2240_v50 = vadd.f32 %v5117_v59, %v2184_v55  ;;  %v1630_v12 = vmax.f32 %v5594_v9, %v1486_v27  ;;  %v3235_v29 = vpop.f32.mrb[149].mxu0  ;;  %v3402_v44 = vpop.f32.mrb[149].mxu1 }
 0x214   :  { %v5611_v29 = vld [vmem:[#allocation16_spill] sm:$0xff] }
 0x215   :  { %v2289_v54 = vmax.f32 %v2240_v50, 0.0  ;;  %v2185_v11 = vmax.f32 %v1630_v12, %v2041_v49  ;;  %v5610_v12 = vld [vmem:[#allocation15_spill] sm:$0xff] }
 0x216   :  { %v1491_v39 = vpop.f32.mrb[150].mxu0  ;;  %v2046_v40 = vpop.f32.mrb[150].mxu1  ;;  %v5612_v44 = vmax.f32 %v5610_v12, %v5611_v29 }
 0x217   :  { %2338 = vst [vmem:[%s5465_s6 + $0xc0] sm:$0xff] %v2289_v54  ;;  %v2241_v6 = vadd.f32 %v5117_v59, %v2185_v11  ;;  %v1631_v56 = vmax.f32 %v5597_v48, %v1491_v39  ;;  %v3238_v57 = vpop.f32.mrb[151].mxu0  ;;  %v3405_v14 = vpop.f32.mrb[151].mxu1 }
 0x218   :  { %v5614_v57 = vld [vmem:[#allocation18_spill] sm:$0xff] }
 0x219   :  { %v2290_v15 = vmax.f32 %v2241_v6, 0.0  ;;  %v2186_v63 = vmax.f32 %v1631_v56, %v2046_v40  ;;  %v5613_v56 = vld [vmem:[#allocation17_spill] sm:$0xff] }
 0x21a   :  { %v1496_v51 = vpop.f32.mrb[152].mxu0  ;;  %v2051_v53 = vpop.f32.mrb[152].mxu1  ;;  %v5615_v14 = vmax.f32 %v5613_v56, %v5614_v57 }
 0x21b   :  { %2339 = vst [vmem:[%s5465_s6 + $0xc8] sm:$0xff] %v2290_v15  ;;  %v2242_v58 = vadd.f32 %v5117_v59, %v2186_v63  ;;  %v1632_v0 = vmax.f32 %v5600_v36, %v1496_v51  ;;  %v3241_v17 = vpop.f32.mrb[153].mxu0  ;;  %v3408_v1 = vpop.f32.mrb[153].mxu1 }
 0x21c   :  { %v5617_v17 = vld [vmem:[#allocation20_spill] sm:$0xff] }
 0x21d   :  { %v2291_v3 = vmax.f32 %v2242_v58, 0.0  ;;  %v2187_v32 = vmax.f32 %v1632_v0, %v2051_v53  ;;  %v5616_v0 = vld [vmem:[#allocation19_spill] sm:$0xff] }
 0x21e   :  { %v1501_v37 = vpop.f32.mrb[154].mxu0  ;;  %v2056_v18 = vpop.f32.mrb[154].mxu1  ;;  %v5618_v1 = vmax.f32 %v5616_v0, %v5617_v17 }
 0x21f   :  { %2340 = vst [vmem:[%s5465_s6 + $0xd0] sm:$0xff] %v2291_v3  ;;  %v2243_v62 = vadd.f32 %v5117_v59, %v2187_v32  ;;  %v1633_v19 = vmax.f32 %v5603_v10, %v1501_v37  ;;  %v3244_v21 = vpop.f32.mrb[155].mxu0  ;;  %v3411_v42 = vpop.f32.mrb[155].mxu1 }
 0x220   :  { %v5620_v21 = vld [vmem:[#allocation22_spill] sm:$0xff] }
 0x221   :  { %v2292_v30 = vmax.f32 %v2243_v62, 0.0  ;;  %v2188_v20 = vmax.f32 %v1633_v19, %v2056_v18  ;;  %v5619_v19 = vld [vmem:[#allocation21_spill] sm:$0xff] }
 0x222   :  { %v1506_v43 = vpop.f32.mrb[156].mxu0  ;;  %v2061_v13 = vpop.f32.mrb[156].mxu1  ;;  %v5621_v42 = vmax.f32 %v5619_v19, %v5620_v21 }
 0x223   :  { %2341 = vst [vmem:[%s5465_s6 + $0xd8] sm:$0xff] %v2292_v30  ;;  %v2244_v23 = vadd.f32 %v5117_v59, %v2188_v20  ;;  %v1634_v2 = vmax.f32 %v5606_v22, %v1506_v43  ;;  %v3247_v61 = vpop.f32.mrb[157].mxu0  ;;  %v3414_v33 = vpop.f32.mrb[157].mxu1 }
 0x224   :  { %v5623_v61 = vld [vmem:[#allocation24_spill] sm:$0xff] }
 0x225   :  { %v2293_v24 = vmax.f32 %v2244_v23, 0.0  ;;  %v2189_v7 = vmax.f32 %v1634_v2, %v2061_v13  ;;  %v5622_v2 = vld [vmem:[#allocation23_spill] sm:$0xff] }
 0x226   :  { %v1511_v8 = vpop.f32.mrb[158].mxu0  ;;  %v2066_v31 = vpop.f32.mrb[158].mxu1  ;;  %v5624_v33 = vmax.f32 %v5622_v2, %v5623_v61 }
 0x227   :  { %2342 = vst [vmem:[%s5465_s6 + $0xe0] sm:$0xff] %v2293_v24  ;;  %v2245_v46 = vadd.f32 %v5117_v59, %v2189_v7  ;;  %v1635_v60 = vmax.f32 %v5609_v26, %v1511_v8  ;;  %v3250_v55 = vpop.f32.mrb[159].mxu0  ;;  %v3417_v27 = vpop.f32.mrb[159].mxu1 }
 0x228   :  { %v5626_v55 = vld [vmem:[#allocation26_spill] sm:$0xff] }
 0x229   :  { %v2294_v49 = vmax.f32 %v2245_v46, 0.0  ;;  %v2190_v50 = vmax.f32 %v1635_v60, %v2066_v31  ;;  %v5625_v60 = vld [vmem:[#allocation25_spill] sm:$0xff] }
 0x22a   :  { %v1516_v45 = vpop.f32.mrb[160].mxu0  ;;  %v2071_v28 = vpop.f32.mrb[160].mxu1  ;;  %v5627_v27 = vmax.f32 %v5625_v60, %v5626_v55 }
 0x22b   :  { %2343 = vst [vmem:[%s5465_s6 + $0xe8] sm:$0xff] %v2294_v49  ;;  %v2246_v9 = vadd.f32 %v5117_v59, %v2190_v50  ;;  %v1636_v54 = vmax.f32 %v5612_v44, %v1516_v45  ;;  %v3253_v11 = vpop.f32.mrb[161].mxu0  ;;  %v3420_v39 = vpop.f32.mrb[161].mxu1 }
 0x22c   :  { %v5629_v11 = vld [vmem:[#allocation28_spill] sm:$0xff] }
 0x22d   :  { %v2295_v40 = vmax.f32 %v2246_v9, 0.0  ;;  %v2191_v6 = vmax.f32 %v1636_v54, %v2071_v28  ;;  %v5628_v54 = vld [vmem:[#allocation27_spill] sm:$0xff] }
 0x22e   :  { %v1521_v38 = vpop.f32.mrb[162].mxu0  ;;  %v2076_v41 = vpop.f32.mrb[162].mxu1  ;;  %v5630_v39 = vmax.f32 %v5628_v54, %v5629_v11 }
 0x22f   :  { %2344 = vst [vmem:[%s5465_s6 + $0xf0] sm:$0xff] %v2295_v40  ;;  %v2247_v48 = vadd.f32 %v5117_v59, %v2191_v6  ;;  %v1637_v15 = vmax.f32 %v5615_v14, %v1521_v38  ;;  %v3256_v63 = vpop.f32.mrb[163].mxu0  ;;  %v3423_v51 = vpop.f32.mrb[163].mxu1 }
 0x230   :  { %v5632_v63 = vld [vmem:[#allocation30_spill] sm:$0xff] }
 0x231   :  { %v2296_v53 = vmax.f32 %v2247_v48, 0.0  ;;  %v2192_v58 = vmax.f32 %v1637_v15, %v2076_v41  ;;  %v5631_v15 = vld [vmem:[#allocation29_spill] sm:$0xff] }
 0x232   :  { %v1526_v34 = vpop.f32.mrb[164].mxu0  ;;  %v2081_v35 = vpop.f32.mrb[164].mxu1  ;;  %v5633_v51 = vmax.f32 %v5631_v15, %v5632_v63 }
 0x233   :  { %2345 = vst [vmem:[%s5465_s6 + $0xf8] sm:$0xff] %v2296_v53  ;;  %v2248_v36 = vadd.f32 %v5117_v59, %v2192_v58  ;;  %v1638_v3 = vmax.f32 %v5618_v1, %v1526_v34  ;;  %v3259_v32 = vpop.f32.mrb[165].mxu0  ;;  %v3426_v37 = vpop.f32.mrb[165].mxu1 }
 0x234   :  { %v5635_v32 = vld [vmem:[#allocation32_spill] sm:$0xff] }
 0x235   :  { %v2297_v18 = vmax.f32 %v2248_v36, 0.0  ;;  %v2193_v62 = vmax.f32 %v1638_v3, %v2081_v35  ;;  %v5634_v3 = vld [vmem:[#allocation31_spill] sm:$0xff] }
 0x236   :  { %v1531_v4 = vpop.f32.mrb[166].mxu0  ;;  %v2086_v5 = vpop.f32.mrb[166].mxu1  ;;  %v5636_v37 = vmax.f32 %v5634_v3, %v5635_v32 }
 0x237   :  { %2346 = vst [vmem:[%s5465_s6 + $0x100] sm:$0xff] %v2297_v18  ;;  %v2249_v10 = vadd.f32 %v5117_v59, %v2193_v62  ;;  %v1639_v30 = vmax.f32 %v5621_v42, %v1531_v4  ;;  %v3262_v20 = vpop.f32.mrb[167].mxu0  ;;  %v3429_v43 = vpop.f32.mrb[167].mxu1 }
 0x238   :  { %v5638_v20 = vld [vmem:[#allocation34_spill] sm:$0xff] }
 0x239   :  { %v2298_v13 = vmax.f32 %v2249_v10, 0.0  ;;  %v2194_v23 = vmax.f32 %v1639_v30, %v2086_v5  ;;  %v5637_v30 = vld [vmem:[#allocation33_spill] sm:$0xff] }
 0x23a   :  { %v1536_v25 = vpop.f32.mrb[168].mxu0  ;;  %v2091_v16 = vpop.f32.mrb[168].mxu1  ;;  %v5639_v43 = vmax.f32 %v5637_v30, %v5638_v20 }
 0x23b   :  { %2347 = vst [vmem:[%s5465_s6 + $0x108] sm:$0xff] %v2298_v13  ;;  %v2250_v22 = vadd.f32 %v5117_v59, %v2194_v23  ;;  %v1640_v24 = vmax.f32 %v5624_v33, %v1536_v25  ;;  %v3265_v7 = vpop.f32.mrb[169].mxu0  ;;  %v3432_v8 = vpop.f32.mrb[169].mxu1 }
 0x23c   :  { %v5641_v7 = vld [vmem:[#allocation36_spill] sm:$0xff] }
 0x23d   :  { %v2299_v31 = vmax.f32 %v2250_v22, 0.0  ;;  %v2195_v46 = vmax.f32 %v1640_v24, %v2091_v16  ;;  %v5640_v24 = vld [vmem:[#allocation35_spill] sm:$0xff] }
 0x23e   :  { %v1541_v47 = vpop.f32.mrb[170].mxu0  ;;  %v2096_v52 = vpop.f32.mrb[170].mxu1  ;;  %v5642_v8 = vmax.f32 %v5640_v24, %v5641_v7 }
 0x23f   :  { %2348 = vst [vmem:[%s5465_s6 + $0x110] sm:$0xff] %v2299_v31  ;;  %v2251_v26 = vadd.f32 %v5117_v59, %v2195_v46  ;;  %v1641_v49 = vmax.f32 %v5627_v27, %v1541_v47  ;;  %v3268_v50 = vpop.f32.mrb[171].mxu0  ;;  %v3435_v45 = vpop.f32.mrb[171].mxu1 }
 0x240   :  { %v5644_v50 = vld [vmem:[#allocation38_spill] sm:$0xff] }
 0x241   :  { %v2300_v28 = vmax.f32 %v2251_v26, 0.0  ;;  %v2196_v9 = vmax.f32 %v1641_v49, %v2096_v52  ;;  %v5643_v49 = vld [vmem:[#allocation37_spill] sm:$0xff] }
 0x242   :  { %v1546_v12 = vpop.f32.mrb[172].mxu0  ;;  %v2101_v29 = vpop.f32.mrb[172].mxu1  ;;  %v5645_v45 = vmax.f32 %v5643_v49, %v5644_v50 }
 0x243   :  { %2349 = vst [vmem:[%s5465_s6 + $0x118] sm:$0xff] %v2300_v28  ;;  %v2252_v44 = vadd.f32 %v5117_v59, %v2196_v9  ;;  %v1642_v40 = vmax.f32 %v5630_v39, %v1546_v12  ;;  %v3271_v6 = vpop.f32.mrb[173].mxu0  ;;  %v3438_v38 = vpop.f32.mrb[173].mxu1 }
 0x244   :  { %v5647_v6 = vld [vmem:[#allocation40_spill] sm:$0xff] }
 0x245   :  { %v2301_v41 = vmax.f32 %v2252_v44, 0.0  ;;  %v2197_v48 = vmax.f32 %v1642_v40, %v2101_v29  ;;  %v5646_v40 = vld [vmem:[#allocation39_spill] sm:$0xff] }
 0x246   :  { %v1551_v56 = vpop.f32.mrb[174].mxu0  ;;  %v2106_v57 = vpop.f32.mrb[174].mxu1  ;;  %v5648_v38 = vmax.f32 %v5646_v40, %v5647_v6 }
 0x247   :  { %2350 = vst [vmem:[%s5465_s6 + $0x120] sm:$0xff] %v2301_v41  ;;  %v2253_v14 = vadd.f32 %v5117_v59, %v2197_v48  ;;  %v1643_v53 = vmax.f32 %v5633_v51, %v1551_v56  ;;  %v3274_v58 = vpop.f32.mrb[175].mxu0  ;;  %v3441_v34 = vpop.f32.mrb[175].mxu1 }
 0x248   :  { %v5650_v58 = vld [vmem:[#allocation42_spill] sm:$0xff] }
 0x249   :  { %v2302_v35 = vmax.f32 %v2253_v14, 0.0  ;;  %v2198_v36 = vmax.f32 %v1643_v53, %v2106_v57  ;;  %v5649_v53 = vld [vmem:[#allocation41_spill] sm:$0xff] }
 0x24a   :  { %v1556_v0 = vpop.f32.mrb[176].mxu0  ;;  %v2111_v17 = vpop.f32.mrb[176].mxu1  ;;  %v5651_v34 = vmax.f32 %v5649_v53, %v5650_v58 }
 0x24b   :  { %2351 = vst [vmem:[%s5465_s6 + $0x128] sm:$0xff] %v2302_v35  ;;  %v2254_v1 = vadd.f32 %v5117_v59, %v2198_v36  ;;  %v1644_v18 = vmax.f32 %v5636_v37, %v1556_v0  ;;  %v3277_v62 = vpop.f32.mrb[177].mxu0  ;;  %v3444_v4 = vpop.f32.mrb[177].mxu1 }
 0x24c   :  { %v5653_v62 = vld [vmem:[#allocation44_spill] sm:$0xff] }
 0x24d   :  { %v2303_v5 = vmax.f32 %v2254_v1, 0.0  ;;  %v2199_v10 = vmax.f32 %v1644_v18, %v2111_v17  ;;  %v5652_v18 = vld [vmem:[#allocation43_spill] sm:$0xff] }
 0x24e   :  { %v1561_v19 = vpop.f32.mrb[178].mxu0  ;;  %v2116_v21 = vpop.f32.mrb[178].mxu1  ;;  %v5654_v4 = vmax.f32 %v5652_v18, %v5653_v62 }
 0x24f   :  { %2352 = vst [vmem:[%s5465_s6 + $0x130] sm:$0xff] %v2303_v5  ;;  %v2255_v42 = vadd.f32 %v5117_v59, %v2199_v10  ;;  %v1645_v13 = vmax.f32 %v5639_v43, %v1561_v19  ;;  %v3280_v23 = vpop.f32.mrb[179].mxu0  ;;  %v3447_v25 = vpop.f32.mrb[179].mxu1 }
 0x250   :  { %v5656_v23 = vld [vmem:[#allocation46_spill] sm:$0xff] }
 0x251   :  { %v2304_v16 = vmax.f32 %v2255_v42, 0.0  ;;  %v2200_v22 = vmax.f32 %v1645_v13, %v2116_v21  ;;  %v5655_v13 = vld [vmem:[#allocation45_spill] sm:$0xff] }
 0x252   :  { %v1566_v2 = vpop.f32.mrb[180].mxu0  ;;  %v2121_v61 = vpop.f32.mrb[180].mxu1  ;;  %v5657_v25 = vmax.f32 %v5655_v13, %v5656_v23 }
 0x253   :  { %2353 = vst [vmem:[%s5465_s6 + $0x138] sm:$0xff] %v2304_v16  ;;  %v2256_v33 = vadd.f32 %v5117_v59, %v2200_v22  ;;  %v1646_v31 = vmax.f32 %v5642_v8, %v1566_v2  ;;  %v3283_v46 = vpop.f32.mrb[181].mxu0  ;;  %v3450_v47 = vpop.f32.mrb[181].mxu1 }
 0x254   :  { %v5659_v46 = vld [vmem:[#allocation48_spill] sm:$0xff] }
 0x255   :  { %v2305_v52 = vmax.f32 %v2256_v33, 0.0  ;;  %v2201_v26 = vmax.f32 %v1646_v31, %v2121_v61  ;;  %v5658_v31 = vld [vmem:[#allocation47_spill] sm:$0xff] }
 0x256   :  { %v1571_v60 = vpop.f32.mrb[182].mxu0  ;;  %v2126_v55 = vpop.f32.mrb[182].mxu1  ;;  %v5660_v47 = vmax.f32 %v5658_v31, %v5659_v46 }
 0x257   :  { %2354 = vst [vmem:[%s5465_s6 + $0x140] sm:$0xff] %v2305_v52  ;;  %v2257_v27 = vadd.f32 %v5117_v59, %v2201_v26  ;;  %v1647_v28 = vmax.f32 %v5645_v45, %v1571_v60  ;;  %v3286_v9 = vpop.f32.mrb[183].mxu0  ;;  %v3453_v12 = vpop.f32.mrb[183].mxu1 }
 0x258   :  { %v5662_v9 = vld [vmem:[#allocation50_spill] sm:$0xff] }
 0x259   :  { %v2306_v29 = vmax.f32 %v2257_v27, 0.0  ;;  %v2202_v44 = vmax.f32 %v1647_v28, %v2126_v55  ;;  %v5661_v28 = vld [vmem:[#allocation49_spill] sm:$0xff] }
 0x25a   :  { %v1576_v54 = vpop.f32.mrb[184].mxu0  ;;  %v2131_v11 = vpop.f32.mrb[184].mxu1  ;;  %v5663_v12 = vmax.f32 %v5661_v28, %v5662_v9 }
 0x25b   :  { %2355 = vst [vmem:[%s5465_s6 + $0x148] sm:$0xff] %v2306_v29  ;;  %v2258_v39 = vadd.f32 %v5117_v59, %v2202_v44  ;;  %v1648_v41 = vmax.f32 %v5648_v38, %v1576_v54  ;;  %v3289_v48 = vpop.f32.mrb[185].mxu0  ;;  %v3456_v56 = vpop.f32.mrb[185].mxu1 }
 0x25d   :  { %v2307_v57 = vmax.f32 %v2258_v39, 0.0  ;;  %v2203_v14 = vmax.f32 %v1648_v41, %v2131_v11 }
 0x25e   :  { %v1581_v15 = vpop.f32.mrb[186].mxu0  ;;  %v2136_v63 = vpop.f32.mrb[186].mxu1 }
 0x25f   :  { %2356 = vst [vmem:[%s5465_s6 + $0x150] sm:$0xff] %v2307_v57  ;;  %v2259_v51 = vadd.f32 %v5117_v59, %v2203_v14  ;;  %v1649_v35 = vmax.f32 %v5651_v34, %v1581_v15  ;;  %v3292_v36 = vpop.f32.mrb[187].mxu0  ;;  %v3459_v0 = vpop.f32.mrb[187].mxu1 }
 0x261   :  { %v2308_v17 = vmax.f32 %v2259_v51, 0.0  ;;  %v2204_v1 = vmax.f32 %v1649_v35, %v2136_v63 }
 0x262   :  { %v1586_v3 = vpop.f32.mrb[188].mxu0  ;;  %v2141_v32 = vpop.f32.mrb[188].mxu1 }
 0x263   :  { %2357 = vst [vmem:[%s5465_s6 + $0x158] sm:$0xff] %v2308_v17  ;;  %v2260_v37 = vadd.f32 %v5117_v59, %v2204_v1  ;;  %v1650_v5 = vmax.f32 %v5654_v4, %v1586_v3  ;;  %v3295_v10 = vpop.f32.mrb[189].mxu0  ;;  %v3462_v19 = vpop.f32.mrb[189].mxu1 }
 0x265   :  { %v2309_v21 = vmax.f32 %v2260_v37, 0.0  ;;  %v2205_v42 = vmax.f32 %v1650_v5, %v2141_v32 }
 0x266   :  { %v1591_v30 = vpop.f32.mrb[190].mxu0  ;;  %v2146_v20 = vpop.f32.mrb[190].mxu1 }
 0x267   :  { %2358 = vst [vmem:[%s5465_s6 + $0x160] sm:$0xff] %v2309_v21  ;;  %v2261_v43 = vadd.f32 %v5117_v59, %v2205_v42  ;;  %v1651_v16 = vmax.f32 %v5657_v25, %v1591_v30  ;;  %v3298_v22 = vpop.f32.mrb[191].mxu0  ;;  %v3465_v2 = vpop.f32.mrb[191].mxu1 }
 0x269   :  { %v2310_v61 = vmax.f32 %v2261_v43, 0.0  ;;  %v2206_v33 = vmax.f32 %v1651_v16, %v2146_v20 }
 0x26a   :  { %v1596_v24 = vpop.f32.mrb[192].mxu0  ;;  %v2151_v7 = vpop.f32.mrb[192].mxu1 }
 0x26b   :  { %2359 = vst [vmem:[%s5465_s6 + $0x168] sm:$0xff] %v2310_v61  ;;  %v2262_v8 = vadd.f32 %v5117_v59, %v2206_v33  ;;  %v1652_v52 = vmax.f32 %v5660_v47, %v1596_v24  ;;  %v3301_v26 = vpop.f32.mrb[193].mxu0  ;;  %v3468_v60 = vpop.f32.mrb[193].mxu1 }
 0x26d   :  { %v2311_v55 = vmax.f32 %v2262_v8, 0.0  ;;  %v2207_v27 = vmax.f32 %v1652_v52, %v2151_v7 }
 0x26e   :  { %v1601_v49 = vpop.f32.mrb[194].mxu0  ;;  %v2156_v50 = vpop.f32.mrb[194].mxu1 }
 0x26f   :  { %2360 = vst [vmem:[%s5465_s6 + $0x170] sm:$0xff] %v2311_v55  ;;  %v2263_v45 = vadd.f32 %v5117_v59, %v2207_v27  ;;  %v1653_v29 = vmax.f32 %v5663_v12, %v1601_v49  ;;  %v3304_v44 = vpop.f32.mrb[195].mxu0  ;;  %v3471_v54 = vpop.f32.mrb[195].mxu1 }
 0x271   :  { %v2312_v11 = vmax.f32 %v2263_v45, 0.0  ;;  %v2208_v39 = vmax.f32 %v1653_v29, %v2156_v50 }
 0x273   :  { %2361 = vst [vmem:[%s5465_s6 + $0x178] sm:$0xff] %v2312_v11  ;;  %v2264_v40 = vadd.f32 %v5117_v59, %v2208_v39 }
 0x275   :  { %v2313_v6 = vmax.f32 %v2264_v40, 0.0 }
 0x277   :  { %2362 = vst [vmem:[%s5465_s6 + $0x180] sm:$0xff] %v2313_v6 }

// kernel: net_forward.4
= control target key start
LH: loop header
LB: loop body
LE: loop exit
PB: predicated region body
PF: predicated region fallthrough
CT: control target
= control target key end

     0   :  { %v783_v0 = vmov 0.0|0.0   ;;  %vm56_vm0 = vcmask 179200   ;;  %v784_v30 = vmov 0.0   ;;  %vm78_vm1 = vcmask 1045504   ;;  %s1201_s4 = inlined_call_operand.vmem [shape: f32[150,128], index: 4, kind: input, shape index: {}]   ;;  %s1202_s0 = inlined_call_operand.vmem [shape: f32[56,150], index: 0, kind: input, shape index: {}]   ;;  %s1203_s1 = inlined_call_operand.vmem [shape: f32[56,150], index: 1, kind: input, shape index: {}]   ;;  %s1204_s2 = inlined_call_operand.vmem [shape: f32[56,150], index: 2, kind: input, shape index: {}]   ;;  %s1205_s3 = inlined_call_operand.vmem [shape: f32[56,150], index: 3, kind: input, shape index: {}]   ;;  %s1206_s5 = inlined_call_operand.vmem [shape: f32[1,128], index: 5, kind: input, shape index: {}]   ;;  %s1207_s6 = inlined_call_operand.vmem [shape: f32[56,128], index: 6, kind: output, shape index: {}]  }
   0x1   :  { %673 = vmatprep.subr.bf16.mxu0 %v783_v0  ;;  %v23_v1 = vld [vmem:[%s1201_s4] sm:$0xff]  ;;  %v24_v2 = vld [vmem:[%s1201_s4 + $0x8] sm:$0xff]  ;;  %700 = vmatprep.subr.bf16.mxu1 %v783_v0  ;;  %v25_v3 = vld [vmem:[%s1201_s4 + $0x10] sm:$0xff] }
   0x2   :  { %v831_v4 = vpack.c.bf16 %v24_v2, %v23_v1  ;;  %v26_v5 = vld [vmem:[%s1201_s4 + $0x18] sm:$0xff]  ;;  %v27_v7 = vld [vmem:[%s1201_s4 + $0x20] sm:$0xff]  ;;  %v28_v8 = vld [vmem:[%s1201_s4 + $0x28] sm:$0xff] }
   0x3   :  { %v838_v6 = vpack.c.bf16 %v26_v5, %v25_v3  ;;  %v43_v9 = vld [vmem:[%s1202_s0 + $0x8] sm:$0xff]  ;;  %v853_v10 = vpack.c.bf16 %v28_v8, %v27_v7  ;;  %v29_v12 = vld [vmem:[%s1201_s4 + $0x30] sm:$0xff]  ;;  %v30_v13 = vld [vmem:[%s1201_s4 + $0x38] sm:$0xff] }
   0x4   :  { %675 = vmatpush1.bf16.msra.mxu0 %v831_v4  ;;  %702 = vmatpush1.bf16.msra.mxu1 %v831_v4  ;;  %v183_v11 = vld [vmem:[%s1203_s1 + $0x8] sm:$0xff]  ;;  %v870_v14 = vpack.c.bf16 %v30_v13, %v29_v12  ;;  %v31_v15 = vld [vmem:[%s1201_s4 + $0x40] sm:$0xff]  ;;  %v33_v18 = vld [vmem:[%s1201_s4 + $0x50] sm:$0xff] }
   0x5   :  { %676 = vmatprep.subr.bf16.mxu0 %v783_v0  ;;  %703 = vmatprep.subr.bf16.mxu1 %v783_v0  ;;  %v32_v16 = vld [vmem:[%s1201_s4 + $0x48] sm:$0xff]  ;;  %v34_v19 = vld [vmem:[%s1201_s4 + $0x58] sm:$0xff]  ;;  %v35_v21 = vld [vmem:[%s1201_s4 + $0x60] sm:$0xff] }
   0x6   :  { %641 = vmatprep.mubr.msk.f32.mxu0 %vm56_vm0, %v43_v9  ;;  %649 = vmatprep.mubr.msk.f32.mxu1 %vm56_vm0, %v183_v11  ;;  %v882_v17 = vpack.c.bf16 %v32_v16, %v31_v15  ;;  %v894_v20 = vpack.c.bf16 %v34_v19, %v33_v18  ;;  %v36_v22 = vld [vmem:[%s1201_s4 + $0x68] sm:$0xff]  ;;  %v37_v24 = vld [vmem:[%s1201_s4 + $0x70] sm:$0xff]  ;;  %v38_v25 = vld [vmem:[%s1201_s4 + $0x78] sm:$0xff] }
   0x7   :  { %v906_v23 = vpack.c.bf16 %v36_v22, %v35_v21  ;;  %v918_v26 = vpack.c.bf16 %v38_v25, %v37_v24  ;;  %v39_v27 = vld [vmem:[%s1201_s4 + $0x80] sm:$0xff]  ;;  %v40_v28 = vld [vmem:[%s1201_s4 + $0x88] sm:$0xff]  ;;  %v940_v31 = vld [vmem:[%s1201_s4 + $0x90] sm:$0x3f] }
   0x8   :  { %678 = vmatpush1.bf16.msra.mxu0 %v838_v6  ;;  %705 = vmatpush1.bf16.msra.mxu1 %v838_v6  ;;  %v930_v29 = vpack.c.bf16 %v40_v28, %v39_v27  ;;  %v42_v32 = vld [vmem:[%s1202_s0] sm:$0xff]  ;;  %v45_v34 = vld [vmem:[%s1202_s0 + $0x18] sm:$0xff]  ;;  %v44_v35 = vld [vmem:[%s1202_s0 + $0x10] sm:$0xff] }
   0x9   :  { %679 = vmatprep.subr.bf16.mxu0 %v783_v0  ;;  %706 = vmatprep.subr.bf16.mxu1 %v783_v0  ;;  %v182_v33 = vld [vmem:[%s1203_s1] sm:$0xff]  ;;  %v185_v36 = vld [vmem:[%s1203_s1 + $0x18] sm:$0xff]  ;;  %v184_v37 = vld [vmem:[%s1203_s1 + $0x10] sm:$0xff] }
   0xa   :  { %v47_v38 = vld [vmem:[%s1202_s0 + $0x28] sm:$0xff]  ;;  %v46_v39 = vld [vmem:[%s1202_s0 + $0x20] sm:$0xff]  ;;  %v49_v42 = vld [vmem:[%s1202_s0 + $0x38] sm:$0xff] }
   0xb   :  { %v187_v40 = vld [vmem:[%s1203_s1 + $0x28] sm:$0xff]  ;;  %v186_v41 = vld [vmem:[%s1203_s1 + $0x20] sm:$0xff]  ;;  %v48_v43 = vld [vmem:[%s1202_s0 + $0x30] sm:$0xff] }
   0xc   :  { %681 = vmatpush1.bf16.msra.mxu0 %v853_v10  ;;  %708 = vmatpush1.bf16.msra.mxu1 %v853_v10  ;;  %v189_v44 = vld [vmem:[%s1203_s1 + $0x38] sm:$0xff]  ;;  %v188_v45 = vld [vmem:[%s1203_s1 + $0x30] sm:$0xff]  ;;  %v51_v46 = vld [vmem:[%s1202_s0 + $0x48] sm:$0xff] }
   0xd   :  { %682 = vmatprep.subr.bf16.mxu0 %v783_v0  ;;  %709 = vmatprep.subr.bf16.mxu1 %v783_v0  ;;  %v50_v47 = vld [vmem:[%s1202_s0 + $0x40] sm:$0xff]  ;;  %v191_v48 = vld [vmem:[%s1203_s1 + $0x48] sm:$0xff]  ;;  %v53_v50 = vld [vmem:[%s1202_s0 + $0x58] sm:$0xff] }
   0xe   :  { %v190_v49 = vld [vmem:[%s1203_s1 + $0x40] sm:$0xff]  ;;  %v52_v51 = vld [vmem:[%s1202_s0 + $0x50] sm:$0xff]  ;;  %v193_v52 = vld [vmem:[%s1203_s1 + $0x58] sm:$0xff] }
   0xf   :  { %v192_v53 = vld [vmem:[%s1203_s1 + $0x50] sm:$0xff]  ;;  %v55_v54 = vld [vmem:[%s1202_s0 + $0x68] sm:$0xff]  ;;  %v54_v55 = vld [vmem:[%s1202_s0 + $0x60] sm:$0xff] }
  0x10   :  { %684 = vmatpush1.bf16.msra.mxu0 %v870_v14  ;;  %711 = vmatpush1.bf16.msra.mxu1 %v870_v14  ;;  %v195_v56 = vld [vmem:[%s1203_s1 + $0x68] sm:$0xff]  ;;  %v194_v57 = vld [vmem:[%s1203_s1 + $0x60] sm:$0xff]  ;;  %v327_v61 = vld [vmem:[%s1204_s2 + $0x18] sm:$0xff] }
  0x11   :  { %685 = vmatprep.subr.bf16.mxu0 %v783_v0  ;;  %712 = vmatprep.subr.bf16.mxu1 %v783_v0  ;;  %v325_v58 = vld [vmem:[%s1204_s2 + $0x8] sm:$0xff]  ;;  %v324_v60 = vld [vmem:[%s1204_s2] sm:$0xff]  ;;  %v469_v63 = vld [vmem:[%s1205_s3 + $0x18] sm:$0xff] }
  0x12   :  { %v467_v59 = vld [vmem:[%s1205_s3 + $0x8] sm:$0xff]  ;;  %v466_v62 = vld [vmem:[%s1205_s3] sm:$0xff]  ;;  %v468_v2 = vld [vmem:[%s1205_s3 + $0x10] sm:$0xff] }
  0x13   :  { %v329_v1 = vld [vmem:[%s1204_s2 + $0x28] sm:$0xff]  ;;  %v331_v5 = vld [vmem:[%s1204_s2 + $0x38] sm:$0xff]  ;;  %v330_v8 = vld [vmem:[%s1204_s2 + $0x30] sm:$0xff] }
  0x14   :  { %687 = vmatpush1.bf16.msra.mxu0 %v882_v17  ;;  %714 = vmatpush1.bf16.msra.mxu1 %v882_v17  ;;  %v471_v3 = vld [vmem:[%s1205_s3 + $0x28] sm:$0xff]  ;;  %v473_v7 = vld [vmem:[%s1205_s3 + $0x38] sm:$0xff]  ;;  %v332_v12 = vld [vmem:[%s1204_s2 + $0x40] sm:$0xff] }
  0x15   :  { %688 = vmatprep.subr.bf16.mxu0 %v783_v0  ;;  %715 = vmatprep.subr.bf16.mxu1 %v783_v0  ;;  %v333_v9 = vld [vmem:[%s1204_s2 + $0x48] sm:$0xff]  ;;  %v335_v13 = vld [vmem:[%s1204_s2 + $0x58] sm:$0xff]  ;;  %v334_v16 = vld [vmem:[%s1204_s2 + $0x50] sm:$0xff] }
  0x16   :  { %v475_v11 = vld [vmem:[%s1205_s3 + $0x48] sm:$0xff]  ;;  %v477_v15 = vld [vmem:[%s1205_s3 + $0x58] sm:$0xff]  ;;  %v476_v18 = vld [vmem:[%s1205_s3 + $0x50] sm:$0xff] }
  0x17   :  { %v479_v19 = vld [vmem:[%s1205_s3 + $0x68] sm:$0xff]  ;;  %v478_v21 = vld [vmem:[%s1205_s3 + $0x60] sm:$0xff] }
  0x18   :  { %690 = vmatpush1.bf16.msra.mxu0 %v894_v20  ;;  %717 = vmatpush1.bf16.msra.mxu1 %v894_v20 }
  0x19   :  { %691 = vmatprep.subr.bf16.mxu0 %v783_v0  ;;  %718 = vmatprep.subr.bf16.mxu1 %v783_v0 }
  0x1c   :  { %693 = vmatpush1.bf16.msra.mxu0 %v906_v23  ;;  %720 = vmatpush1.bf16.msra.mxu1 %v906_v23 }
  0x1d   :  { %694 = vmatprep.subr.bf16.mxu0 %v783_v0  ;;  %721 = vmatprep.subr.bf16.mxu1 %v783_v0 }
  0x20   :  { %696 = vmatpush1.bf16.msra.mxu0 %v918_v26  ;;  %723 = vmatpush1.bf16.msra.mxu1 %v918_v26 }
  0x21   :  { %697 = vmatprep.subr.bf16.mxu0 %v783_v0  ;;  %724 = vmatprep.subr.bf16.mxu1 %v783_v0 }
  0x24   :  { %699 = vmatpush1.bf16.msra.mxu0 %v930_v29  ;;  %726 = vmatpush1.bf16.msra.mxu1 %v930_v29 }
  0x25   :  { %118 = vmatprep.subr.mxu0 %v784_v30  ;;  %253 = vmatprep.subr.mxu1 %v784_v30 }
  0x28   :  { %640 = vmatpush1.msk.msra.mxu0 %vm78_vm1, %v940_v31  ;;  %648 = vmatpush1.msk.msra.mxu1 %vm78_vm1, %v940_v31 }
  0x29   :  { %147 = vmatmul.mubr.f32.vlgmr.msra.gmra.mrb[0].mxu0 %v42_v32  ;;  %727 = vmatprep.subr.bf16.mxu0 %v783_v0 }
  0x2a   :  { %282 = vmatmul.mubr.f32.vlgmr.msra.gmra.mrb[0].mxu1 %v182_v33  ;;  %729 = vmatpush1.bf16.msra.mxu0 %v831_v4 }
  0x2b   :  { %754 = vmatprep.subr.bf16.mxu1 %v783_v0  ;;  %730 = vmatprep.subr.bf16.mxu0 %v783_v0 }
  0x2c   :  { %756 = vmatpush1.bf16.msra.mxu1 %v831_v4  ;;  %642 = vmatprep.mubr.msk.f32.mxu0 %vm56_vm0, %v45_v34  ;;  %v328_v4 = vld [vmem:[%s1204_s2 + $0x20] sm:$0xff] }
  0x2d   :  { %757 = vmatprep.subr.bf16.mxu1 %v783_v0  ;;  %152 = vmatmul.mubr.f32.gmra.mrb[2].mxu0 %v44_v35 }
  0x2e   :  { %732 = vmatpush1.bf16.msra.mxu0 %v838_v6  ;;  %650 = vmatprep.mubr.msk.f32.mxu1 %vm56_vm0, %v185_v36 }
  0x2f   :  { %733 = vmatprep.subr.bf16.mxu0 %v783_v0  ;;  %287 = vmatmul.mubr.f32.gmra.mrb[2].mxu1 %v184_v37 }
  0x30   :  { %759 = vmatpush1.bf16.msra.mxu1 %v838_v6  ;;  %643 = vmatprep.mubr.msk.f32.mxu0 %vm56_vm0, %v47_v38  ;;  %v470_v6 = vld [vmem:[%s1205_s3 + $0x20] sm:$0xff] }
  0x31   :  { %760 = vmatprep.subr.bf16.mxu1 %v783_v0  ;;  %157 = vmatmul.mubr.f32.gmra.mrb[4].mxu0 %v46_v39 }
  0x32   :  { %735 = vmatpush1.bf16.msra.mxu0 %v853_v10  ;;  %651 = vmatprep.mubr.msk.f32.mxu1 %vm56_vm0, %v187_v40 }
  0x33   :  { %736 = vmatprep.subr.bf16.mxu0 %v783_v0  ;;  %292 = vmatmul.mubr.f32.gmra.mrb[4].mxu1 %v186_v41 }
  0x34   :  { %762 = vmatpush1.bf16.msra.mxu1 %v853_v10  ;;  %644 = vmatprep.mubr.msk.f32.mxu0 %vm56_vm0, %v49_v42  ;;  %v472_v10 = vld [vmem:[%s1205_s3 + $0x30] sm:$0xff] }
  0x35   :  { %763 = vmatprep.subr.bf16.mxu1 %v783_v0  ;;  %162 = vmatmul.mubr.f32.gmra.mrb[6].mxu0 %v48_v43 }
  0x36   :  { %738 = vmatpush1.bf16.msra.mxu0 %v870_v14  ;;  %652 = vmatprep.mubr.msk.f32.mxu1 %vm56_vm0, %v189_v44 }
  0x37   :  { %739 = vmatprep.subr.bf16.mxu0 %v783_v0  ;;  %297 = vmatmul.mubr.f32.gmra.mrb[6].mxu1 %v188_v45 }
  0x38   :  { %765 = vmatpush1.bf16.msra.mxu1 %v870_v14  ;;  %645 = vmatprep.mubr.msk.f32.mxu0 %vm56_vm0, %v51_v46  ;;  %v474_v14 = vld [vmem:[%s1205_s3 + $0x40] sm:$0xff] }
  0x39   :  { %766 = vmatprep.subr.bf16.mxu1 %v783_v0  ;;  %167 = vmatmul.mubr.f32.gmra.mrb[8].mxu0 %v50_v47 }
  0x3a   :  { %741 = vmatpush1.bf16.msra.mxu0 %v882_v17  ;;  %653 = vmatprep.mubr.msk.f32.mxu1 %vm56_vm0, %v191_v48 }
  0x3b   :  { %742 = vmatprep.subr.bf16.mxu0 %v783_v0  ;;  %302 = vmatmul.mubr.f32.gmra.mrb[8].mxu1 %v190_v49 }
  0x3c   :  { %768 = vmatpush1.bf16.msra.mxu1 %v882_v17  ;;  %646 = vmatprep.mubr.msk.f32.mxu0 %vm56_vm0, %v53_v50  ;;  %v337_v17 = vld [vmem:[%s1204_s2 + $0x68] sm:$0xff] }
  0x3d   :  { %769 = vmatprep.subr.bf16.mxu1 %v783_v0  ;;  %172 = vmatmul.mubr.f32.gmra.mrb[10].mxu0 %v52_v51 }
  0x3e   :  { %744 = vmatpush1.bf16.msra.mxu0 %v894_v20  ;;  %654 = vmatprep.mubr.msk.f32.mxu1 %vm56_vm0, %v193_v52 }
  0x3f   :  { %745 = vmatprep.subr.bf16.mxu0 %v783_v0  ;;  %307 = vmatmul.mubr.f32.gmra.mrb[10].mxu1 %v192_v53 }
  0x40   :  { %771 = vmatpush1.bf16.msra.mxu1 %v894_v20  ;;  %647 = vmatprep.mubr.msk.f32.mxu0 %vm56_vm0, %v55_v54  ;;  %v336_v20 = vld [vmem:[%s1204_s2 + $0x60] sm:$0xff] }
  0x41   :  { %772 = vmatprep.subr.bf16.mxu1 %v783_v0  ;;  %177 = vmatmul.mubr.f32.gmra.mrb[12].mxu0 %v54_v55 }
  0x42   :  { %747 = vmatpush1.bf16.msra.mxu0 %v906_v23  ;;  %655 = vmatprep.mubr.msk.f32.mxu1 %vm56_vm0, %v195_v56 }
  0x43   :  { %748 = vmatprep.subr.bf16.mxu0 %v783_v0  ;;  %312 = vmatmul.mubr.f32.gmra.mrb[12].mxu1 %v194_v57 }
  0x44   :  { %774 = vmatpush1.bf16.msra.mxu1 %v906_v23  ;;  %657 = vmatprep.mubr.msk.f32.mxu0 %vm56_vm0, %v325_v58 }
  0x45   :  { %775 = vmatprep.subr.bf16.mxu1 %v783_v0  ;;  %665 = vmatprep.mubr.msk.f32.mxu1 %vm56_vm0, %v467_v59 }
  0x46   :  { %750 = vmatpush1.bf16.msra.mxu0 %v918_v26 }
  0x47   :  { %751 = vmatprep.subr.bf16.mxu0 %v783_v0 }
  0x48   :  { %777 = vmatpush1.bf16.msra.mxu1 %v918_v26 }
  0x49   :  { %778 = vmatprep.subr.bf16.mxu1 %v783_v0  ;;  %v326_v0 = vld [vmem:[%s1204_s2 + $0x10] sm:$0xff] }
  0x4a   :  { %753 = vmatpush1.bf16.msra.mxu0 %v930_v29 }
  0x4b   :  { %395 = vmatprep.subr.mxu0 %v784_v30 }
  0x4c   :  { %780 = vmatpush1.bf16.msra.mxu1 %v930_v29 }
  0x4d   :  { %537 = vmatprep.subr.mxu1 %v784_v30 }
  0x4e   :  { %656 = vmatpush1.msk.msra.mxu0 %vm78_vm1, %v940_v31 }
  0x4f   :  { %424 = vmatmul.mubr.f32.vlgmr.msra.gmra.mrb[14].mxu0 %v324_v60 }
  0x50   :  { %664 = vmatpush1.msk.msra.mxu1 %vm78_vm1, %v940_v31  ;;  %658 = vmatprep.mubr.msk.f32.mxu0 %vm56_vm0, %v327_v61  ;;  %v672_v61 = vld [vmem:[%s1206_s5] ss:$0 sm:$0xff] }
  0x51   :  { %566 = vmatmul.mubr.f32.vlgmr.msra.gmra.mrb[14].mxu1 %v466_v62 }
  0x52   :  { %666 = vmatprep.mubr.msk.f32.mxu1 %vm56_vm0, %v469_v63 }
  0x53   :  { %429 = vmatmul.mubr.f32.gmra.mrb[16].mxu0 %v326_v0 }
  0x54   :  { %659 = vmatprep.mubr.msk.f32.mxu0 %vm56_vm0, %v329_v1 }
  0x55   :  { %571 = vmatmul.mubr.f32.gmra.mrb[16].mxu1 %v468_v2 }
  0x56   :  { %667 = vmatprep.mubr.msk.f32.mxu1 %vm56_vm0, %v471_v3 }
  0x57   :  { %434 = vmatmul.mubr.f32.gmra.mrb[18].mxu0 %v328_v4 }
  0x58   :  { %660 = vmatprep.mubr.msk.f32.mxu0 %vm56_vm0, %v331_v5 }
  0x59   :  { %576 = vmatmul.mubr.f32.gmra.mrb[18].mxu1 %v470_v6 }
  0x5a   :  { %668 = vmatprep.mubr.msk.f32.mxu1 %vm56_vm0, %v473_v7 }
  0x5b   :  { %439 = vmatmul.mubr.f32.gmra.mrb[20].mxu0 %v330_v8 }
  0x5c   :  { %661 = vmatprep.mubr.msk.f32.mxu0 %vm56_vm0, %v333_v9 }
  0x5d   :  { %581 = vmatmul.mubr.f32.gmra.mrb[20].mxu1 %v472_v10 }
  0x5e   :  { %669 = vmatprep.mubr.msk.f32.mxu1 %vm56_vm0, %v475_v11 }
  0x5f   :  { %444 = vmatmul.mubr.f32.gmra.mrb[22].mxu0 %v332_v12 }
  0x60   :  { %662 = vmatprep.mubr.msk.f32.mxu0 %vm56_vm0, %v335_v13 }
  0x61   :  { %586 = vmatmul.mubr.f32.gmra.mrb[22].mxu1 %v474_v14 }
  0x62   :  { %670 = vmatprep.mubr.msk.f32.mxu1 %vm56_vm0, %v477_v15 }
  0x63   :  { %449 = vmatmul.mubr.f32.gmra.mrb[24].mxu0 %v334_v16 }
  0x64   :  { %663 = vmatprep.mubr.msk.f32.mxu0 %vm56_vm0, %v337_v17 }
  0x65   :  { %591 = vmatmul.mubr.f32.gmra.mrb[24].mxu1 %v476_v18 }
  0x66   :  { %671 = vmatprep.mubr.msk.f32.mxu1 %vm56_vm0, %v479_v19 }
  0x67   :  { %454 = vmatmul.mubr.f32.gmra.mrb[26].mxu0 %v336_v20 }
  0x69   :  { %596 = vmatmul.mubr.f32.gmra.mrb[26].mxu1 %v478_v21 }
  0xfc   :  { %v148_v22 = vpop.f32.mrb[0].mxu0 }
  0xfd   :  { %v150_v23 = vpop.f32.mrb[1].mxu0  ;;  %v283_v24 = vpop.f32.mrb[0].mxu1 }
  0xfe   :  { %v317_v25 = vmax.f32 %v148_v22, %v283_v24  ;;  %v285_v26 = vpop.f32.mrb[1].mxu1 }
 0x100   :  { %v153_v27 = vpop.f32.mrb[2].mxu0 }
 0x101   :  { %v155_v28 = vpop.f32.mrb[3].mxu0 }
 0x102   :  { %v288_v29 = vpop.f32.mrb[2].mxu1 }
 0x103   :  { %v318_v30 = vmax.f32 %v153_v27, %v288_v29  ;;  %v290_v31 = vpop.f32.mrb[3].mxu1 }
 0x104   :  { %v158_v32 = vpop.f32.mrb[4].mxu0 }
 0x105   :  { %v160_v33 = vpop.f32.mrb[5].mxu0 }
 0x106   :  { %v293_v34 = vpop.f32.mrb[4].mxu1 }
 0x107   :  { %v319_v35 = vmax.f32 %v158_v32, %v293_v34  ;;  %v295_v36 = vpop.f32.mrb[5].mxu1 }
 0x108   :  { %v163_v37 = vpop.f32.mrb[6].mxu0 }
 0x109   :  { %v165_v38 = vpop.f32.mrb[7].mxu0 }
 0x10a   :  { %v298_v39 = vpop.f32.mrb[6].mxu1 }
 0x10b   :  { %v320_v40 = vmax.f32 %v163_v37, %v298_v39  ;;  %v300_v41 = vpop.f32.mrb[7].mxu1 }
 0x10c   :  { %v168_v42 = vpop.f32.mrb[8].mxu0 }
 0x10d   :  { %v170_v43 = vpop.f32.mrb[9].mxu0 }
 0x10e   :  { %v303_v44 = vpop.f32.mrb[8].mxu1 }
 0x10f   :  { %v321_v45 = vmax.f32 %v168_v42, %v303_v44  ;;  %v305_v46 = vpop.f32.mrb[9].mxu1 }
 0x110   :  { %v173_v47 = vpop.f32.mrb[10].mxu0 }
 0x111   :  { %v175_v48 = vpop.f32.mrb[11].mxu0 }
 0x112   :  { %v308_v49 = vpop.f32.mrb[10].mxu1 }
 0x113   :  { %v322_v50 = vmax.f32 %v173_v47, %v308_v49  ;;  %v310_v51 = vpop.f32.mrb[11].mxu1 }
 0x114   :  { %v178_v52 = vpop.f32.mrb[12].mxu0 }
 0x115   :  { %v180_v53 = vpop.f32.mrb[13].mxu0 }
 0x116   :  { %v313_v54 = vpop.f32.mrb[12].mxu1 }
 0x117   :  { %v323_v55 = vmax.f32 %v178_v52, %v313_v54  ;;  %v315_v56 = vpop.f32.mrb[13].mxu1 }
 0x122   :  { %v425_v57 = vpop.f32.mrb[14].mxu0 }
 0x123   :  { %v459_v58 = vmax.f32 %v317_v25, %v425_v57  ;;  %v427_v59 = vpop.f32.mrb[15].mxu0 }
 0x124   :  { %v567_v60 = vpop.f32.mrb[14].mxu1 }
 0x125   :  { %v601_v62 = vmax.f32 %v459_v58, %v567_v60  ;;  %v569_v63 = vpop.f32.mrb[15].mxu1 }
 0x126   :  { %v430_v0 = vpop.f32.mrb[16].mxu0 }
 0x127   :  { %v615_v1 = vadd.f32 %v672_v61, %v601_v62  ;;  %v460_v2 = vmax.f32 %v318_v30, %v430_v0  ;;  %v432_v3 = vpop.f32.mrb[17].mxu0 }
 0x128   :  { %v572_v4 = vpop.f32.mrb[16].mxu1 }
 0x129   :  { %v622_v5 = vmax.f32 %v615_v1, 0.0  ;;  %v602_v6 = vmax.f32 %v460_v2, %v572_v4  ;;  %v574_v7 = vpop.f32.mrb[17].mxu1 }
 0x12a   :  { %v435_v8 = vpop.f32.mrb[18].mxu0 }
 0x12b   :  { %629 = vst [vmem:[%s1207_s6] sm:$0xff] %v622_v5  ;;  %v616_v9 = vadd.f32 %v672_v61, %v602_v6  ;;  %v461_v10 = vmax.f32 %v319_v35, %v435_v8  ;;  %v437_v11 = vpop.f32.mrb[19].mxu0 }
 0x12c   :  { %v577_v12 = vpop.f32.mrb[18].mxu1 }
 0x12d   :  { %v623_v13 = vmax.f32 %v616_v9, 0.0  ;;  %v603_v14 = vmax.f32 %v461_v10, %v577_v12  ;;  %v579_v15 = vpop.f32.mrb[19].mxu1 }
 0x12e   :  { %v440_v16 = vpop.f32.mrb[20].mxu0 }
 0x12f   :  { %630 = vst [vmem:[%s1207_s6 + $0x8] sm:$0xff] %v623_v13  ;;  %v617_v17 = vadd.f32 %v672_v61, %v603_v14  ;;  %v462_v18 = vmax.f32 %v320_v40, %v440_v16  ;;  %v442_v19 = vpop.f32.mrb[21].mxu0 }
 0x130   :  { %v582_v20 = vpop.f32.mrb[20].mxu1 }
 0x131   :  { %v624_v21 = vmax.f32 %v617_v17, 0.0  ;;  %v604_v22 = vmax.f32 %v462_v18, %v582_v20  ;;  %v584_v23 = vpop.f32.mrb[21].mxu1 }
 0x132   :  { %v445_v24 = vpop.f32.mrb[22].mxu0 }
 0x133   :  { %631 = vst [vmem:[%s1207_s6 + $0x10] sm:$0xff] %v624_v21  ;;  %v618_v25 = vadd.f32 %v672_v61, %v604_v22  ;;  %v463_v26 = vmax.f32 %v321_v45, %v445_v24  ;;  %v447_v27 = vpop.f32.mrb[23].mxu0 }
 0x134   :  { %v587_v28 = vpop.f32.mrb[22].mxu1 }
 0x135   :  { %v625_v29 = vmax.f32 %v618_v25, 0.0  ;;  %v605_v30 = vmax.f32 %v463_v26, %v587_v28  ;;  %v589_v31 = vpop.f32.mrb[23].mxu1 }
 0x136   :  { %v450_v32 = vpop.f32.mrb[24].mxu0 }
 0x137   :  { %632 = vst [vmem:[%s1207_s6 + $0x18] sm:$0xff] %v625_v29  ;;  %v619_v33 = vadd.f32 %v672_v61, %v605_v30  ;;  %v464_v34 = vmax.f32 %v322_v50, %v450_v32  ;;  %v452_v35 = vpop.f32.mrb[25].mxu0 }
 0x138   :  { %v592_v36 = vpop.f32.mrb[24].mxu1 }
 0x139   :  { %v626_v37 = vmax.f32 %v619_v33, 0.0  ;;  %v606_v38 = vmax.f32 %v464_v34, %v592_v36  ;;  %v594_v39 = vpop.f32.mrb[25].mxu1 }
 0x13a   :  { %v455_v40 = vpop.f32.mrb[26].mxu0 }
 0x13b   :  { %633 = vst [vmem:[%s1207_s6 + $0x20] sm:$0xff] %v626_v37  ;;  %v620_v41 = vadd.f32 %v672_v61, %v606_v38  ;;  %v465_v42 = vmax.f32 %v323_v55, %v455_v40  ;;  %v457_v43 = vpop.f32.mrb[27].mxu0 }
 0x13c   :  { %v597_v44 = vpop.f32.mrb[26].mxu1 }
 0x13d   :  { %v627_v45 = vmax.f32 %v620_v41, 0.0  ;;  %v607_v46 = vmax.f32 %v465_v42, %v597_v44  ;;  %v599_v47 = vpop.f32.mrb[27].mxu1 }
 0x13f   :  { %634 = vst [vmem:[%s1207_s6 + $0x28] sm:$0xff] %v627_v45  ;;  %v621_v48 = vadd.f32 %v672_v61, %v607_v46 }
 0x141   :  { %v628_v49 = vmax.f32 %v621_v48, 0.0 }
 0x143   :  { %635 = vst [vmem:[%s1207_s6 + $0x30] sm:$0xff] %v628_v49 }

// kernel: net_forward.5
= control target key start
LH: loop header
LB: loop body
LE: loop exit
PB: predicated region body
PF: predicated region fallthrough
CT: control target
= control target key end

     0   :  { %vm2600_vm0 = vmmov 0   ;;  %s4052_s1 = inlined_call_operand.vmem [shape: f32[3200,128], index: 1, kind: input, shape index: {}]   ;;  %s4053_s0 = inlined_call_operand.vmem [shape: f32[8,3200], index: 0, kind: input, shape index: {}]   ;;  %s4054_s2 = inlined_call_operand.vmem [shape: f32[1,128], index: 2, kind: input, shape index: {}]   ;;  %s4055_s3 = inlined_call_operand.vmem [shape: f32[128,128], index: 3, kind: input, shape index: {}]   ;;  %s4056_s5 = inlined_call_operand.vmem [shape: f32[128,128], index: 5, kind: input, shape index: {}]   ;;  %s4057_s4 = inlined_call_operand.vmem [shape: f32[1,128], index: 4, kind: input, shape index: {}]   ;;  %s4058_s6 = inlined_call_operand.vmem [shape: f32[1,128], index: 6, kind: input, shape index: {}]   ;;  %s4059_s7 = inlined_call_operand.vmem [shape: f32[8,128], index: 7, kind: output, shape index: {}]  }
   0x1   :  { %v67_v0 = vld [vmem:[%s4052_s1 + $0x80] sm:$0xff]  ;;  %v68_v1 = vld [vmem:[%s4052_s1 + $0x88] sm:$0xff]  ;;  %v69_v11 = vld [vmem:[%s4052_s1 + $0x90] sm:$0xff] }
   0x2   :  { %v51_v2 = vld [vmem:[%s4052_s1] sm:$0xff]  ;;  %v2140_v3 = vpack.c.bf16 %v68_v1, %v67_v0  ;;  %v52_v4 = vld [vmem:[%s4052_s1 + $0x8] sm:$0xff]  ;;  %v70_v13 = vld [vmem:[%s4052_s1 + $0x98] sm:$0xff] }
   0x3   :  { %v99_v5 = vld [vmem:[%s4052_s1 + $0x180] sm:$0xff]  ;;  %v100_v6 = vld [vmem:[%s4052_s1 + $0x188] sm:$0xff]  ;;  %v2142_v7 = vpack.c.bf16 %v52_v4, %v51_v2  ;;  %v53_v14 = vld [vmem:[%s4052_s1 + $0x10] sm:$0xff]  ;;  %v2144_v16 = vpack.c.bf16 %v70_v13, %v69_v11 }
   0x4   :  { %v2172_v8 = vpack.c.bf16 %v100_v6, %v99_v5  ;;  %v83_v9 = vld [vmem:[%s4052_s1 + $0x100] sm:$0xff]  ;;  %v84_v10 = vld [vmem:[%s4052_s1 + $0x108] sm:$0xff]  ;;  %2141 = vmatprep.subr.bf16.mxu0 %v2140_v3  ;;  %v54_v15 = vld [vmem:[%s4052_s1 + $0x18] sm:$0xff] }
   0x5   :  { %v2174_v12 = vpack.c.bf16 %v84_v10, %v83_v9  ;;  %2143 = vmatpush3.bf16.msra.mxu0 %v2142_v7  ;;  %v2146_v17 = vpack.c.bf16 %v54_v15, %v53_v14  ;;  %v101_v18 = vld [vmem:[%s4052_s1 + $0x190] sm:$0xff]  ;;  %v102_v19 = vld [vmem:[%s4052_s1 + $0x198] sm:$0xff]  ;;  %v71_v23 = vld [vmem:[%s4052_s1 + $0xa0] sm:$0xff] }
   0x6   :  { %2173 = vmatprep.subr.bf16.mxu1 %v2172_v8  ;;  %v85_v20 = vld [vmem:[%s4052_s1 + $0x110] sm:$0xff]  ;;  %v2176_v21 = vpack.c.bf16 %v102_v19, %v101_v18  ;;  %v86_v22 = vld [vmem:[%s4052_s1 + $0x118] sm:$0xff]  ;;  %v72_v24 = vld [vmem:[%s4052_s1 + $0xa8] sm:$0xff]  ;;  %2145 = vmatprep.subr.bf16.mxu0 %v2144_v16 }
   0x7   :  { %2175 = vmatpush3.bf16.msra.mxu1 %v2174_v12  ;;  %v2178_v25 = vpack.c.bf16 %v86_v22, %v85_v20  ;;  %v2148_v26 = vpack.c.bf16 %v72_v24, %v71_v23  ;;  %v55_v27 = vld [vmem:[%s4052_s1 + $0x20] sm:$0xff]  ;;  %v56_v28 = vld [vmem:[%s4052_s1 + $0x28] sm:$0xff]  ;;  %v73_v35 = vld [vmem:[%s4052_s1 + $0xb0] sm:$0xff] }
   0x8   :  { %v103_v29 = vld [vmem:[%s4052_s1 + $0x1a0] sm:$0xff]  ;;  %2177 = vmatprep.subr.bf16.mxu1 %v2176_v21  ;;  %v104_v30 = vld [vmem:[%s4052_s1 + $0x1a8] sm:$0xff]  ;;  %v2150_v33 = vpack.c.bf16 %v56_v28, %v55_v27  ;;  %v74_v36 = vld [vmem:[%s4052_s1 + $0xb8] sm:$0xff] }
   0x9   :  { %v87_v31 = vld [vmem:[%s4052_s1 + $0x120] sm:$0xff]  ;;  %v88_v32 = vld [vmem:[%s4052_s1 + $0x128] sm:$0xff]  ;;  %2147 = vmatpush3.bf16.msra.mxu0 %v2146_v17  ;;  %v2180_v34 = vpack.c.bf16 %v104_v30, %v103_v29  ;;  %v57_v37 = vld [vmem:[%s4052_s1 + $0x30] sm:$0xff]  ;;  %v2152_v39 = vpack.c.bf16 %v74_v36, %v73_v35 }
   0xa   :  { %2149 = vmatprep.subr.bf16.mxu0 %v2148_v26  ;;  %v2182_v38 = vpack.c.bf16 %v88_v32, %v87_v31  ;;  %v58_v40 = vld [vmem:[%s4052_s1 + $0x38] sm:$0xff]  ;;  %v105_v41 = vld [vmem:[%s4052_s1 + $0x1b0] sm:$0xff]  ;;  %v75_v46 = vld [vmem:[%s4052_s1 + $0xc0] sm:$0xff] }
   0xb   :  { %2179 = vmatpush3.bf16.msra.mxu1 %v2178_v25  ;;  %v106_v42 = vld [vmem:[%s4052_s1 + $0x1b8] sm:$0xff]  ;;  %v89_v44 = vld [vmem:[%s4052_s1 + $0x130] sm:$0xff]  ;;  %v76_v47 = vld [vmem:[%s4052_s1 + $0xc8] sm:$0xff]  ;;  %v2154_v48 = vpack.c.bf16 %v58_v40, %v57_v37 }
   0xc   :  { %2181 = vmatprep.subr.bf16.mxu1 %v2180_v34  ;;  %v2184_v43 = vpack.c.bf16 %v106_v42, %v105_v41  ;;  %v90_v45 = vld [vmem:[%s4052_s1 + $0x138] sm:$0xff]  ;;  %v107_v49 = vld [vmem:[%s4052_s1 + $0x1c0] sm:$0xff]  ;;  %v108_v50 = vld [vmem:[%s4052_s1 + $0x1c8] sm:$0xff]  ;;  %v2156_v52 = vpack.c.bf16 %v76_v47, %v75_v46 }
   0xd   :  { %2151 = vmatpush3.bf16.msra.mxu0 %v2150_v33  ;;  %v2186_v51 = vpack.c.bf16 %v90_v45, %v89_v44  ;;  %v59_v53 = vld [vmem:[%s4052_s1 + $0x40] sm:$0xff]  ;;  %v60_v54 = vld [vmem:[%s4052_s1 + $0x48] sm:$0xff]  ;;  %v2188_v56 = vpack.c.bf16 %v108_v50, %v107_v49  ;;  %v77_v58 = vld [vmem:[%s4052_s1 + $0xd0] sm:$0xff] }
   0xe   :  { %2153 = vmatprep.subr.bf16.mxu0 %v2152_v39  ;;  %v91_v55 = vld [vmem:[%s4052_s1 + $0x140] sm:$0xff]  ;;  %v92_v57 = vld [vmem:[%s4052_s1 + $0x148] sm:$0xff]  ;;  %v78_v59 = vld [vmem:[%s4052_s1 + $0xd8] sm:$0xff]  ;;  %v2158_v62 = vpack.c.bf16 %v60_v54, %v59_v53 }
   0xf   :  { %2183 = vmatpush3.bf16.msra.mxu1 %v2182_v38  ;;  %v109_v60 = vld [vmem:[%s4052_s1 + $0x1d0] sm:$0xff]  ;;  %v110_v61 = vld [vmem:[%s4052_s1 + $0x1d8] sm:$0xff]  ;;  %v2190_v63 = vpack.c.bf16 %v92_v57, %v91_v55  ;;  %v2160_v0 = vpack.c.bf16 %v78_v59, %v77_v58  ;;  %v79_v6 = vld [vmem:[%s4052_s1 + $0xe0] sm:$0xff] }
  0x10   :  { %2185 = vmatprep.subr.bf16.mxu1 %v2184_v43  ;;  %v61_v1 = vld [vmem:[%s4052_s1 + $0x50] sm:$0xff]  ;;  %v62_v2 = vld [vmem:[%s4052_s1 + $0x58] sm:$0xff]  ;;  %v2192_v4 = vpack.c.bf16 %v110_v61, %v109_v60  ;;  %v80_v7 = vld [vmem:[%s4052_s1 + $0xe8] sm:$0xff] }
  0x11   :  { %2155 = vmatpush3.bf16.msra.mxu0 %v2154_v48  ;;  %v93_v3 = vld [vmem:[%s4052_s1 + $0x150] sm:$0xff]  ;;  %v94_v5 = vld [vmem:[%s4052_s1 + $0x158] sm:$0xff]  ;;  %v111_v8 = vld [vmem:[%s4052_s1 + $0x1e0] sm:$0xff]  ;;  %v2162_v10 = vpack.c.bf16 %v62_v2, %v61_v1  ;;  %v2164_v14 = vpack.c.bf16 %v80_v7, %v79_v6 }
  0x12   :  { %2157 = vmatprep.subr.bf16.mxu0 %v2156_v52  ;;  %v112_v9 = vld [vmem:[%s4052_s1 + $0x1e8] sm:$0xff]  ;;  %v63_v11 = vld [vmem:[%s4052_s1 + $0x60] sm:$0xff]  ;;  %v2194_v13 = vpack.c.bf16 %v94_v5, %v93_v3  ;;  %v81_v19 = vld [vmem:[%s4052_s1 + $0xf0] sm:$0xff] }
  0x13   :  { %2187 = vmatpush3.bf16.msra.mxu1 %v2186_v51  ;;  %v27_v12 = vld [vmem:[%s4053_s0 + $0x8] sm:$0xff]  ;;  %v95_v16 = vld [vmem:[%s4052_s1 + $0x160] sm:$0xff]  ;;  %v2196_v18 = vpack.c.bf16 %v112_v9, %v111_v8  ;;  %v82_v20 = vld [vmem:[%s4052_s1 + $0xf8] sm:$0xff] }
  0x14   :  { %2189 = vmatprep.subr.bf16.mxu1 %v2188_v56  ;;  %v64_v15 = vld [vmem:[%s4052_s1 + $0x68] sm:$0xff]  ;;  %522 = vmatprep.mubr.f32.mxu0 %v27_v12  ;;  %v29_v21 = vld [vmem:[%s4053_s0 + $0x18] sm:$0xff]  ;;  %v113_v22 = vld [vmem:[%s4052_s1 + $0x1f0] sm:$0xff]  ;;  %v2168_v26 = vpack.c.bf16 %v82_v20, %v81_v19 }
  0x15   :  { %2159 = vmatpush3.bf16.msra.mxu0 %v2158_v62  ;;  %v96_v17 = vld [vmem:[%s4052_s1 + $0x168] sm:$0xff]  ;;  %v114_v23 = vld [vmem:[%s4052_s1 + $0x1f8] sm:$0xff]  ;;  %592 = vmatprep.mubr.f32.mxu1 %v29_v21  ;;  %v2166_v24 = vpack.c.bf16 %v64_v15, %v63_v11  ;;  %v65_v27 = vld [vmem:[%s4052_s1 + $0x70] sm:$0xff] }
  0x16   :  { %2161 = vmatprep.subr.bf16.mxu0 %v2160_v0  ;;  %v2198_v25 = vpack.c.bf16 %v96_v17, %v95_v16  ;;  %v66_v28 = vld [vmem:[%s4052_s1 + $0x78] sm:$0xff]  ;;  %v97_v29 = vld [vmem:[%s4052_s1 + $0x170] sm:$0xff]  ;;  %v2200_v30 = vpack.c.bf16 %v114_v23, %v113_v22  ;;  %v131_v32 = vld [vmem:[%s4052_s1 + $0x280] sm:$0xff] }
  0x17   :  { %2191 = vmatpush3.bf16.msra.mxu1 %v2190_v63  ;;  %v98_v31 = vld [vmem:[%s4052_s1 + $0x178] sm:$0xff]  ;;  %v132_v33 = vld [vmem:[%s4052_s1 + $0x288] sm:$0xff]  ;;  %v163_v34 = vld [vmem:[%s4052_s1 + $0x380] sm:$0xff]  ;;  %v2170_v36 = vpack.c.bf16 %v66_v28, %v65_v27 }
  0x18   :  { %2193 = vmatprep.subr.bf16.mxu1 %v2192_v4  ;;  %v164_v35 = vld [vmem:[%s4052_s1 + $0x388] sm:$0xff]  ;;  %v2202_v37 = vpack.c.bf16 %v98_v31, %v97_v29  ;;  %v2204_v38 = vpack.c.bf16 %v132_v33, %v131_v32  ;;  %v115_v39 = vld [vmem:[%s4052_s1 + $0x200] sm:$0xff]  ;;  %v133_v44 = vld [vmem:[%s4052_s1 + $0x290] sm:$0xff] }
  0x19   :  { %2163 = vmatpush3.bf16.msra.mxu0 %v2162_v10  ;;  %v116_v40 = vld [vmem:[%s4052_s1 + $0x208] sm:$0xff]  ;;  %v147_v41 = vld [vmem:[%s4052_s1 + $0x300] sm:$0xff]  ;;  %v2236_v42 = vpack.c.bf16 %v164_v35, %v163_v34  ;;  %v134_v45 = vld [vmem:[%s4052_s1 + $0x298] sm:$0xff] }
  0x1a   :  { %2165 = vmatprep.subr.bf16.mxu0 %v2164_v14  ;;  %v148_v43 = vld [vmem:[%s4052_s1 + $0x308] sm:$0xff]  ;;  %v165_v46 = vld [vmem:[%s4052_s1 + $0x390] sm:$0xff]  ;;  %v166_v47 = vld [vmem:[%s4052_s1 + $0x398] sm:$0xff]  ;;  %v2206_v49 = vpack.c.bf16 %v116_v40, %v115_v39  ;;  %v2208_v52 = vpack.c.bf16 %v134_v45, %v133_v44 }
  0x1b   :  { %2195 = vmatpush3.bf16.msra.mxu1 %v2194_v13  ;;  %v26_v48 = vld [vmem:[%s4053_s0] sm:$0xff]  ;;  %v28_v50 = vld [vmem:[%s4053_s0 + $0x10] sm:$0xff]  ;;  %v2238_v51 = vpack.c.bf16 %v148_v43, %v147_v41  ;;  %v118_v54 = vld [vmem:[%s4052_s1 + $0x218] sm:$0xff]  ;;  %v2240_v56 = vpack.c.bf16 %v166_v47, %v165_v46 }
  0x1c   :  { %2197 = vmatprep.subr.bf16.mxu1 %v2196_v18  ;;  %v117_v53 = vld [vmem:[%s4052_s1 + $0x210] sm:$0xff]  ;;  %v150_v57 = vld [vmem:[%s4052_s1 + $0x318] sm:$0xff]  ;;  %v135_v58 = vld [vmem:[%s4052_s1 + $0x2a0] sm:$0xff] }
  0x1d   :  { %2167 = vmatpush3.bf16.msra.mxu0 %v2166_v24  ;;  %v149_v55 = vld [vmem:[%s4052_s1 + $0x310] sm:$0xff]  ;;  %v136_v59 = vld [vmem:[%s4052_s1 + $0x2a8] sm:$0xff]  ;;  %v167_v60 = vld [vmem:[%s4052_s1 + $0x3a0] sm:$0xff]  ;;  %v2210_v62 = vpack.c.bf16 %v118_v54, %v117_v53 }
  0x1e   :  { %2169 = vmatprep.subr.bf16.mxu0 %v2168_v26  ;;  %v168_v61 = vld [vmem:[%s4052_s1 + $0x3a8] sm:$0xff]  ;;  %v2242_v63 = vpack.c.bf16 %v150_v57, %v149_v55  ;;  %v2212_v0 = vpack.c.bf16 %v136_v59, %v135_v58  ;;  %v119_v1 = vld [vmem:[%s4052_s1 + $0x220] sm:$0xff]  ;;  %v137_v6 = vld [vmem:[%s4052_s1 + $0x2b0] sm:$0xff] }
  0x1f   :  { %2199 = vmatpush3.bf16.msra.mxu1 %v2198_v25  ;;  %v120_v2 = vld [vmem:[%s4052_s1 + $0x228] sm:$0xff]  ;;  %v151_v3 = vld [vmem:[%s4052_s1 + $0x320] sm:$0xff]  ;;  %v2244_v4 = vpack.c.bf16 %v168_v61, %v167_v60  ;;  %v138_v7 = vld [vmem:[%s4052_s1 + $0x2b8] sm:$0xff] }
  0x20   :  { %2201 = vmatprep.subr.bf16.mxu1 %v2200_v30  ;;  %v152_v5 = vld [vmem:[%s4052_s1 + $0x328] sm:$0xff]  ;;  %v169_v8 = vld [vmem:[%s4052_s1 + $0x3b0] sm:$0xff]  ;;  %v170_v9 = vld [vmem:[%s4052_s1 + $0x3b8] sm:$0xff]  ;;  %v2214_v10 = vpack.c.bf16 %v120_v2, %v119_v1  ;;  %v2216_v12 = vpack.c.bf16 %v138_v7, %v137_v6 }
  0x21   :  { %2171 = vmatpush3.bf16.msra.mxu0 %v2170_v36  ;;  %v2246_v11 = vpack.c.bf16 %v152_v5, %v151_v3  ;;  %v121_v13 = vld [vmem:[%s4052_s1 + $0x230] sm:$0xff]  ;;  %v122_v14 = vld [vmem:[%s4052_s1 + $0x238] sm:$0xff]  ;;  %v2248_v16 = vpack.c.bf16 %v170_v9, %v169_v8  ;;  %v139_v18 = vld [vmem:[%s4052_s1 + $0x2c0] sm:$0xff] }
  0x22   :  { %2205 = vmatprep.subr.bf16.mxu0 %v2204_v38  ;;  %v153_v15 = vld [vmem:[%s4052_s1 + $0x330] sm:$0xff]  ;;  %v154_v17 = vld [vmem:[%s4052_s1 + $0x338] sm:$0xff]  ;;  %v140_v19 = vld [vmem:[%s4052_s1 + $0x2c8] sm:$0xff]  ;;  %v2218_v23 = vpack.c.bf16 %v122_v14, %v121_v13 }
  0x23   :  { %2203 = vmatpush3.bf16.msra.mxu1 %v2202_v37  ;;  %v171_v20 = vld [vmem:[%s4052_s1 + $0x3c0] sm:$0xff]  ;;  %v172_v21 = vld [vmem:[%s4052_s1 + $0x3c8] sm:$0xff]  ;;  %v2250_v25 = vpack.c.bf16 %v154_v17, %v153_v15  ;;  %v2220_v26 = vpack.c.bf16 %v140_v19, %v139_v18  ;;  %v33_v29 = vld [vmem:[%s4053_s0 + $0x38] sm:$0xff] }
  0x24   :  { %2237 = vmatprep.subr.bf16.mxu1 %v2236_v42  ;;  %523 = vmatmul.mubr.f32.vlgmr.msra.gmra.mrb[0].mxu0 %v26_v48  ;;  %v31_v22 = vld [vmem:[%s4053_s0 + $0x28] sm:$0xff]  ;;  %v123_v24 = vld [vmem:[%s4052_s1 + $0x240] sm:$0xff]  ;;  %v2252_v30 = vpack.c.bf16 %v172_v21, %v171_v20  ;;  %v141_v32 = vld [vmem:[%s4052_s1 + $0x2d0] sm:$0xff] }
  0x25   :  { %2207 = vmatpush3.bf16.msra.mxu0 %v2206_v49  ;;  %662 = vmatprep.mubr.f32.mxu0 %v31_v22  ;;  %v124_v27 = vld [vmem:[%s4052_s1 + $0x248] sm:$0xff]  ;;  %v155_v28 = vld [vmem:[%s4052_s1 + $0x340] sm:$0xff]  ;;  %v142_v33 = vld [vmem:[%s4052_s1 + $0x2d8] sm:$0xff] }
  0x26   :  { %593 = vmatmul.mubr.f32.vlgmr.msra.gmra.mrb[0].mxu1 %v28_v50  ;;  %2209 = vmatprep.subr.bf16.mxu0 %v2208_v52  ;;  %v156_v31 = vld [vmem:[%s4052_s1 + $0x348] sm:$0xff]  ;;  %v173_v34 = vld [vmem:[%s4052_s1 + $0x3d0] sm:$0xff]  ;;  %v174_v35 = vld [vmem:[%s4052_s1 + $0x3d8] sm:$0xff]  ;;  %v2222_v36 = vpack.c.bf16 %v124_v27, %v123_v24  ;;  %v2224_v38 = vpack.c.bf16 %v142_v33, %v141_v32 }
  0x27   :  { %2239 = vmatpush3.bf16.msra.mxu1 %v2238_v51  ;;  %732 = vmatprep.mubr.f32.mxu1 %v33_v29  ;;  %v2254_v37 = vpack.c.bf16 %v156_v31, %v155_v28  ;;  %v125_v39 = vld [vmem:[%s4052_s1 + $0x250] sm:$0xff]  ;;  %v126_v40 = vld [vmem:[%s4052_s1 + $0x258] sm:$0xff]  ;;  %v2256_v42 = vpack.c.bf16 %v174_v35, %v173_v34  ;;  %v143_v44 = vld [vmem:[%s4052_s1 + $0x2e0] sm:$0xff] }
  0x28   :  { %2241 = vmatprep.subr.bf16.mxu1 %v2240_v56  ;;  %v157_v41 = vld [vmem:[%s4052_s1 + $0x350] sm:$0xff]  ;;  %v158_v43 = vld [vmem:[%s4052_s1 + $0x358] sm:$0xff]  ;;  %v144_v45 = vld [vmem:[%s4052_s1 + $0x2e8] sm:$0xff]  ;;  %v2226_v48 = vpack.c.bf16 %v126_v40, %v125_v39 }
  0x29   :  { %2211 = vmatpush3.bf16.msra.mxu0 %v2210_v62  ;;  %v175_v46 = vld [vmem:[%s4052_s1 + $0x3e0] sm:$0xff]  ;;  %v176_v47 = vld [vmem:[%s4052_s1 + $0x3e8] sm:$0xff]  ;;  %v2258_v49 = vpack.c.bf16 %v158_v43, %v157_v41  ;;  %v2228_v50 = vpack.c.bf16 %v144_v45, %v143_v44  ;;  %v145_v56 = vld [vmem:[%s4052_s1 + $0x2f0] sm:$0xff] }
  0x2a   :  { %2213 = vmatprep.subr.bf16.mxu0 %v2212_v0  ;;  %v127_v51 = vld [vmem:[%s4052_s1 + $0x260] sm:$0xff]  ;;  %v128_v52 = vld [vmem:[%s4052_s1 + $0x268] sm:$0xff]  ;;  %v2260_v54 = vpack.c.bf16 %v176_v47, %v175_v46  ;;  %v146_v57 = vld [vmem:[%s4052_s1 + $0x2f8] sm:$0xff] }
  0x2b   :  { %2243 = vmatpush3.bf16.msra.mxu1 %v2242_v63  ;;  %v159_v53 = vld [vmem:[%s4052_s1 + $0x360] sm:$0xff]  ;;  %v160_v55 = vld [vmem:[%s4052_s1 + $0x368] sm:$0xff]  ;;  %v177_v58 = vld [vmem:[%s4052_s1 + $0x3f0] sm:$0xff]  ;;  %v2230_v60 = vpack.c.bf16 %v128_v52, %v127_v51  ;;  %v2232_v62 = vpack.c.bf16 %v146_v57, %v145_v56 }
  0x2c   :  { %2245 = vmatprep.subr.bf16.mxu1 %v2244_v4  ;;  %v178_v59 = vld [vmem:[%s4052_s1 + $0x3f8] sm:$0xff]  ;;  %v2262_v61 = vpack.c.bf16 %v160_v55, %v159_v53  ;;  %v129_v63 = vld [vmem:[%s4052_s1 + $0x270] sm:$0xff]  ;;  %v195_v4 = vld [vmem:[%s4052_s1 + $0x480] sm:$0xff] }
  0x2d   :  { %2215 = vmatpush3.bf16.msra.mxu0 %v2214_v10  ;;  %v130_v0 = vld [vmem:[%s4052_s1 + $0x278] sm:$0xff]  ;;  %v161_v1 = vld [vmem:[%s4052_s1 + $0x370] sm:$0xff]  ;;  %v2264_v2 = vpack.c.bf16 %v178_v59, %v177_v58  ;;  %v196_v5 = vld [vmem:[%s4052_s1 + $0x488] sm:$0xff] }
  0x2e   :  { %2217 = vmatprep.subr.bf16.mxu0 %v2216_v12  ;;  %v162_v3 = vld [vmem:[%s4052_s1 + $0x378] sm:$0xff]  ;;  %v227_v6 = vld [vmem:[%s4052_s1 + $0x580] sm:$0xff]  ;;  %v228_v7 = vld [vmem:[%s4052_s1 + $0x588] sm:$0xff]  ;;  %v2234_v8 = vpack.c.bf16 %v130_v0, %v129_v63  ;;  %v2268_v10 = vpack.c.bf16 %v196_v5, %v195_v4 }
  0x2f   :  { %2247 = vmatpush3.bf16.msra.mxu1 %v2246_v11  ;;  %v2266_v9 = vpack.c.bf16 %v162_v3, %v161_v1  ;;  %v179_v11 = vld [vmem:[%s4052_s1 + $0x400] sm:$0xff]  ;;  %v180_v12 = vld [vmem:[%s4052_s1 + $0x408] sm:$0xff]  ;;  %v2300_v14 = vpack.c.bf16 %v228_v7, %v227_v6  ;;  %v198_v17 = vld [vmem:[%s4052_s1 + $0x498] sm:$0xff] }
  0x30   :  { %2249 = vmatprep.subr.bf16.mxu1 %v2248_v16  ;;  %v211_v13 = vld [vmem:[%s4052_s1 + $0x500] sm:$0xff]  ;;  %v212_v15 = vld [vmem:[%s4052_s1 + $0x508] sm:$0xff]  ;;  %v197_v16 = vld [vmem:[%s4052_s1 + $0x490] sm:$0xff]  ;;  %v2270_v21 = vpack.c.bf16 %v180_v12, %v179_v11 }
  0x31   :  { %2219 = vmatpush3.bf16.msra.mxu0 %v2218_v23  ;;  %v229_v18 = vld [vmem:[%s4052_s1 + $0x590] sm:$0xff]  ;;  %v230_v19 = vld [vmem:[%s4052_s1 + $0x598] sm:$0xff]  ;;  %v30_v20 = vld [vmem:[%s4053_s0 + $0x20] sm:$0xff]  ;;  %v2302_v23 = vpack.c.bf16 %v212_v15, %v211_v13  ;;  %v2272_v24 = vpack.c.bf16 %v198_v17, %v197_v16 }
  0x32   :  { %2221 = vmatprep.subr.bf16.mxu0 %v2220_v26  ;;  %v32_v22 = vld [vmem:[%s4053_s0 + $0x30] sm:$0xff]  ;;  %v182_v26 = vld [vmem:[%s4052_s1 + $0x418] sm:$0xff]  ;;  %v2304_v28 = vpack.c.bf16 %v230_v19, %v229_v18  ;;  %v200_v31 = vld [vmem:[%s4052_s1 + $0x4a8] sm:$0xff] }
  0x33   :  { %2251 = vmatpush3.bf16.msra.mxu1 %v2250_v25  ;;  %v181_v25 = vld [vmem:[%s4052_s1 + $0x410] sm:$0xff]  ;;  %v214_v29 = vld [vmem:[%s4052_s1 + $0x518] sm:$0xff]  ;;  %v231_v32 = vld [vmem:[%s4052_s1 + $0x5a0] sm:$0xff] }
  0x34   :  { %2253 = vmatprep.subr.bf16.mxu1 %v2252_v30  ;;  %v213_v27 = vld [vmem:[%s4052_s1 + $0x510] sm:$0xff]  ;;  %v199_v30 = vld [vmem:[%s4052_s1 + $0x4a0] sm:$0xff]  ;;  %v232_v33 = vld [vmem:[%s4052_s1 + $0x5a8] sm:$0xff]  ;;  %v2274_v35 = vpack.c.bf16 %v182_v26, %v181_v25 }
  0x35   :  { %2223 = vmatpush3.bf16.msra.mxu0 %v2222_v36  ;;  %v35_v34 = vld [vmem:[%s4053_s0 + $0x48] sm:$0xff]  ;;  %v37_v36 = vld [vmem:[%s4053_s0 + $0x58] sm:$0xff]  ;;  %v183_v39 = vld [vmem:[%s4052_s1 + $0x420] sm:$0xff] }
  0x36   :  { %2225 = vmatprep.subr.bf16.mxu0 %v2224_v38  ;;  %v2276_v38 = vpack.c.bf16 %v200_v31, %v199_v30  ;;  %v184_v40 = vld [vmem:[%s4052_s1 + $0x428] sm:$0xff]  ;;  %v215_v41 = vld [vmem:[%s4052_s1 + $0x520] sm:$0xff]  ;;  %v201_v44 = vld [vmem:[%s4052_s1 + $0x4b0] sm:$0xff] }
  0x37   :  { %2255 = vmatpush3.bf16.msra.mxu1 %v2254_v37  ;;  %v2306_v37 = vpack.c.bf16 %v214_v29, %v213_v27  ;;  %v216_v43 = vld [vmem:[%s4052_s1 + $0x528] sm:$0xff]  ;;  %v202_v45 = vld [vmem:[%s4052_s1 + $0x4b8] sm:$0xff]  ;;  %v233_v46 = vld [vmem:[%s4052_s1 + $0x5b0] sm:$0xff] }
  0x38   :  { %2257 = vmatprep.subr.bf16.mxu1 %v2256_v42  ;;  %v2308_v42 = vpack.c.bf16 %v232_v33, %v231_v32  ;;  %v234_v47 = vld [vmem:[%s4052_s1 + $0x5b8] sm:$0xff]  ;;  %v185_v51 = vld [vmem:[%s4052_s1 + $0x430] sm:$0xff]  ;;  %v203_v56 = vld [vmem:[%s4052_s1 + $0x4c0] sm:$0xff] }
  0x39   :  { %2227 = vmatpush3.bf16.msra.mxu0 %v2226_v48  ;;  %v2278_v48 = vpack.c.bf16 %v184_v40, %v183_v39  ;;  %v186_v52 = vld [vmem:[%s4052_s1 + $0x438] sm:$0xff]  ;;  %v217_v53 = vld [vmem:[%s4052_s1 + $0x530] sm:$0xff]  ;;  %v204_v57 = vld [vmem:[%s4052_s1 + $0x4c8] sm:$0xff] }
  0x3a   :  { %2229 = vmatprep.subr.bf16.mxu0 %v2228_v50  ;;  %v2280_v50 = vpack.c.bf16 %v202_v45, %v201_v44  ;;  %v218_v55 = vld [vmem:[%s4052_s1 + $0x538] sm:$0xff]  ;;  %v235_v58 = vld [vmem:[%s4052_s1 + $0x5c0] sm:$0xff]  ;;  %v236_v59 = vld [vmem:[%s4052_s1 + $0x5c8] sm:$0xff] }
  0x3b   :  { %2259 = vmatpush3.bf16.msra.mxu1 %v2258_v49  ;;  %v2310_v49 = vpack.c.bf16 %v216_v43, %v215_v41  ;;  %v187_v63 = vld [vmem:[%s4052_s1 + $0x440] sm:$0xff]  ;;  %v188_v0 = vld [vmem:[%s4052_s1 + $0x448] sm:$0xff]  ;;  %v205_v4 = vld [vmem:[%s4052_s1 + $0x4d0] sm:$0xff] }
  0x3c   :  { %2261 = vmatprep.subr.bf16.mxu1 %v2260_v54  ;;  %v2312_v54 = vpack.c.bf16 %v234_v47, %v233_v46  ;;  %v219_v1 = vld [vmem:[%s4052_s1 + $0x540] sm:$0xff]  ;;  %v220_v3 = vld [vmem:[%s4052_s1 + $0x548] sm:$0xff]  ;;  %v206_v5 = vld [vmem:[%s4052_s1 + $0x4d8] sm:$0xff] }
  0x3d   :  { %2231 = vmatpush3.bf16.msra.mxu0 %v2230_v60  ;;  %v2282_v60 = vpack.c.bf16 %v186_v52, %v185_v51  ;;  %v237_v6 = vld [vmem:[%s4052_s1 + $0x5d0] sm:$0xff]  ;;  %v238_v7 = vld [vmem:[%s4052_s1 + $0x5d8] sm:$0xff]  ;;  %v207_v16 = vld [vmem:[%s4052_s1 + $0x4e0] sm:$0xff] }
  0x3e   :  { %2233 = vmatprep.subr.bf16.mxu0 %v2232_v62  ;;  %v2284_v62 = vpack.c.bf16 %v204_v57, %v203_v56  ;;  %v189_v11 = vld [vmem:[%s4052_s1 + $0x450] sm:$0xff]  ;;  %v190_v12 = vld [vmem:[%s4052_s1 + $0x458] sm:$0xff]  ;;  %v208_v17 = vld [vmem:[%s4052_s1 + $0x4e8] sm:$0xff] }
  0x3f   :  { %2263 = vmatpush3.bf16.msra.mxu1 %v2262_v61  ;;  %v2314_v61 = vpack.c.bf16 %v218_v55, %v217_v53  ;;  %v221_v13 = vld [vmem:[%s4052_s1 + $0x550] sm:$0xff]  ;;  %v222_v15 = vld [vmem:[%s4052_s1 + $0x558] sm:$0xff]  ;;  %v239_v18 = vld [vmem:[%s4052_s1 + $0x5e0] sm:$0xff] }
  0x40   :  { %2265 = vmatprep.subr.bf16.mxu1 %v2264_v2  ;;  %v2316_v2 = vpack.c.bf16 %v236_v59, %v235_v58  ;;  %v240_v19 = vld [vmem:[%s4052_s1 + $0x5e8] sm:$0xff]  ;;  %v223_v25 = vld [vmem:[%s4052_s1 + $0x560] sm:$0xff]  ;;  %v210_v29 = vld [vmem:[%s4052_s1 + $0x4f8] sm:$0xff] }
  0x41   :  { %2235 = vmatpush3.bf16.msra.mxu0 %v2234_v8  ;;  %v2286_v8 = vpack.c.bf16 %v188_v0, %v187_v63  ;;  %v2324_v26 = vpack.c.bf16 %v240_v19, %v239_v18  ;;  %v224_v27 = vld [vmem:[%s4052_s1 + $0x568] sm:$0xff]  ;;  %v241_v30 = vld [vmem:[%s4052_s1 + $0x5f0] sm:$0xff]  ;;  %v242_v31 = vld [vmem:[%s4052_s1 + $0x5f8] sm:$0xff] }
  0x42   :  { %2269 = vmatprep.subr.bf16.mxu0 %v2268_v10  ;;  %v2288_v10 = vpack.c.bf16 %v206_v5, %v205_v4  ;;  %v2326_v33 = vpack.c.bf16 %v224_v27, %v223_v25  ;;  %v226_v39 = vld [vmem:[%s4052_s1 + $0x578] sm:$0xff]  ;;  %v259_v40 = vld [vmem:[%s4052_s1 + $0x680] sm:$0xff]  ;;  %v260_v41 = vld [vmem:[%s4052_s1 + $0x688] sm:$0xff] }
  0x43   :  { %2267 = vmatpush3.bf16.msra.mxu1 %v2266_v9  ;;  %v2318_v9 = vpack.c.bf16 %v220_v3, %v219_v1  ;;  %v292_v43 = vld [vmem:[%s4052_s1 + $0x788] sm:$0xff]  ;;  %v2332_v46 = vpack.c.bf16 %v260_v41, %v259_v40  ;;  %v243_v47 = vld [vmem:[%s4052_s1 + $0x600] sm:$0xff]  ;;  %v261_v52 = vld [vmem:[%s4052_s1 + $0x690] sm:$0xff] }
  0x44   :  { %2301 = vmatprep.subr.bf16.mxu1 %v2300_v14  ;;  %663 = vmatmul.mubr.f32.vlgmr.msra.gmra.mrb[2].mxu0 %v30_v20  ;;  %v2320_v14 = vpack.c.bf16 %v238_v7, %v237_v6  ;;  %v2290_v20 = vpack.c.bf16 %v190_v12, %v189_v11  ;;  %v276_v51 = vld [vmem:[%s4052_s1 + $0x708] sm:$0xff]  ;;  %v262_v53 = vld [vmem:[%s4052_s1 + $0x698] sm:$0xff]  ;;  %v34_v56 = vld [vmem:[%s4053_s0 + $0x40] sm:$0xff] }
  0x45   :  { %2271 = vmatpush3.bf16.msra.mxu0 %v2270_v21  ;;  %802 = vmatprep.mubr.f32.mxu0 %v35_v34  ;;  %v2322_v21 = vpack.c.bf16 %v222_v15, %v221_v13  ;;  %v294_v55 = vld [vmem:[%s4052_s1 + $0x798] sm:$0xff]  ;;  %v36_v58 = vld [vmem:[%s4053_s0 + $0x50] sm:$0xff]  ;;  %v264_v3 = vld [vmem:[%s4052_s1 + $0x6a8] sm:$0xff] }
  0x46   :  { %733 = vmatmul.mubr.f32.vlgmr.msra.gmra.mrb[2].mxu1 %v32_v22  ;;  %2273 = vmatprep.subr.bf16.mxu0 %v2272_v24  ;;  %v2292_v22 = vpack.c.bf16 %v208_v17, %v207_v16  ;;  %v192_v24 = vld [vmem:[%s4052_s1 + $0x468] sm:$0xff]  ;;  %v277_v63 = vld [vmem:[%s4052_s1 + $0x710] sm:$0xff]  ;;  %v278_v1 = vld [vmem:[%s4052_s1 + $0x718] sm:$0xff] }
  0x47   :  { %2303 = vmatpush3.bf16.msra.mxu1 %v2302_v23  ;;  %872 = vmatprep.mubr.f32.mxu1 %v37_v36  ;;  %v191_v23 = vld [vmem:[%s4052_s1 + $0x460] sm:$0xff]  ;;  %v194_v36 = vld [vmem:[%s4052_s1 + $0x478] sm:$0xff]  ;;  %v296_v5 = vld [vmem:[%s4052_s1 + $0x7a8] sm:$0xff] }
  0x48   :  { %2305 = vmatprep.subr.bf16.mxu1 %v2304_v28  ;;  %v209_v28 = vld [vmem:[%s4052_s1 + $0x4f0] sm:$0xff]  ;;  %v2294_v32 = vpack.c.bf16 %v192_v24, %v191_v23  ;;  %v295_v4 = vld [vmem:[%s4052_s1 + $0x7a0] sm:$0xff]  ;;  %v39_v6 = vld [vmem:[%s4053_s0 + $0x68] sm:$0xff] }
  0x49   :  { %2275 = vmatpush3.bf16.msra.mxu0 %v2274_v35  ;;  %v2296_v34 = vpack.c.bf16 %v210_v29, %v209_v28  ;;  %v193_v35 = vld [vmem:[%s4052_s1 + $0x470] sm:$0xff]  ;;  %v247_v11 = vld [vmem:[%s4052_s1 + $0x620] sm:$0xff]  ;;  %v248_v12 = vld [vmem:[%s4052_s1 + $0x628] sm:$0xff] }
  0x4a   :  { %2277 = vmatprep.subr.bf16.mxu0 %v2276_v38  ;;  %v2328_v38 = vpack.c.bf16 %v242_v31, %v241_v30  ;;  %v2298_v44 = vpack.c.bf16 %v194_v36, %v193_v35  ;;  %v279_v13 = vld [vmem:[%s4052_s1 + $0x720] sm:$0xff]  ;;  %v280_v15 = vld [vmem:[%s4052_s1 + $0x728] sm:$0xff]  ;;  %v265_v16 = vld [vmem:[%s4052_s1 + $0x6b0] sm:$0xff] }
  0x4b   :  { %2307 = vmatpush3.bf16.msra.mxu1 %v2306_v37  ;;  %v225_v37 = vld [vmem:[%s4052_s1 + $0x570] sm:$0xff]  ;;  %v266_v17 = vld [vmem:[%s4052_s1 + $0x6b8] sm:$0xff]  ;;  %v267_v28 = vld [vmem:[%s4052_s1 + $0x6c0] sm:$0xff] }
  0x4c   :  { %2309 = vmatprep.subr.bf16.mxu1 %v2308_v42  ;;  %v291_v42 = vld [vmem:[%s4052_s1 + $0x780] sm:$0xff]  ;;  %v2330_v45 = vpack.c.bf16 %v226_v39, %v225_v37  ;;  %v297_v18 = vld [vmem:[%s4052_s1 + $0x7b0] sm:$0xff]  ;;  %v298_v19 = vld [vmem:[%s4052_s1 + $0x7b8] sm:$0xff] }
  0x4d   :  { %2279 = vmatpush3.bf16.msra.mxu0 %v2278_v48  ;;  %v244_v48 = vld [vmem:[%s4052_s1 + $0x608] sm:$0xff]  ;;  %v249_v23 = vld [vmem:[%s4052_s1 + $0x630] sm:$0xff]  ;;  %v250_v24 = vld [vmem:[%s4052_s1 + $0x638] sm:$0xff] }
  0x4e   :  { %2281 = vmatprep.subr.bf16.mxu0 %v2280_v50  ;;  %v2364_v50 = vpack.c.bf16 %v292_v43, %v291_v42  ;;  %v2334_v57 = vpack.c.bf16 %v244_v48, %v243_v47  ;;  %v281_v25 = vld [vmem:[%s4052_s1 + $0x730] sm:$0xff]  ;;  %v282_v27 = vld [vmem:[%s4052_s1 + $0x738] sm:$0xff]  ;;  %v268_v29 = vld [vmem:[%s4052_s1 + $0x6c8] sm:$0xff] }
  0x4f   :  { %2311 = vmatpush3.bf16.msra.mxu1 %v2310_v49  ;;  %v275_v49 = vld [vmem:[%s4052_s1 + $0x700] sm:$0xff]  ;;  %v300_v31 = vld [vmem:[%s4052_s1 + $0x7c8] sm:$0xff]  ;;  %v269_v40 = vld [vmem:[%s4052_s1 + $0x6d0] sm:$0xff] }
  0x50   :  { %2313 = vmatprep.subr.bf16.mxu1 %v2312_v54  ;;  %v293_v54 = vld [vmem:[%s4052_s1 + $0x790] sm:$0xff]  ;;  %v2366_v59 = vpack.c.bf16 %v276_v51, %v275_v49  ;;  %v299_v30 = vld [vmem:[%s4052_s1 + $0x7c0] sm:$0xff]  ;;  %v252_v36 = vld [vmem:[%s4052_s1 + $0x648] sm:$0xff] }
  0x51   :  { %2283 = vmatpush3.bf16.msra.mxu0 %v2282_v60  ;;  %v2336_v60 = vpack.c.bf16 %v262_v53, %v261_v52  ;;  %v2368_v0 = vpack.c.bf16 %v294_v55, %v293_v54  ;;  %v251_v35 = vld [vmem:[%s4052_s1 + $0x640] sm:$0xff]  ;;  %v284_v39 = vld [vmem:[%s4052_s1 + $0x748] sm:$0xff]  ;;  %v270_v41 = vld [vmem:[%s4052_s1 + $0x6d8] sm:$0xff] }
  0x52   :  { %2285 = vmatprep.subr.bf16.mxu0 %v2284_v62  ;;  %v246_v62 = vld [vmem:[%s4052_s1 + $0x618] sm:$0xff]  ;;  %v283_v37 = vld [vmem:[%s4052_s1 + $0x740] sm:$0xff]  ;;  %v301_v42 = vld [vmem:[%s4052_s1 + $0x7d0] sm:$0xff] }
  0x53   :  { %2315 = vmatpush3.bf16.msra.mxu1 %v2314_v61  ;;  %v245_v61 = vld [vmem:[%s4052_s1 + $0x610] sm:$0xff]  ;;  %v302_v43 = vld [vmem:[%s4052_s1 + $0x7d8] sm:$0xff]  ;;  %v271_v52 = vld [vmem:[%s4052_s1 + $0x6e0] sm:$0xff] }
  0x54   :  { %2317 = vmatprep.subr.bf16.mxu1 %v2316_v2  ;;  %v263_v2 = vld [vmem:[%s4052_s1 + $0x6a0] sm:$0xff]  ;;  %v2338_v7 = vpack.c.bf16 %v246_v62, %v245_v61  ;;  %v253_v47 = vld [vmem:[%s4052_s1 + $0x650] sm:$0xff]  ;;  %v254_v48 = vld [vmem:[%s4052_s1 + $0x658] sm:$0xff] }
  0x55   :  { %2287 = vmatpush3.bf16.msra.mxu0 %v2286_v8  ;;  %v41_v8 = vld [vmem:[%s4053_s0 + $0x78] sm:$0xff]  ;;  %v285_v49 = vld [vmem:[%s4052_s1 + $0x750] sm:$0xff]  ;;  %v272_v53 = vld [vmem:[%s4052_s1 + $0x6e8] sm:$0xff] }
  0x56   :  { %2289 = vmatprep.subr.bf16.mxu0 %v2288_v10  ;;  %v2340_v10 = vpack.c.bf16 %v264_v3, %v263_v2  ;;  %v286_v51 = vld [vmem:[%s4052_s1 + $0x758] sm:$0xff]  ;;  %v303_v54 = vld [vmem:[%s4052_s1 + $0x7e0] sm:$0xff]  ;;  %v304_v55 = vld [vmem:[%s4052_s1 + $0x7e8] sm:$0xff] }
  0x57   :  { %2319 = vmatpush3.bf16.msra.mxu1 %v2318_v9  ;;  %v2370_v9 = vpack.c.bf16 %v278_v1, %v277_v63  ;;  %v287_v61 = vld [vmem:[%s4052_s1 + $0x760] sm:$0xff]  ;;  %v2388_v62 = vpack.c.bf16 %v304_v55, %v303_v54  ;;  %v288_v63 = vld [vmem:[%s4052_s1 + $0x768] sm:$0xff]  ;;  %v274_v1 = vld [vmem:[%s4052_s1 + $0x6f8] sm:$0xff] }
  0x58   :  { %2321 = vmatprep.subr.bf16.mxu1 %v2320_v14  ;;  %v2372_v14 = vpack.c.bf16 %v296_v5, %v295_v4  ;;  %v305_v2 = vld [vmem:[%s4052_s1 + $0x7f0] sm:$0xff]  ;;  %v306_v3 = vld [vmem:[%s4052_s1 + $0x7f8] sm:$0xff]  ;;  %v2390_v5 = vpack.c.bf16 %v288_v63, %v287_v61 }
  0x59   :  { %2291 = vmatpush3.bf16.msra.mxu0 %v2290_v20  ;;  %v2342_v20 = vpack.c.bf16 %v248_v12, %v247_v11  ;;  %v290_v11 = vld [vmem:[%s4052_s1 + $0x778] sm:$0xff]  ;;  %v323_v12 = vld [vmem:[%s4052_s1 + $0x880] sm:$0xff]  ;;  %v361_v54 = vld [vmem:[%s4052_s1 + $0x9b0] sm:$0xff] }
  0x5a   :  { %2293 = vmatprep.subr.bf16.mxu0 %v2292_v22  ;;  %v2344_v22 = vpack.c.bf16 %v266_v17, %v265_v16  ;;  %v362_v55 = vld [vmem:[%s4052_s1 + $0x9b8] sm:$0xff]  ;;  %v345_v61 = vld [vmem:[%s4052_s1 + $0x930] sm:$0xff] }
  0x5b   :  { %2323 = vmatpush3.bf16.msra.mxu1 %v2322_v21  ;;  %v2374_v21 = vpack.c.bf16 %v280_v15, %v279_v13  ;;  %v324_v13 = vld [vmem:[%s4052_s1 + $0x888] sm:$0xff]  ;;  %v346_v63 = vld [vmem:[%s4052_s1 + $0x938] sm:$0xff] }
  0x5c   :  { %2325 = vmatprep.subr.bf16.mxu1 %v2324_v26  ;;  %v2376_v26 = vpack.c.bf16 %v298_v19, %v297_v18  ;;  %v356_v15 = vld [vmem:[%s4052_s1 + $0x988] sm:$0xff]  ;;  %v2396_v18 = vpack.c.bf16 %v324_v13, %v323_v12  ;;  %v307_v19 = vld [vmem:[%s4052_s1 + $0x800] sm:$0xff]  ;;  %v333_v12 = vld [vmem:[%s4052_s1 + $0x8d0] sm:$0xff] }
  0x5d   :  { %2295 = vmatpush3.bf16.msra.mxu0 %v2294_v32  ;;  %v2346_v32 = vpack.c.bf16 %v250_v24, %v249_v23  ;;  %v340_v23 = vld [vmem:[%s4052_s1 + $0x908] sm:$0xff]  ;;  %v325_v24 = vld [vmem:[%s4052_s1 + $0x890] sm:$0xff]  ;;  %v334_v13 = vld [vmem:[%s4052_s1 + $0x8d8] sm:$0xff] }
  0x5e   :  { %2297 = vmatprep.subr.bf16.mxu0 %v2296_v34  ;;  %v2348_v34 = vpack.c.bf16 %v268_v29, %v267_v28  ;;  %v38_v28 = vld [vmem:[%s4053_s0 + $0x60] sm:$0xff] }
  0x5f   :  { %2327 = vmatpush3.bf16.msra.mxu1 %v2326_v33  ;;  %v2378_v33 = vpack.c.bf16 %v282_v27, %v281_v25  ;;  %v326_v25 = vld [vmem:[%s4052_s1 + $0x898] sm:$0xff] }
  0x60   :  { %2329 = vmatprep.subr.bf16.mxu1 %v2328_v38  ;;  %v2380_v38 = vpack.c.bf16 %v300_v31, %v299_v30  ;;  %v358_v27 = vld [vmem:[%s4052_s1 + $0x998] sm:$0xff]  ;;  %v40_v30 = vld [vmem:[%s4053_s0 + $0x70] sm:$0xff] }
  0x61   :  { %2299 = vmatpush3.bf16.msra.mxu0 %v2298_v44  ;;  %v2350_v44 = vpack.c.bf16 %v252_v36, %v251_v35  ;;  %v341_v35 = vld [vmem:[%s4052_s1 + $0x910] sm:$0xff] }
  0x62   :  { %2333 = vmatprep.subr.bf16.mxu0 %v2332_v46  ;;  %v2352_v46 = vpack.c.bf16 %v270_v41, %v269_v40  ;;  %v359_v40 = vld [vmem:[%s4052_s1 + $0x9a0] sm:$0xff]  ;;  %v360_v41 = vld [vmem:[%s4052_s1 + $0x9a8] sm:$0xff] }
  0x63   :  { %2331 = vmatpush3.bf16.msra.mxu1 %v2330_v45  ;;  %v2382_v45 = vpack.c.bf16 %v284_v39, %v283_v37  ;;  %v342_v37 = vld [vmem:[%s4052_s1 + $0x918] sm:$0xff]  ;;  %v328_v39 = vld [vmem:[%s4052_s1 + $0x8a8] sm:$0xff] }
  0x64   :  { %2365 = vmatprep.subr.bf16.mxu1 %v2364_v50  ;;  %803 = vmatmul.mubr.f32.vlgmr.msra.gmra.mrb[4].mxu0 %v34_v56  ;;  %v2384_v50 = vpack.c.bf16 %v302_v43, %v301_v42  ;;  %v2354_v56 = vpack.c.bf16 %v254_v48, %v253_v47  ;;  %v43_v42 = vld [vmem:[%s4053_s0 + $0x88] sm:$0xff]  ;;  %v311_v47 = vld [vmem:[%s4052_s1 + $0x820] sm:$0xff] }
  0x65   :  { %2335 = vmatpush3.bf16.msra.mxu0 %v2334_v57  ;;  %942 = vmatprep.mubr.f32.mxu0 %v39_v6  ;;  %v2386_v57 = vpack.c.bf16 %v286_v51, %v285_v49  ;;  %v312_v48 = vld [vmem:[%s4052_s1 + $0x828] sm:$0xff]  ;;  %v343_v49 = vld [vmem:[%s4052_s1 + $0x920] sm:$0xff] }
  0x66   :  { %873 = vmatmul.mubr.f32.vlgmr.msra.gmra.mrb[4].mxu1 %v36_v58  ;;  %2337 = vmatprep.subr.bf16.mxu0 %v2336_v60  ;;  %v2356_v58 = vpack.c.bf16 %v272_v53, %v271_v52  ;;  %v256_v60 = vld [vmem:[%s4052_s1 + $0x668] sm:$0xff]  ;;  %v329_v52 = vld [vmem:[%s4052_s1 + $0x8b0] sm:$0xff]  ;;  %v330_v53 = vld [vmem:[%s4052_s1 + $0x8b8] sm:$0xff] }
  0x67   :  { %2367 = vmatpush3.bf16.msra.mxu1 %v2366_v59  ;;  %1012 = vmatprep.mubr.f32.mxu1 %v41_v8  ;;  %v255_v59 = vld [vmem:[%s4052_s1 + $0x660] sm:$0xff]  ;;  %v258_v8 = vld [vmem:[%s4052_s1 + $0x678] sm:$0xff]  ;;  %v344_v51 = vld [vmem:[%s4052_s1 + $0x928] sm:$0xff] }
  0x68   :  { %2369 = vmatprep.subr.bf16.mxu1 %v2368_v0  ;;  %v273_v0 = vld [vmem:[%s4052_s1 + $0x6f0] sm:$0xff]  ;;  %v2358_v4 = vpack.c.bf16 %v256_v60, %v255_v59  ;;  %v314_v60 = vld [vmem:[%s4052_s1 + $0x838] sm:$0xff] }
  0x69   :  { %2339 = vmatpush3.bf16.msra.mxu0 %v2338_v7  ;;  %v2360_v6 = vpack.c.bf16 %v274_v1, %v273_v0  ;;  %v257_v7 = vld [vmem:[%s4052_s1 + $0x670] sm:$0xff]  ;;  %v331_v0 = vld [vmem:[%s4052_s1 + $0x8c0] sm:$0xff]  ;;  %v332_v1 = vld [vmem:[%s4052_s1 + $0x8c8] sm:$0xff] }
  0x6a   :  { %2341 = vmatprep.subr.bf16.mxu0 %v2340_v10  ;;  %v2392_v10 = vpack.c.bf16 %v306_v3, %v305_v2  ;;  %v2362_v16 = vpack.c.bf16 %v258_v8, %v257_v7  ;;  %v313_v59 = vld [vmem:[%s4052_s1 + $0x830] sm:$0xff]  ;;  %v363_v2 = vld [vmem:[%s4052_s1 + $0x9c0] sm:$0xff]  ;;  %v364_v3 = vld [vmem:[%s4052_s1 + $0x9c8] sm:$0xff] }
  0x6b   :  { %2371 = vmatpush3.bf16.msra.mxu1 %v2370_v9  ;;  %v289_v9 = vld [vmem:[%s4052_s1 + $0x770] sm:$0xff]  ;;  %v315_v7 = vld [vmem:[%s4052_s1 + $0x840] sm:$0xff]  ;;  %v316_v8 = vld [vmem:[%s4052_s1 + $0x848] sm:$0xff] }
  0x6c   :  { %2373 = vmatprep.subr.bf16.mxu1 %v2372_v14  ;;  %v355_v14 = vld [vmem:[%s4052_s1 + $0x980] sm:$0xff]  ;;  %v2394_v17 = vpack.c.bf16 %v290_v11, %v289_v9  ;;  %v348_v11 = vld [vmem:[%s4052_s1 + $0x948] sm:$0xff] }
  0x6d   :  { %2343 = vmatpush3.bf16.msra.mxu0 %v2342_v20  ;;  %v308_v20 = vld [vmem:[%s4052_s1 + $0x808] sm:$0xff]  ;;  %v347_v9 = vld [vmem:[%s4052_s1 + $0x940] sm:$0xff] }
  0x6e   :  { %2345 = vmatprep.subr.bf16.mxu0 %v2344_v22  ;;  %v2428_v22 = vpack.c.bf16 %v356_v15, %v355_v14  ;;  %v2398_v29 = vpack.c.bf16 %v308_v20, %v307_v19  ;;  %v365_v14 = vld [vmem:[%s4052_s1 + $0x9d0] sm:$0xff]  ;;  %v366_v15 = vld [vmem:[%s4052_s1 + $0x9d8] sm:$0xff] }
  0x6f   :  { %2375 = vmatpush3.bf16.msra.mxu1 %v2374_v21  ;;  %v339_v21 = vld [vmem:[%s4052_s1 + $0x900] sm:$0xff]  ;;  %v317_v19 = vld [vmem:[%s4052_s1 + $0x850] sm:$0xff]  ;;  %v318_v20 = vld [vmem:[%s4052_s1 + $0x858] sm:$0xff] }
  0x70   :  { %2377 = vmatprep.subr.bf16.mxu1 %v2376_v26  ;;  %v357_v26 = vld [vmem:[%s4052_s1 + $0x990] sm:$0xff]  ;;  %v2430_v31 = vpack.c.bf16 %v340_v23, %v339_v21  ;;  %v350_v23 = vld [vmem:[%s4052_s1 + $0x958] sm:$0xff] }
  0x71   :  { %2347 = vmatpush3.bf16.msra.mxu0 %v2346_v32  ;;  %v2400_v32 = vpack.c.bf16 %v326_v25, %v325_v24  ;;  %v2432_v36 = vpack.c.bf16 %v358_v27, %v357_v26  ;;  %v349_v21 = vld [vmem:[%s4052_s1 + $0x950] sm:$0xff]  ;;  %v335_v24 = vld [vmem:[%s4052_s1 + $0x8e0] sm:$0xff]  ;;  %v336_v25 = vld [vmem:[%s4052_s1 + $0x8e8] sm:$0xff] }
  0x72   :  { %2349 = vmatprep.subr.bf16.mxu0 %v2348_v34  ;;  %v310_v34 = vld [vmem:[%s4052_s1 + $0x818] sm:$0xff]  ;;  %v367_v26 = vld [vmem:[%s4052_s1 + $0x9e0] sm:$0xff]  ;;  %v368_v27 = vld [vmem:[%s4052_s1 + $0x9e8] sm:$0xff] }
  0x73   :  { %2379 = vmatpush3.bf16.msra.mxu1 %v2378_v33  ;;  %v309_v33 = vld [vmem:[%s4052_s1 + $0x810] sm:$0xff] }
  0x74   :  { %2381 = vmatprep.subr.bf16.mxu1 %v2380_v38  ;;  %v327_v38 = vld [vmem:[%s4052_s1 + $0x8a0] sm:$0xff]  ;;  %v2402_v43 = vpack.c.bf16 %v310_v34, %v309_v33  ;;  %v2452_v34 = vpack.c.bf16 %v368_v27, %v367_v26  ;;  %v425_v26 = vld [vmem:[%s4052_s1 + $0xbb0] sm:$0xff]  ;;  %v426_v27 = vld [vmem:[%s4052_s1 + $0xbb8] sm:$0xff] }
  0x75   :  { %2351 = vmatpush3.bf16.msra.mxu0 %v2350_v44  ;;  %v45_v44 = vld [vmem:[%s4053_s0 + $0x98] sm:$0xff]  ;;  %v351_v33 = vld [vmem:[%s4052_s1 + $0x960] sm:$0xff] }
  0x76   :  { %2353 = vmatprep.subr.bf16.mxu0 %v2352_v46  ;;  %v2404_v46 = vpack.c.bf16 %v328_v39, %v327_v38  ;;  %v369_v38 = vld [vmem:[%s4052_s1 + $0x9f0] sm:$0xff]  ;;  %v370_v39 = vld [vmem:[%s4052_s1 + $0x9f8] sm:$0xff] }
  0x77   :  { %2383 = vmatpush3.bf16.msra.mxu1 %v2382_v45  ;;  %v2434_v45 = vpack.c.bf16 %v342_v37, %v341_v35  ;;  %v352_v35 = vld [vmem:[%s4052_s1 + $0x968] sm:$0xff]  ;;  %v338_v37 = vld [vmem:[%s4052_s1 + $0x8f8] sm:$0xff] }
  0x78   :  { %2385 = vmatprep.subr.bf16.mxu1 %v2384_v50  ;;  %v2436_v50 = vpack.c.bf16 %v360_v41, %v359_v40  ;;  %v2454_v41 = vpack.c.bf16 %v352_v35, %v351_v33  ;;  %v409_v33 = vld [vmem:[%s4052_s1 + $0xb30] sm:$0xff]  ;;  %v410_v35 = vld [vmem:[%s4052_s1 + $0xb38] sm:$0xff] }
  0x79   :  { %2355 = vmatpush3.bf16.msra.mxu0 %v2354_v56  ;;  %v2406_v56 = vpack.c.bf16 %v312_v48, %v311_v47  ;;  %v354_v47 = vld [vmem:[%s4052_s1 + $0x978] sm:$0xff]  ;;  %v387_v48 = vld [vmem:[%s4052_s1 + $0xa80] sm:$0xff] }
  0x7a   :  { %2357 = vmatprep.subr.bf16.mxu0 %v2356_v58  ;;  %v2408_v58 = vpack.c.bf16 %v330_v53, %v329_v52 }
  0x7b   :  { %2387 = vmatpush3.bf16.msra.mxu1 %v2386_v57  ;;  %v2438_v57 = vpack.c.bf16 %v344_v51, %v343_v49  ;;  %v388_v49 = vld [vmem:[%s4052_s1 + $0xa88] sm:$0xff] }
  0x7c   :  { %2389 = vmatprep.subr.bf16.mxu1 %v2388_v62  ;;  %v2440_v62 = vpack.c.bf16 %v362_v55, %v361_v54  ;;  %v420_v51 = vld [vmem:[%s4052_s1 + $0xb88] sm:$0xff]  ;;  %v2460_v54 = vpack.c.bf16 %v388_v49, %v387_v48  ;;  %v371_v55 = vld [vmem:[%s4052_s1 + $0xa00] sm:$0xff]  ;;  %v397_v48 = vld [vmem:[%s4052_s1 + $0xad0] sm:$0xff] }
  0x7d   :  { %2359 = vmatpush3.bf16.msra.mxu0 %v2358_v4  ;;  %v2410_v4 = vpack.c.bf16 %v314_v60, %v313_v59  ;;  %v404_v59 = vld [vmem:[%s4052_s1 + $0xb08] sm:$0xff]  ;;  %v389_v60 = vld [vmem:[%s4052_s1 + $0xa90] sm:$0xff]  ;;  %v398_v49 = vld [vmem:[%s4052_s1 + $0xad8] sm:$0xff] }
  0x7e   :  { %2361 = vmatprep.subr.bf16.mxu0 %v2360_v6  ;;  %v2412_v6 = vpack.c.bf16 %v332_v1, %v331_v0  ;;  %v42_v0 = vld [vmem:[%s4053_s0 + $0x80] sm:$0xff] }
  0x7f   :  { %2391 = vmatpush3.bf16.msra.mxu1 %v2390_v5  ;;  %v2442_v5 = vpack.c.bf16 %v346_v63, %v345_v61  ;;  %v390_v61 = vld [vmem:[%s4052_s1 + $0xa98] sm:$0xff] }
  0x80   :  { %2393 = vmatprep.subr.bf16.mxu1 %v2392_v10  ;;  %v2444_v10 = vpack.c.bf16 %v364_v3, %v363_v2  ;;  %v422_v63 = vld [vmem:[%s4052_s1 + $0xb98] sm:$0xff]  ;;  %v44_v2 = vld [vmem:[%s4053_s0 + $0x90] sm:$0xff] }
  0x81   :  { %2363 = vmatpush3.bf16.msra.mxu0 %v2362_v16  ;;  %v2414_v16 = vpack.c.bf16 %v316_v8, %v315_v7  ;;  %v405_v7 = vld [vmem:[%s4052_s1 + $0xb10] sm:$0xff] }
  0x82   :  { %2397 = vmatprep.subr.bf16.mxu0 %v2396_v18  ;;  %v2416_v18 = vpack.c.bf16 %v334_v13, %v333_v12  ;;  %v423_v12 = vld [vmem:[%s4052_s1 + $0xba0] sm:$0xff]  ;;  %v424_v13 = vld [vmem:[%s4052_s1 + $0xba8] sm:$0xff] }
  0x83   :  { %2395 = vmatpush3.bf16.msra.mxu1 %v2394_v17  ;;  %v2446_v17 = vpack.c.bf16 %v348_v11, %v347_v9  ;;  %v406_v9 = vld [vmem:[%s4052_s1 + $0xb18] sm:$0xff]  ;;  %v392_v11 = vld [vmem:[%s4052_s1 + $0xaa8] sm:$0xff] }
  0x84   :  { %2429 = vmatprep.subr.bf16.mxu1 %v2428_v22  ;;  %943 = vmatmul.mubr.f32.vlgmr.msra.gmra.mrb[6].mxu0 %v38_v28  ;;  %v2448_v22 = vpack.c.bf16 %v366_v15, %v365_v14  ;;  %v2418_v28 = vpack.c.bf16 %v318_v20, %v317_v19  ;;  %v47_v14 = vld [vmem:[%s4053_s0 + $0xa8] sm:$0xff]  ;;  %v375_v19 = vld [vmem:[%s4052_s1 + $0xa20] sm:$0xff] }
  0x85   :  { %2399 = vmatpush3.bf16.msra.mxu0 %v2398_v29  ;;  %1082 = vmatprep.mubr.f32.mxu0 %v43_v42  ;;  %v2450_v29 = vpack.c.bf16 %v350_v23, %v349_v21  ;;  %v376_v20 = vld [vmem:[%s4052_s1 + $0xa28] sm:$0xff]  ;;  %v407_v21 = vld [vmem:[%s4052_s1 + $0xb20] sm:$0xff] }
  0x86   :  { %1013 = vmatmul.mubr.f32.vlgmr.msra.gmra.mrb[6].mxu1 %v40_v30  ;;  %2401 = vmatprep.subr.bf16.mxu0 %v2400_v32  ;;  %v2420_v30 = vpack.c.bf16 %v336_v25, %v335_v24  ;;  %v320_v32 = vld [vmem:[%s4052_s1 + $0x868] sm:$0xff]  ;;  %v393_v24 = vld [vmem:[%s4052_s1 + $0xab0] sm:$0xff]  ;;  %v394_v25 = vld [vmem:[%s4052_s1 + $0xab8] sm:$0xff] }
  0x87   :  { %2431 = vmatpush3.bf16.msra.mxu1 %v2430_v31  ;;  %1152 = vmatprep.mubr.f32.mxu1 %v45_v44  ;;  %v319_v31 = vld [vmem:[%s4052_s1 + $0x860] sm:$0xff]  ;;  %v322_v44 = vld [vmem:[%s4052_s1 + $0x878] sm:$0xff]  ;;  %v408_v23 = vld [vmem:[%s4052_s1 + $0xb28] sm:$0xff] }
  0x88   :  { %2433 = vmatprep.subr.bf16.mxu1 %v2432_v36  ;;  %v337_v36 = vld [vmem:[%s4052_s1 + $0x8f0] sm:$0xff]  ;;  %v2422_v40 = vpack.c.bf16 %v320_v32, %v319_v31  ;;  %v378_v32 = vld [vmem:[%s4052_s1 + $0xa38] sm:$0xff] }
  0x89   :  { %2403 = vmatpush3.bf16.msra.mxu0 %v2402_v43  ;;  %v2424_v42 = vpack.c.bf16 %v338_v37, %v337_v36  ;;  %v321_v43 = vld [vmem:[%s4052_s1 + $0x870] sm:$0xff]  ;;  %v395_v36 = vld [vmem:[%s4052_s1 + $0xac0] sm:$0xff]  ;;  %v396_v37 = vld [vmem:[%s4052_s1 + $0xac8] sm:$0xff] }
  0x8a   :  { %2405 = vmatprep.subr.bf16.mxu0 %v2404_v46  ;;  %v2456_v46 = vpack.c.bf16 %v370_v39, %v369_v38  ;;  %v2426_v52 = vpack.c.bf16 %v322_v44, %v321_v43  ;;  %v377_v31 = vld [vmem:[%s4052_s1 + $0xa30] sm:$0xff]  ;;  %v427_v38 = vld [vmem:[%s4052_s1 + $0xbc0] sm:$0xff]  ;;  %v428_v39 = vld [vmem:[%s4052_s1 + $0xbc8] sm:$0xff] }
  0x8b   :  { %2435 = vmatpush3.bf16.msra.mxu1 %v2434_v45  ;;  %v353_v45 = vld [vmem:[%s4052_s1 + $0x970] sm:$0xff]  ;;  %v379_v43 = vld [vmem:[%s4052_s1 + $0xa40] sm:$0xff]  ;;  %v380_v44 = vld [vmem:[%s4052_s1 + $0xa48] sm:$0xff] }
  0x8c   :  { %2437 = vmatprep.subr.bf16.mxu1 %v2436_v50  ;;  %v419_v50 = vld [vmem:[%s4052_s1 + $0xb80] sm:$0xff]  ;;  %v2458_v53 = vpack.c.bf16 %v354_v47, %v353_v45  ;;  %v412_v47 = vld [vmem:[%s4052_s1 + $0xb48] sm:$0xff] }
  0x8d   :  { %2407 = vmatpush3.bf16.msra.mxu0 %v2406_v56  ;;  %v372_v56 = vld [vmem:[%s4052_s1 + $0xa08] sm:$0xff]  ;;  %v411_v45 = vld [vmem:[%s4052_s1 + $0xb40] sm:$0xff] }
  0x8e   :  { %2409 = vmatprep.subr.bf16.mxu0 %v2408_v58  ;;  %v2492_v58 = vpack.c.bf16 %v420_v51, %v419_v50  ;;  %v2462_v1 = vpack.c.bf16 %v372_v56, %v371_v55  ;;  %v429_v50 = vld [vmem:[%s4052_s1 + $0xbd0] sm:$0xff]  ;;  %v430_v51 = vld [vmem:[%s4052_s1 + $0xbd8] sm:$0xff] }
  0x8f   :  { %2439 = vmatpush3.bf16.msra.mxu1 %v2438_v57  ;;  %v403_v57 = vld [vmem:[%s4052_s1 + $0xb00] sm:$0xff]  ;;  %v381_v55 = vld [vmem:[%s4052_s1 + $0xa50] sm:$0xff]  ;;  %v382_v56 = vld [vmem:[%s4052_s1 + $0xa58] sm:$0xff] }
  0x90   :  { %2441 = vmatprep.subr.bf16.mxu1 %v2440_v62  ;;  %v421_v62 = vld [vmem:[%s4052_s1 + $0xb90] sm:$0xff]  ;;  %v2494_v3 = vpack.c.bf16 %v404_v59, %v403_v57  ;;  %v414_v59 = vld [vmem:[%s4052_s1 + $0xb58] sm:$0xff] }
  0x91   :  { %2411 = vmatpush3.bf16.msra.mxu0 %v2410_v4  ;;  %v2464_v4 = vpack.c.bf16 %v390_v61, %v389_v60  ;;  %v2496_v8 = vpack.c.bf16 %v422_v63, %v421_v62  ;;  %v413_v57 = vld [vmem:[%s4052_s1 + $0xb50] sm:$0xff]  ;;  %v399_v60 = vld [vmem:[%s4052_s1 + $0xae0] sm:$0xff]  ;;  %v400_v61 = vld [vmem:[%s4052_s1 + $0xae8] sm:$0xff] }
  0x92   :  { %2413 = vmatprep.subr.bf16.mxu0 %v2412_v6  ;;  %v374_v6 = vld [vmem:[%s4052_s1 + $0xa18] sm:$0xff]  ;;  %v431_v62 = vld [vmem:[%s4052_s1 + $0xbe0] sm:$0xff]  ;;  %v432_v63 = vld [vmem:[%s4052_s1 + $0xbe8] sm:$0xff] }
  0x93   :  { %2443 = vmatpush3.bf16.msra.mxu1 %v2442_v5  ;;  %v373_v5 = vld [vmem:[%s4052_s1 + $0xa10] sm:$0xff] }
  0x94   :  { %2445 = vmatprep.subr.bf16.mxu1 %v2444_v10  ;;  %v391_v10 = vld [vmem:[%s4052_s1 + $0xaa0] sm:$0xff]  ;;  %v2466_v15 = vpack.c.bf16 %v374_v6, %v373_v5  ;;  %v2516_v6 = vpack.c.bf16 %v432_v63, %v431_v62 }
  0x95   :  { %2415 = vmatpush3.bf16.msra.mxu0 %v2414_v16  ;;  %v49_v16 = vld [vmem:[%s4053_s0 + $0xb8] sm:$0xff]  ;;  %v415_v5 = vld [vmem:[%s4052_s1 + $0xb60] sm:$0xff] }
  0x96   :  { %2417 = vmatprep.subr.bf16.mxu0 %v2416_v18  ;;  %v2468_v18 = vpack.c.bf16 %v392_v11, %v391_v10  ;;  %v433_v10 = vld [vmem:[%s4052_s1 + $0xbf0] sm:$0xff]  ;;  %v434_v11 = vld [vmem:[%s4052_s1 + $0xbf8] sm:$0xff] }
  0x97   :  { %2447 = vmatpush3.bf16.msra.mxu1 %v2446_v17  ;;  %v2498_v17 = vpack.c.bf16 %v406_v9, %v405_v7  ;;  %v416_v7 = vld [vmem:[%s4052_s1 + $0xb68] sm:$0xff]  ;;  %v402_v9 = vld [vmem:[%s4052_s1 + $0xaf8] sm:$0xff] }
  0x98   :  { %2449 = vmatprep.subr.bf16.mxu1 %v2448_v22  ;;  %v2500_v22 = vpack.c.bf16 %v424_v13, %v423_v12  ;;  %v2518_v13 = vpack.c.bf16 %v416_v7, %v415_v5  ;;  %v1372_v7 = vld [vmem:[%s4055_s3 + $0x18] sm:$0xff] }
  0x99   :  { %2419 = vmatpush3.bf16.msra.mxu0 %v2418_v28  ;;  %v2470_v28 = vpack.c.bf16 %v376_v20, %v375_v19  ;;  %v418_v19 = vld [vmem:[%s4052_s1 + $0xb78] sm:$0xff] }
  0x9a   :  { %2421 = vmatprep.subr.bf16.mxu0 %v2420_v30  ;;  %v2472_v30 = vpack.c.bf16 %v394_v25, %v393_v24  ;;  %v46_v24 = vld [vmem:[%s4053_s0 + $0xa0] sm:$0xff] }
  0x9b   :  { %2451 = vmatpush3.bf16.msra.mxu1 %v2450_v29  ;;  %v2502_v29 = vpack.c.bf16 %v408_v23, %v407_v21  ;;  %v436_v23 = vld [vmem:[%s4052_s1 + $0xc08] sm:$0xff] }
  0x9c   :  { %2453 = vmatprep.subr.bf16.mxu1 %v2452_v34  ;;  %v2504_v34 = vpack.c.bf16 %v426_v27, %v425_v26  ;;  %v2599_v26 = vmov 0.0|0.0   ;;  %v48_v27 = vld [vmem:[%s4053_s0 + $0xb0] sm:$0xff] }
  0x9d   :  { %2423 = vmatpush3.bf16.msra.mxu0 %v2422_v40  ;;  %v2474_v40 = vpack.c.bf16 %v378_v32, %v377_v31  ;;  %v439_v31 = vld [vmem:[%s4052_s1 + $0xc20] sm:$0xff]  ;;  %v440_v32 = vld [vmem:[%s4052_s1 + $0xc28] sm:$0xff] }
  0x9e   :  { %2425 = vmatprep.subr.bf16.mxu0 %v2424_v42  ;;  %v2476_v42 = vpack.c.bf16 %v396_v37, %v395_v36  ;;  %v442_v36 = vld [vmem:[%s4052_s1 + $0xc38] sm:$0xff] }
  0x9f   :  { %2455 = vmatpush3.bf16.msra.mxu1 %v2454_v41  ;;  %v2506_v41 = vpack.c.bf16 %v410_v35, %v409_v33  ;;  %v2601_v33 = vmov 0.0   ;;  %v441_v35 = vld [vmem:[%s4052_s1 + $0xc30] sm:$0xff] }
  0xa0   :  { %2457 = vmatprep.subr.bf16.mxu1 %v2456_v46  ;;  %v2508_v46 = vpack.c.bf16 %v428_v39, %v427_v38  ;;  %v2534_v37 = vpack.c.bf16 %v442_v36, %v441_v35  ;;  %v443_v38 = vld [vmem:[%s4052_s1 + $0xc40] sm:$0xff]  ;;  %v444_v39 = vld [vmem:[%s4052_s1 + $0xc48] sm:$0xff] }
  0xa1   :  { %2427 = vmatpush3.bf16.msra.mxu0 %v2426_v52  ;;  %v2478_v52 = vpack.c.bf16 %v380_v44, %v379_v43  ;;  %v447_v44 = vld [vmem:[%s4052_s1 + $0xc60] sm:$0xff] }
  0xa2   :  { %2461 = vmatprep.subr.bf16.mxu0 %v2460_v54  ;;  %v2480_v54 = vpack.c.bf16 %v398_v49, %v397_v48  ;;  %v450_v48 = vld [vmem:[%s4052_s1 + $0xc78] sm:$0xff] }
  0xa3   :  { %2459 = vmatpush3.bf16.msra.mxu1 %v2458_v53  ;;  %v2510_v53 = vpack.c.bf16 %v412_v47, %v411_v45  ;;  %v448_v45 = vld [vmem:[%s4052_s1 + $0xc68] sm:$0xff]  ;;  %v449_v47 = vld [vmem:[%s4052_s1 + $0xc70] sm:$0xff] }
  0xa4   :  { %2493 = vmatprep.subr.bf16.mxu1 %v2492_v58  ;;  %1083 = vmatmul.mubr.f32.vlgmr.msra.gmra.mrb[8].mxu0 %v42_v0  ;;  %v2512_v58 = vpack.c.bf16 %v430_v51, %v429_v50  ;;  %v2482_v0 = vpack.c.bf16 %v382_v56, %v381_v55  ;;  %v2546_v49 = vpack.c.bf16 %v450_v48, %v449_v47  ;;  %v50_v50 = vld [vmem:[%s4053_s0 + $0xc0] sm:$0xff]  ;;  %v1470_v47 = vld [vmem:[%s4056_s5 + $0x38] sm:$0xff] }
  0xa5   :  { %2463 = vmatpush3.bf16.msra.mxu0 %v2462_v1  ;;  %1222 = vmatprep.mubr.f32.mxu0 %v47_v14  ;;  %v2514_v1 = vpack.c.bf16 %v414_v59, %v413_v57 }
  0xa6   :  { %1153 = vmatmul.mubr.f32.vlgmr.msra.gmra.mrb[8].mxu1 %v44_v2  ;;  %2465 = vmatprep.subr.bf16.mxu0 %v2464_v4  ;;  %v2484_v2 = vpack.c.bf16 %v400_v61, %v399_v60  ;;  %v384_v4 = vld [vmem:[%s4052_s1 + $0xa68] sm:$0xff] }
  0xa7   :  { %2495 = vmatpush3.bf16.msra.mxu1 %v2494_v3  ;;  %1292 = vmatprep.mubr.f32.mxu1 %v49_v16  ;;  %v383_v3 = vld [vmem:[%s4052_s1 + $0xa60] sm:$0xff]  ;;  %v386_v16 = vld [vmem:[%s4052_s1 + $0xa78] sm:$0xff] }
  0xa8   :  { %2497 = vmatprep.subr.bf16.mxu1 %v2496_v8  ;;  %v401_v8 = vld [vmem:[%s4052_s1 + $0xaf0] sm:$0xff]  ;;  %v2486_v12 = vpack.c.bf16 %v384_v4, %v383_v3  ;;  %v1370_v3 = vld [vmem:[%s4055_s3 + $0x8] sm:$0xff] }
  0xa9   :  { %2467 = vmatpush3.bf16.msra.mxu0 %v2466_v15  ;;  %v2488_v14 = vpack.c.bf16 %v402_v9, %v401_v8  ;;  %v385_v15 = vld [vmem:[%s4052_s1 + $0xa70] sm:$0xff] }
  0xaa   :  { %2469 = vmatprep.subr.bf16.mxu0 %v2468_v18  ;;  %v417_v18 = vld [vmem:[%s4052_s1 + $0xb70] sm:$0xff]  ;;  %v2490_v20 = vpack.c.bf16 %v386_v16, %v385_v15  ;;  %v1377_v16 = vld [vmem:[%s4055_s3 + $0x40] sm:$0xff] }
  0xab   :  { %2499 = vmatpush3.bf16.msra.mxu1 %v2498_v17  ;;  %v2520_v17 = vpack.c.bf16 %v434_v11, %v433_v10  ;;  %v2522_v21 = vpack.c.bf16 %v418_v19, %v417_v18  ;;  %v1373_v10 = vld [vmem:[%s4055_s3 + $0x20] sm:$0xff]  ;;  %v1374_v11 = vld [vmem:[%s4055_s3 + $0x28] sm:$0xff]  ;;  %v1379_v19 = vld [vmem:[%s4055_s3 + $0x50] sm:$0xff] }
  0xac   :  { %2501 = vmatprep.subr.bf16.mxu1 %v2500_v22  ;;  %v435_v22 = vld [vmem:[%s4052_s1 + $0xc00] sm:$0xff] }
  0xad   :  { %2471 = vmatpush3.bf16.msra.mxu0 %v2470_v28  ;;  %v2525_v25 = vpack.c.bf16 %v436_v23, %v435_v22  ;;  %v437_v28 = vld [vmem:[%s4052_s1 + $0xc10] sm:$0xff]  ;;  %v1381_v22 = vld [vmem:[%s4055_s3 + $0x60] sm:$0xff]  ;;  %v1382_v23 = vld [vmem:[%s4055_s3 + $0x68] sm:$0xff] }
  0xae   :  { %2473 = vmatprep.subr.bf16.mxu0 %v2472_v30 }
  0xaf   :  { %2503 = vmatpush3.bf16.msra.mxu1 %v2502_v29  ;;  %v438_v29 = vld [vmem:[%s4052_s1 + $0xc18] sm:$0xff] }
  0xb0   :  { %2505 = vmatprep.subr.bf16.mxu1 %v2504_v34  ;;  %v2528_v30 = vpack.c.bf16 %v438_v29, %v437_v28  ;;  %v2531_v34 = vpack.c.bf16 %v440_v32, %v439_v31 }
  0xb1   :  { %2475 = vmatpush3.bf16.msra.mxu0 %v2474_v40  ;;  %v2537_v40 = vpack.c.bf16 %v444_v39, %v443_v38  ;;  %v1464_v38 = vld [vmem:[%s4056_s5 + $0x8] sm:$0xff]  ;;  %v1465_v39 = vld [vmem:[%s4056_s5 + $0x10] sm:$0xff] }
  0xb2   :  { %2477 = vmatprep.subr.bf16.mxu0 %v2476_v42  ;;  %v446_v42 = vld [vmem:[%s4052_s1 + $0xc58] sm:$0xff] }
  0xb3   :  { %2507 = vmatpush3.bf16.msra.mxu1 %v2506_v41  ;;  %v445_v41 = vld [vmem:[%s4052_s1 + $0xc50] sm:$0xff] }
  0xb4   :  { %2509 = vmatprep.subr.bf16.mxu1 %v2508_v46  ;;  %v2540_v43 = vpack.c.bf16 %v446_v42, %v445_v41  ;;  %v2543_v46 = vpack.c.bf16 %v448_v45, %v447_v44  ;;  %v1466_v41 = vld [vmem:[%s4056_s5 + $0x18] sm:$0xff]  ;;  %v1468_v44 = vld [vmem:[%s4056_s5 + $0x28] sm:$0xff] }
  0xb5   :  { %2479 = vmatpush3.bf16.msra.mxu0 %v2478_v52  ;;  %v1561_v52 = vld [vmem:[%s4054_s2] ss:$0 sm:$0xff]  ;;  %v2576_v42 = vpack.c.bf16 %v1466_v41, %v1465_v39 }
  0xb6   :  { %2481 = vmatprep.subr.bf16.mxu0 %v2480_v54 }
  0xb7   :  { %2511 = vmatpush3.bf16.msra.mxu1 %v2510_v53 }
  0xb8   :  { %2513 = vmatprep.subr.bf16.mxu1 %v2512_v58 }
  0xb9   :  { %2483 = vmatpush3.bf16.msra.mxu0 %v2482_v0 }
  0xba   :  { %2485 = vmatprep.subr.bf16.mxu0 %v2484_v2  ;;  %v1369_v2 = vld [vmem:[%s4055_s3] sm:$0xff] }
  0xbb   :  { %2515 = vmatpush3.bf16.msra.mxu1 %v2514_v1  ;;  %v2549_v5 = vpack.c.bf16 %v1370_v3, %v1369_v2 }
  0xbc   :  { %2517 = vmatprep.subr.bf16.mxu1 %v2516_v6  ;;  %v1371_v6 = vld [vmem:[%s4055_s3 + $0x10] sm:$0xff] }
  0xbd   :  { %2487 = vmatpush3.bf16.msra.mxu0 %v2486_v12  ;;  %v2552_v9 = vpack.c.bf16 %v1372_v7, %v1371_v6  ;;  %v2555_v12 = vpack.c.bf16 %v1374_v11, %v1373_v10 }
  0xbe   :  { %2489 = vmatprep.subr.bf16.mxu0 %v2488_v14  ;;  %v1376_v14 = vld [vmem:[%s4055_s3 + $0x38] sm:$0xff] }
  0xbf   :  { %2519 = vmatpush3.bf16.msra.mxu1 %v2518_v13  ;;  %v1375_v13 = vld [vmem:[%s4055_s3 + $0x30] sm:$0xff] }
  0xc0   :  { %2521 = vmatprep.subr.bf16.mxu1 %v2520_v17  ;;  %v2558_v15 = vpack.c.bf16 %v1376_v14, %v1375_v13  ;;  %v1378_v17 = vld [vmem:[%s4055_s3 + $0x48] sm:$0xff] }
  0xc1   :  { %2491 = vmatpush3.bf16.msra.mxu0 %v2490_v20  ;;  %v2561_v18 = vpack.c.bf16 %v1378_v17, %v1377_v16  ;;  %v1380_v20 = vld [vmem:[%s4055_s3 + $0x58] sm:$0xff] }
  0xc2   :  { %2524 = vmatprep.subr.bf16.mxu0 %v2599_v26 }
  0xc3   :  { %2523 = vmatpush3.bf16.msra.mxu1 %v2522_v21  ;;  %v2564_v21 = vpack.c.bf16 %v1380_v20, %v1379_v19 }
  0xc4   :  { %2548 = vmatprep.subr.bf16.mxu1 %v2599_v26  ;;  %1223 = vmatmul.mubr.f32.vlgmr.msra.gmra.mrb[10].mxu0 %v46_v24  ;;  %v2567_v24 = vpack.c.bf16 %v1382_v23, %v1381_v22  ;;  %v1478_v22 = vld [vmem:[%s4056_s5 + $0x78] sm:$0xff] }
  0xc5   :  { %2526 = vmatpush3.bf16.msra.mxu0 %v2525_v25  ;;  %2067 = vmatprep.mubr.msk.f32.mxu0 %vm2600_vm0, %v2601_v33  ;;  %v1383_v25 = vld [vmem:[%s4055_s3 + $0x70] sm:$0xff] }
  0xc6   :  { %1293 = vmatmul.mubr.f32.vlgmr.msra.gmra.mrb[10].mxu1 %v48_v27  ;;  %2527 = vmatprep.subr.bf16.mxu0 %v2599_v26  ;;  %v1384_v27 = vld [vmem:[%s4055_s3 + $0x78] sm:$0xff] }
  0xc7   :  { %2102 = vmatprep.mubr.msk.f32.mxu1 %vm2600_vm0, %v2601_v33  ;;  %2550 = vmatpush3.bf16.msra.mxu1 %v2549_v5  ;;  %v2570_v29 = vpack.c.bf16 %v1384_v27, %v1383_v25 }
  0xc8   :  { %2551 = vmatprep.subr.bf16.mxu1 %v2599_v26 }
  0xc9   :  { %2529 = vmatpush3.bf16.msra.mxu0 %v2528_v30 }
  0xca   :  { %2530 = vmatprep.subr.bf16.mxu0 %v2599_v26 }
  0xcb   :  { %2553 = vmatpush3.bf16.msra.mxu1 %v2552_v9 }
  0xcc   :  { %2554 = vmatprep.subr.bf16.mxu1 %v2599_v26 }
  0xcd   :  { %2532 = vmatpush3.bf16.msra.mxu0 %v2531_v34 }
  0xce   :  { %2533 = vmatprep.subr.bf16.mxu0 %v2599_v26 }
  0xcf   :  { %2556 = vmatpush3.bf16.msra.mxu1 %v2555_v12 }
  0xd0   :  { %2557 = vmatprep.subr.bf16.mxu1 %v2599_v26 }
  0xd1   :  { %2535 = vmatpush3.bf16.msra.mxu0 %v2534_v37  ;;  %v1463_v37 = vld [vmem:[%s4056_s5] sm:$0xff] }
  0xd2   :  { %2536 = vmatprep.subr.bf16.mxu0 %v2599_v26 }
  0xd3   :  { %2559 = vmatpush3.bf16.msra.mxu1 %v2558_v15 }
  0xd4   :  { %2560 = vmatprep.subr.bf16.mxu1 %v2599_v26 }
  0xd5   :  { %2538 = vmatpush3.bf16.msra.mxu0 %v2537_v40  ;;  %v2573_v40 = vpack.c.bf16 %v1464_v38, %v1463_v37 }
  0xd6   :  { %2539 = vmatprep.subr.bf16.mxu0 %v2599_v26 }
  0xd7   :  { %2562 = vmatpush3.bf16.msra.mxu1 %v2561_v18 }
  0xd8   :  { %2563 = vmatprep.subr.bf16.mxu1 %v2599_v26 }
  0xd9   :  { %2541 = vmatpush3.bf16.msra.mxu0 %v2540_v43  ;;  %v1467_v43 = vld [vmem:[%s4056_s5 + $0x20] sm:$0xff] }
  0xda   :  { %2542 = vmatprep.subr.bf16.mxu0 %v2599_v26  ;;  %v2579_v45 = vpack.c.bf16 %v1468_v44, %v1467_v43 }
  0xdb   :  { %2565 = vmatpush3.bf16.msra.mxu1 %v2564_v21  ;;  %v1477_v21 = vld [vmem:[%s4056_s5 + $0x70] sm:$0xff] }
  0xdc   :  { %2566 = vmatprep.subr.bf16.mxu1 %v2599_v26  ;;  %v2594_v23 = vpack.c.bf16 %v1478_v22, %v1477_v21 }
  0xdd   :  { %2544 = vmatpush3.bf16.msra.mxu0 %v2543_v46  ;;  %v1469_v46 = vld [vmem:[%s4056_s5 + $0x30] sm:$0xff] }
  0xde   :  { %2545 = vmatprep.subr.bf16.mxu0 %v2599_v26  ;;  %v2582_v48 = vpack.c.bf16 %v1470_v47, %v1469_v46 }
  0xdf   :  { %2568 = vmatpush3.bf16.msra.mxu1 %v2567_v24  ;;  %v1562_v24 = vld [vmem:[%s4057_s4] ss:$0 sm:$0xff] }
  0xe0   :  { %2569 = vmatprep.subr.bf16.mxu1 %v2599_v26 }
  0xe1   :  { %2547 = vmatpush3.bf16.msra.mxu0 %v2546_v49  ;;  %v1471_v49 = vld [vmem:[%s4056_s5 + $0x40] sm:$0xff] }
  0xe2   :  { %2572 = vmatprep.subr.bf16.mxu0 %v2599_v26 }
  0xe3   :  { %2571 = vmatpush3.bf16.msra.mxu1 %v2570_v29 }
  0xe4   :  { %2068 = vmatmul.mubr.f32.vlgmr.msra.gmra.mrb[12].mxu0 %v50_v50  ;;  %v1472_v50 = vld [vmem:[%s4056_s5 + $0x48] sm:$0xff] }
  0xe5   :  { %2137 = vmatprep.mubr.msk.f32.mxu0 %vm2600_vm0, %v2601_v33  ;;  %2574 = vmatpush3.bf16.msra.mxu0 %v2573_v40 }
  0xe6   :  { %2575 = vmatprep.subr.bf16.mxu0 %v2599_v26 }
  0xe9   :  { %2577 = vmatpush3.bf16.msra.mxu0 %v2576_v42 }
  0xea   :  { %2578 = vmatprep.subr.bf16.mxu0 %v2599_v26 }
  0xed   :  { %2580 = vmatpush3.bf16.msra.mxu0 %v2579_v45 }
  0xee   :  { %2581 = vmatprep.subr.bf16.mxu0 %v2599_v26 }
  0xf1   :  { %2583 = vmatpush3.bf16.msra.mxu0 %v2582_v48 }
  0xf2   :  { %2584 = vmatprep.subr.bf16.mxu0 %v2599_v26 }
  0xf7   :  { %v1596_v51 = vpop.f32.mrb[0].mxu0 }
  0xf8   :  { %v1597_v53 = vpop.f32.mrb[1].mxu0 }
  0xf9   :  { %v1631_v54 = vpop.f32.mrb[0].mxu1  ;;  %v1598_v55 = vadd.f32 %v1597_v53, %v1596_v51  ;;  %v2585_v51 = vpack.c.bf16 %v1472_v50, %v1471_v49  ;;  %v1474_v53 = vld [vmem:[%s4056_s5 + $0x58] sm:$0xff] }
  0xfa   :  { %v1632_v56 = vpop.f32.mrb[1].mxu1 }
  0xfb   :  { %v1633_v57 = vadd.f32 %v1632_v56, %v1631_v54  ;;  %v525_v58 = vadd.f32 %v1598_v55, %v1561_v52  ;;  %v1473_v52 = vld [vmem:[%s4056_s5 + $0x50] sm:$0xff]  ;;  %2586 = vmatpush3.bf16.msra.mxu0 %v2585_v51  ;;  %v1475_v55 = vld [vmem:[%s4056_s5 + $0x60] sm:$0xff]  ;;  %v1476_v56 = vld [vmem:[%s4056_s5 + $0x68] sm:$0xff] }
  0xfc   :  { %v2588_v54 = vpack.c.bf16 %v1474_v53, %v1473_v52  ;;  %2587 = vmatprep.subr.bf16.mxu0 %v2599_v26 }
  0xfd   :  { %v595_v59 = vadd.f32 %v1633_v57, %v525_v58  ;;  %v2591_v57 = vpack.c.bf16 %v1476_v56, %v1475_v55 }
  0xff   :  { %2589 = vmatpush3.bf16.msra.mxu0 %v2588_v54 }
 0x100   :  { %2590 = vmatprep.subr.bf16.mxu0 %v2599_v26 }
 0x103   :  { %2592 = vmatpush3.bf16.msra.mxu0 %v2591_v57 }
 0x104   :  { %2593 = vmatprep.subr.bf16.mxu0 %v2599_v26 }
 0x107   :  { %2595 = vmatpush3.bf16.msra.mxu0 %v2594_v23 }
 0x117   :  { %v1666_v60 = vpop.f32.mrb[2].mxu0 }
 0x118   :  { %v1667_v61 = vpop.f32.mrb[3].mxu0 }
 0x119   :  { %v1701_v62 = vpop.f32.mrb[2].mxu1  ;;  %v1668_v63 = vadd.f32 %v1667_v61, %v1666_v60 }
 0x11a   :  { %v1702_v0 = vpop.f32.mrb[3].mxu1 }
 0x11b   :  { %v1703_v1 = vadd.f32 %v1702_v0, %v1701_v62  ;;  %v665_v4 = vadd.f32 %v1668_v63, %v595_v59 }
 0x11d   :  { %v735_v8 = vadd.f32 %v1703_v1, %v665_v4 }
 0x137   :  { %v1736_v28 = vpop.f32.mrb[4].mxu0 }
 0x138   :  { %v1737_v30 = vpop.f32.mrb[5].mxu0 }
 0x139   :  { %v1771_v31 = vpop.f32.mrb[4].mxu1  ;;  %v1738_v32 = vadd.f32 %v1737_v30, %v1736_v28  ;;  %v1563_v30 = vld [vmem:[%s4058_s6] ss:$0 sm:$0xff] }
 0x13a   :  { %v1772_v33 = vpop.f32.mrb[5].mxu1 }
 0x13b   :  { %v1773_v34 = vadd.f32 %v1772_v33, %v1771_v31  ;;  %v805_v35 = vadd.f32 %v1738_v32, %v735_v8 }
 0x13d   :  { %v875_v36 = vadd.f32 %v1773_v34, %v805_v35 }
 0x157   :  { %v1806_v58 = vpop.f32.mrb[6].mxu0 }
 0x158   :  { %v1807_v59 = vpop.f32.mrb[7].mxu0 }
 0x159   :  { %v1841_v60 = vpop.f32.mrb[6].mxu1  ;;  %v1808_v61 = vadd.f32 %v1807_v59, %v1806_v58 }
 0x15a   :  { %v1842_v62 = vpop.f32.mrb[7].mxu1 }
 0x15b   :  { %v1843_v63 = vadd.f32 %v1842_v62, %v1841_v60  ;;  %v945_v0 = vadd.f32 %v1808_v61, %v875_v36 }
 0x15d   :  { %v1015_v1 = vadd.f32 %v1843_v63, %v945_v0 }
 0x177   :  { %v1876_v2 = vpop.f32.mrb[8].mxu0 }
 0x178   :  { %v1877_v3 = vpop.f32.mrb[9].mxu0 }
 0x179   :  { %v1911_v4 = vpop.f32.mrb[8].mxu1  ;;  %v1878_v5 = vadd.f32 %v1877_v3, %v1876_v2 }
 0x17a   :  { %v1912_v6 = vpop.f32.mrb[9].mxu1 }
 0x17b   :  { %v1913_v7 = vadd.f32 %v1912_v6, %v1911_v4  ;;  %v1085_v8 = vadd.f32 %v1878_v5, %v1015_v1 }
 0x17d   :  { %v1155_v9 = vadd.f32 %v1913_v7, %v1085_v8 }
 0x197   :  { %v1946_v10 = vpop.f32.mrb[10].mxu0 }
 0x198   :  { %v1947_v11 = vpop.f32.mrb[11].mxu0 }
 0x199   :  { %v1981_v12 = vpop.f32.mrb[10].mxu1  ;;  %v1948_v13 = vadd.f32 %v1947_v11, %v1946_v10 }
 0x19a   :  { %v1982_v14 = vpop.f32.mrb[11].mxu1 }
 0x19b   :  { %v1983_v15 = vadd.f32 %v1982_v14, %v1981_v12  ;;  %v1225_v16 = vadd.f32 %v1948_v13, %v1155_v9 }
 0x19d   :  { %v1295_v17 = vadd.f32 %v1983_v15, %v1225_v16 }
 0x1b7   :  { %v1364_v26 = vpop.f32.mrb[12].mxu0 }
 0x1b8   :  { %v1365_v18 = vadd.f32 %v1364_v26, %v1295_v17  ;;  %v2069_v19 = vpop.f32.mrb[13].mxu0 }
 0x1ba   :  { %v1368_v20 = vmax.f32 %v1365_v18, 0.0 }
 0x1bc   :  { %2103 = vmatmul.mubr.f32.vlgmr.msra.gmra.mrb[12].mxu1 %v1368_v20 }
 0x28f   :  { %v1458_v25 = vpop.f32.mrb[12].mxu1 }
 0x290   :  { %v1459_v27 = vadd.f32 %v1562_v24, %v1458_v25  ;;  %v2104_v28 = vpop.f32.mrb[13].mxu1 }
 0x292   :  { %v1462_v29 = vmax.f32 %v1459_v27, 0.0 }
 0x294   :  { %2138 = vmatmul.mubr.f32.vlgmr.msra.gmra.mrb[14].mxu0 %v1462_v29 }
 0x367   :  { %v1552_v31 = vpop.f32.mrb[14].mxu0 }
 0x368   :  { %v1553_v32 = vadd.f32 %v1563_v30, %v1552_v31  ;;  %v2139_v33 = vpop.f32.mrb[15].mxu0 }
 0x36a   :  { %1556 = vst [vmem:[%s4059_s7] sm:$0xff] %v1553_v32 }

</bundles_post_ra>
